<compile_context>
chip_gen: v7x
topology: tpu7x:2x2x1
jax: 0.10.0
libtpu: 0.0.40
codegen_flags: <defaults>
</compile_context>

<pallas_src>
import functools

import jax
import jax.numpy as jnp
import numpy as np
from jax import lax
from jax.experimental import pallas as pl
from jax.experimental.pallas import tpu as pltpu


# -----------------------------------------------------------------------------
# Fused kernel: whole VAE forward for BB batch elements per grid step.
# -----------------------------------------------------------------------------
def _vae_fused_kernel(xpad_ref, w1_ref, b1_ref, w2_ref, b2_ref,
                      wd1_ref, bd1_ref, wd2_ref, bd2_ref,
                      o_ref,
                      xcol_ref, rowp1_ref, e1p_ref, x2col_ref, rowp2_ref,
                      *, H, W, BB):
    # xpad_ref: (BB, H+2, W+2, 3)  zero-padded raw input
    # w1_ref:   (27, 64)  bf16     b1_ref:  (1, 64)   f32
    # w2_ref:   (576, 128) bf16    b2_ref:  (1, 128)  f32
    # wd1_ref:  (128, 256) bf16    bd1_ref: (1, 256)  f32   (4 phases packed)
    # wd2_ref:  (256, 48)  bf16    bd2_ref: (1, 48)   f32   (block-diagonal)
    # o_ref:    (BB, (H/4)*(W/4), 48)  cols = (dy,dx,ey,ex,c)
    f32, bf16 = jnp.float32, jnp.bfloat16
    Cin = xpad_ref.shape[-1]               # 3
    C1 = w1_ref.shape[1]                   # 64
    C2 = w2_ref.shape[1]                   # 128
    H1, W1 = H // 2, W // 2                # e1 spatial
    H2, W2 = H // 4, W // 4                # e2 spatial
    M0, M1, M2 = BB * H * W, BB * H1 * W1, BB * H2 * W2

    # ------------- encoder layer 1: in-VMEM im2col, one K=27 matmul ----------
    for ky in range(3):
        for kx in range(3):
            t = ky * 3 + kx
            xcol_ref[:, Cin * t:Cin * (t + 1)] = (
                xpad_ref[:, ky:ky + H, kx:kx + W, :].reshape(M0, Cin))
    a1 = jnp.dot(xcol_ref[...].astype(bf16), w1_ref[...],
                 preferred_element_type=f32)
    a1 = jnp.maximum(a1 + b1_ref[...], 0.0)                       # (M0, C1) f32

    # 2x2 max-pool #1: row pairs in-register, column pairs via two stride-2
    # sublane reads of the row-pooled scratch.
    r1 = a1.reshape(BB, H1, 2, W, C1)
    rowp1_ref[...] = jnp.maximum(r1[:, :, 0], r1[:, :, 1]).reshape(BB * H1 * W, C1)
    e1 = jnp.maximum(rowp1_ref[pl.ds(0, M1, stride=2), :],
                     rowp1_ref[pl.ds(1, M1, stride=2), :])        # (M1, C1)

    # Halo for layer 2 lives only in VMEM; zero just the border strips (the
    # interior is overwritten every step).
    e1p_ref[:, 0:1, :, :] = jnp.zeros((BB, 1, W1 + 2, C1), f32)
    e1p_ref[:, H1 + 1:H1 + 2, :, :] = jnp.zeros((BB, 1, W1 + 2, C1), f32)
    e1p_ref[:, :, 0:1, :] = jnp.zeros((BB, H1 + 2, 1, C1), f32)
    e1p_ref[:, :, W1 + 1:W1 + 2, :] = jnp.zeros((BB, H1 + 2, 1, C1), f32)
    e1p_ref[:, 1:1 + H1, 1:1 + W1, :] = e1.reshape(BB, H1, W1, C1)

    # ------------- encoder layer 2: in-VMEM im2col, one K=576 matmul ---------
    for ky in range(3):
        for kx in range(3):
            t = ky * 3 + kx
            x2col_ref[:, C1 * t:C1 * (t + 1)] = (
                e1p_ref[:, ky:ky + H1, kx:kx + W1, :].reshape(M1, C1))
    a2 = jnp.dot(x2col_ref[...].astype(bf16), w2_ref[...],
                 preferred_element_type=f32)
    a2 = jnp.maximum(a2 + b2_ref[...], 0.0)                       # (M1, C2)

    r2 = a2.reshape(BB, H2, 2, W1, C2)
    rowp2_ref[...] = jnp.maximum(r2[:, :, 0], r2[:, :, 1]).reshape(BB * H2 * W1, C2)
    e2 = jnp.maximum(rowp2_ref[pl.ds(0, M2, stride=2), :],
                     rowp2_ref[pl.ds(1, M2, stride=2), :])        # (M2, C2)

    # ------------- decoder: two ConvTranspose2d(k=2, s=2) as matmuls ---------
    h = jnp.dot(e2.astype(bf16), wd1_ref[...], preferred_element_type=f32)
    h = jnp.maximum(h + bd1_ref[...], 0.0)                        # (M2, 256)
    y = jnp.dot(h.astype(bf16), wd2_ref[...], preferred_element_type=f32)
    y = y + bd2_ref[...]                                          # (M2, 48)
    sig = pl.reciprocal(1.0 + jnp.exp(-y), approx=True)
    o_ref[...] = sig.reshape(BB, H2 * W2, y.shape[-1]).astype(o_ref.dtype)


# -----------------------------------------------------------------------------
# Wrapper: weight packing (bf16), padded raw input, fused epilogue transpose.
# -----------------------------------------------------------------------------
def _pick_batch_block(B):
    for cand in (8, 4, 2):
        if B % cand == 0 and B // cand >= 2:   # keep >=2 grid steps (v7x 2 TCs)
            return cand
    return 1


@jax.jit
def vae_forward(params, x_nchw):
    x = jnp.transpose(x_nchw, (0, 2, 3, 1))            # NCHW -> NHWC
    B, H, W, Cin = x.shape
    assert Cin == 3 and H % 4 == 0 and W % 16 == 0, \
        "fused kernel assumes Cin==3, H%4==0, W%16==0"

    xpad = jnp.pad(x, ((0, 0), (1, 1), (1, 1), (0, 0)))  # only 3-ch raw input to HBM

    bf16 = jnp.bfloat16
    w1c = params["w1"].reshape(9 * Cin, -1).astype(bf16)           # (27, 64)
    C1 = w1c.shape[1]
    w2f = params["w2"].reshape(9 * C1, -1).astype(bf16)            # (576, 128)
    C2 = w2f.shape[1]

    Cd1 = params["wd1"].shape[-1]                                  # 64
    wd1p = params["wd1"].transpose(2, 0, 1, 3).reshape(C2, 4 * Cd1).astype(bf16)
    bd1p = jnp.tile(params["bd1"], 4).reshape(1, 4 * Cd1)

    Cout = params["wd2"].shape[-1]                                 # 3
    wd2s = params["wd2"].transpose(2, 0, 1, 3).reshape(Cd1, 4 * Cout)   # (64, 12)
    wd2b = jnp.kron(jnp.eye(4, dtype=wd2s.dtype), wd2s).astype(bf16)    # (256, 48)
    bd2p = jnp.tile(params["bd2"], 16).reshape(1, 16 * Cout)

    bb = _pick_batch_block(B)
    H2, W2 = H // 4, W // 4

    out = pl.pallas_call(
        functools.partial(_vae_fused_kernel, H=H, W=W, BB=bb),
        out_shape=jax.ShapeDtypeStruct((B, H2 * W2, 16 * Cout), x.dtype),
        grid=(B // bb,),
        in_specs=[
            pl.BlockSpec((bb, H + 2, W + 2, Cin), lambda b: (b, 0, 0, 0)),
            pl.BlockSpec((9 * Cin, C1), lambda b: (0, 0)),
            pl.BlockSpec((1, C1), lambda b: (0, 0)),
            pl.BlockSpec((9 * C1, C2), lambda b: (0, 0)),
            pl.BlockSpec((1, C2), lambda b: (0, 0)),
            pl.BlockSpec((C2, 4 * Cd1), lambda b: (0, 0)),
            pl.BlockSpec((1, 4 * Cd1), lambda b: (0, 0)),
            pl.BlockSpec((4 * Cd1, 16 * Cout), lambda b: (0, 0)),
            pl.BlockSpec((1, 16 * Cout), lambda b: (0, 0)),
        ],
        out_specs=pl.BlockSpec((bb, H2 * W2, 16 * Cout), lambda b: (b, 0, 0)),
        scratch_shapes=[
            pltpu.VMEM((bb * H * W, 9 * Cin), jnp.float32),            # L1 im2col
            pltpu.VMEM((bb * (H // 2) * W, C1), jnp.float32),          # row-pooled L1
            pltpu.VMEM((bb, H // 2 + 2, W // 2 + 2, C1), jnp.float32), # e1 + halo
            pltpu.VMEM((bb * (H // 2) * (W // 2), 9 * C1), jnp.float32),  # L2 im2col
            pltpu.VMEM((bb * (H // 4) * (W // 2), C2), jnp.float32),   # row-pooled L2
        ],
        compiler_params=pltpu.CompilerParams(
            dimension_semantics=("parallel",),
            vmem_limit_bytes=32 * 1024 * 1024),
    )(xpad, w1c, params["b1"].reshape(1, C1), w2f, params["b2"].reshape(1, C2),
      wd1p, bd1p, wd2b, bd2p)

    # Fused epilogue: rows of `out` are e2 positions (i,j); cols (dy,dx,ey,ex,c).
    # Output pixel is (4i+2dy+ey, 4j+2dx+ex, c).  Phase interleave + NHWC->NCHW
    # done in a SINGLE transpose.
    y = out.reshape(B, H2, W2, 2, 2, 2, 2, Cout)
    y = y.transpose(0, 7, 1, 3, 5, 2, 4, 6).reshape(B, Cout, H, W)
    return y


# -----------------------------------------------------------------------------
# Deterministic parameter init + pure-JAX reference.
# -----------------------------------------------------------------------------
def init_params(key):
    ks = jax.random.split(key, 8)

    def wgt(k, kh, kw, cin, cout):
        scale = 1.0 / np.sqrt(kh * kw * cin)
        return jax.random.normal(k, (kh, kw, cin, cout), jnp.float32) * scale

    return dict(
        w1=wgt(ks[0], 3, 3, 3, 64),
        b1=jax.random.normal(ks[1], (64,), jnp.float32) * 0.01,
        w2=wgt(ks[2], 3, 3, 64, 128),
        b2=jax.random.normal(ks[3], (128,), jnp.float32) * 0.01,
        wd1=wgt(ks[4], 2, 2, 128, 64),
        bd1=jax.random.normal(ks[5], (64,), jnp.float32) * 0.01,
        wd2=wgt(ks[6], 2, 2, 64, 3),
        bd2=jax.random.normal(ks[7], (3,), jnp.float32) * 0.01,
    )


def reference_forward(params, x_nchw):
    x = jnp.transpose(x_nchw, (0, 2, 3, 1))

    def conv_block(h, w, b):
        y = lax.conv_general_dilated(
            h, w, (1, 1), "SAME",
            dimension_numbers=("NHWC", "HWIO", "NHWC"))
        y = jnp.maximum(y + b, 0.0)
        B, H, W, C = y.shape
        return y.reshape(B, H // 2, 2, W // 2, 2, C).max(axis=(2, 4))

    def deconv_block(h, w, b, act):
        y = jnp.einsum("bijc,yxcd->bijyxd", h, w) + b
        B, Hi, Wi, _, _, C = y.shape
        y = y.transpose(0, 1, 3, 2, 4, 5).reshape(B, 2 * Hi, 2 * Wi, C)
        return jnp.maximum(y, 0.0) if act == "relu" else jax.nn.sigmoid(y)

    e1 = conv_block(x, params["w1"], params["b1"])
    e2 = conv_block(e1, params["w2"], params["b2"])
    d1 = deconv_block(e2, params["wd1"], params["bd1"], "relu")
    d2 = deconv_block(d1, params["wd2"], params["bd2"], "sigmoid")
    return jnp.transpose(d2, (0, 3, 1, 2))


if __name__ == "__main__":
    key = jax.random.PRNGKey(0)
    pkey, xkey = jax.random.split(key)
    params = init_params(pkey)

    x = jax.random.normal(xkey, (2, 3, 16, 16), jnp.float32)       # NCHW like PyTorch

    out = jax.block_until_ready(vae_forward(params, x))
    assert out.shape == (2, 3, 16, 16), out.shape

    ref = jax.block_until_ready(reference_forward(params, x))
    # bf16 MXU operands + approximate reciprocal sigmoid -> slightly looser tol.
    np.testing.assert_allclose(np.asarray(out), np.asarray(ref),
                               atol=3e-2, rtol=3e-2)
    print("KERNEL_OK")
</pallas_src>

<mosaic_0001>
module attributes {stable_mosaic.version = 11 : i64} {
  func.func @_vae_fused_kernel(%arg0: i32, %arg1: memref<1x18x18x3xf32, #tpu.memory_space<vmem>>, %arg2: memref<27x64xbf16, #tpu.memory_space<vmem>>, %arg3: memref<1x64xf32, #tpu.memory_space<vmem>>, %arg4: memref<576x128xbf16, #tpu.memory_space<vmem>>, %arg5: memref<1x128xf32, #tpu.memory_space<vmem>>, %arg6: memref<128x256xbf16, #tpu.memory_space<vmem>>, %arg7: memref<1x256xf32, #tpu.memory_space<vmem>>, %arg8: memref<256x48xbf16, #tpu.memory_space<vmem>>, %arg9: memref<1x48xf32, #tpu.memory_space<vmem>>, %arg10: memref<1x16x48xf32, #tpu.memory_space<vmem>>, %arg11: memref<256x27xf32, #tpu.memory_space<vmem>>, %arg12: memref<128x64xf32, #tpu.memory_space<vmem>>, %arg13: memref<1x10x10x64xf32, #tpu.memory_space<vmem>>, %arg14: memref<64x576xf32, #tpu.memory_space<vmem>>, %arg15: memref<32x128xf32, #tpu.memory_space<vmem>>) attributes {dimension_semantics = [#tpu.dimension_semantics<parallel>], iteration_bounds = array<i64: 2>, scalar_prefetch = 0 : i64, scratch_operands = 5 : i64, tpu.core_type = #tpu.core_type<tc>, window_params = [{transform_indices = @transform_0, window_bounds = array<i64: 1, 18, 18, 3>}, {pipeline_mode = #tpu.pipeline_mode<synchronous>, transform_indices = @transform_1, window_bounds = array<i64: 27, 64>}, {pipeline_mode = #tpu.pipeline_mode<synchronous>, transform_indices = @transform_2, window_bounds = array<i64: 1, 64>}, {pipeline_mode = #tpu.pipeline_mode<synchronous>, transform_indices = @transform_3, window_bounds = array<i64: 576, 128>}, {pipeline_mode = #tpu.pipeline_mode<synchronous>, transform_indices = @transform_4, window_bounds = array<i64: 1, 128>}, {pipeline_mode = #tpu.pipeline_mode<synchronous>, transform_indices = @transform_5, window_bounds = array<i64: 128, 256>}, {pipeline_mode = #tpu.pipeline_mode<synchronous>, transform_indices = @transform_6, window_bounds = array<i64: 1, 256>}, {pipeline_mode = #tpu.pipeline_mode<synchronous>, transform_indices = @transform_7, window_bounds = array<i64: 256, 48>}, {pipeline_mode = #tpu.pipeline_mode<synchronous>, transform_indices = @transform_8, window_bounds = array<i64: 1, 48>}, {transform_indices = @transform_9, window_bounds = array<i64: 1, 16, 48>}]} {
    %c0 = arith.constant 0 : index
    %c0_0 = arith.constant 0 : index
    %c0_1 = arith.constant 0 : index
    %c0_2 = arith.constant 0 : index
    %0 = vector.load %arg1[%c0, %c0_0, %c0_1, %c0_2] : memref<1x18x18x3xf32, #tpu.memory_space<vmem>>, vector<1x16x16x3xf32>
    %1 = vector.shape_cast %0 : vector<1x16x16x3xf32> to vector<256x3xf32>
    %c0_3 = arith.constant 0 : index
    %c0_4 = arith.constant 0 : index
    %2 = vector.load %arg11[%c0_3, %c0_4] : memref<256x27xf32, #tpu.memory_space<vmem>>, vector<256x3xf32>
    tpu.vector_store %arg11[%c0_3, %c0_4], %1 {strides = array<i32>} : memref<256x27xf32, #tpu.memory_space<vmem>>, vector<256x3xf32>,
    %c0_5 = arith.constant 0 : index
    %c0_6 = arith.constant 0 : index
    %c1 = arith.constant 1 : index
    %c0_7 = arith.constant 0 : index
    %3 = vector.load %arg1[%c0_5, %c0_6, %c1, %c0_7] : memref<1x18x18x3xf32, #tpu.memory_space<vmem>>, vector<1x16x16x3xf32>
    %4 = vector.shape_cast %3 : vector<1x16x16x3xf32> to vector<256x3xf32>
    %c0_8 = arith.constant 0 : index
    %c3 = arith.constant 3 : index
    %5 = vector.load %arg11[%c0_8, %c3] : memref<256x27xf32, #tpu.memory_space<vmem>>, vector<256x3xf32>
    tpu.vector_store %arg11[%c0_8, %c3], %4 {strides = array<i32>} : memref<256x27xf32, #tpu.memory_space<vmem>>, vector<256x3xf32>,
    %c0_9 = arith.constant 0 : index
    %c0_10 = arith.constant 0 : index
    %c2 = arith.constant 2 : index
    %c0_11 = arith.constant 0 : index
    %6 = vector.load %arg1[%c0_9, %c0_10, %c2, %c0_11] : memref<1x18x18x3xf32, #tpu.memory_space<vmem>>, vector<1x16x16x3xf32>
    %7 = vector.shape_cast %6 : vector<1x16x16x3xf32> to vector<256x3xf32>
    %c0_12 = arith.constant 0 : index
    %c6 = arith.constant 6 : index
    %8 = vector.load %arg11[%c0_12, %c6] : memref<256x27xf32, #tpu.memory_space<vmem>>, vector<256x3xf32>
    tpu.vector_store %arg11[%c0_12, %c6], %7 {strides = array<i32>} : memref<256x27xf32, #tpu.memory_space<vmem>>, vector<256x3xf32>,
    %c0_13 = arith.constant 0 : index
    %c1_14 = arith.constant 1 : index
    %c0_15 = arith.constant 0 : index
    %c0_16 = arith.constant 0 : index
    %9 = vector.load %arg1[%c0_13, %c1_14, %c0_15, %c0_16] : memref<1x18x18x3xf32, #tpu.memory_space<vmem>>, vector<1x16x16x3xf32>
    %10 = vector.shape_cast %9 : vector<1x16x16x3xf32> to vector<256x3xf32>
    %c0_17 = arith.constant 0 : index
    %c9 = arith.constant 9 : index
    %11 = vector.load %arg11[%c0_17, %c9] : memref<256x27xf32, #tpu.memory_space<vmem>>, vector<256x3xf32>
    tpu.vector_store %arg11[%c0_17, %c9], %10 {strides = array<i32>} : memref<256x27xf32, #tpu.memory_space<vmem>>, vector<256x3xf32>,
    %c0_18 = arith.constant 0 : index
    %c1_19 = arith.constant 1 : index
    %c1_20 = arith.constant 1 : index
    %c0_21 = arith.constant 0 : index
    %12 = vector.load %arg1[%c0_18, %c1_19, %c1_20, %c0_21] : memref<1x18x18x3xf32, #tpu.memory_space<vmem>>, vector<1x16x16x3xf32>
    %13 = vector.shape_cast %12 : vector<1x16x16x3xf32> to vector<256x3xf32>
    %c0_22 = arith.constant 0 : index
    %c12 = arith.constant 12 : index
    %14 = vector.load %arg11[%c0_22, %c12] : memref<256x27xf32, #tpu.memory_space<vmem>>, vector<256x3xf32>
    tpu.vector_store %arg11[%c0_22, %c12], %13 {strides = array<i32>} : memref<256x27xf32, #tpu.memory_space<vmem>>, vector<256x3xf32>,
    %c0_23 = arith.constant 0 : index
    %c1_24 = arith.constant 1 : index
    %c2_25 = arith.constant 2 : index
    %c0_26 = arith.constant 0 : index
    %15 = vector.load %arg1[%c0_23, %c1_24, %c2_25, %c0_26] : memref<1x18x18x3xf32, #tpu.memory_space<vmem>>, vector<1x16x16x3xf32>
    %16 = vector.shape_cast %15 : vector<1x16x16x3xf32> to vector<256x3xf32>
    %c0_27 = arith.constant 0 : index
    %c15 = arith.constant 15 : index
    %17 = vector.load %arg11[%c0_27, %c15] : memref<256x27xf32, #tpu.memory_space<vmem>>, vector<256x3xf32>
    tpu.vector_store %arg11[%c0_27, %c15], %16 {strides = array<i32>} : memref<256x27xf32, #tpu.memory_space<vmem>>, vector<256x3xf32>,
    %c0_28 = arith.constant 0 : index
    %c2_29 = arith.constant 2 : index
    %c0_30 = arith.constant 0 : index
    %c0_31 = arith.constant 0 : index
    %18 = vector.load %arg1[%c0_28, %c2_29, %c0_30, %c0_31] : memref<1x18x18x3xf32, #tpu.memory_space<vmem>>, vector<1x16x16x3xf32>
    %19 = vector.shape_cast %18 : vector<1x16x16x3xf32> to vector<256x3xf32>
    %c0_32 = arith.constant 0 : index
    %c18 = arith.constant 18 : index
    %20 = vector.load %arg11[%c0_32, %c18] : memref<256x27xf32, #tpu.memory_space<vmem>>, vector<256x3xf32>
    tpu.vector_store %arg11[%c0_32, %c18], %19 {strides = array<i32>} : memref<256x27xf32, #tpu.memory_space<vmem>>, vector<256x3xf32>,
    %c0_33 = arith.constant 0 : index
    %c2_34 = arith.constant 2 : index
    %c1_35 = arith.constant 1 : index
    %c0_36 = arith.constant 0 : index
    %21 = vector.load %arg1[%c0_33, %c2_34, %c1_35, %c0_36] : memref<1x18x18x3xf32, #tpu.memory_space<vmem>>, vector<1x16x16x3xf32>
    %22 = vector.shape_cast %21 : vector<1x16x16x3xf32> to vector<256x3xf32>
    %c0_37 = arith.constant 0 : index
    %c21 = arith.constant 21 : index
    %23 = vector.load %arg11[%c0_37, %c21] : memref<256x27xf32, #tpu.memory_space<vmem>>, vector<256x3xf32>
    tpu.vector_store %arg11[%c0_37, %c21], %22 {strides = array<i32>} : memref<256x27xf32, #tpu.memory_space<vmem>>, vector<256x3xf32>,
    %c0_38 = arith.constant 0 : index
    %c2_39 = arith.constant 2 : index
    %c2_40 = arith.constant 2 : index
    %c0_41 = arith.constant 0 : index
    %24 = vector.load %arg1[%c0_38, %c2_39, %c2_40, %c0_41] : memref<1x18x18x3xf32, #tpu.memory_space<vmem>>, vector<1x16x16x3xf32>
    %25 = vector.shape_cast %24 : vector<1x16x16x3xf32> to vector<256x3xf32>
    %c0_42 = arith.constant 0 : index
    %c24 = arith.constant 24 : index
    %26 = vector.load %arg11[%c0_42, %c24] : memref<256x27xf32, #tpu.memory_space<vmem>>, vector<256x3xf32>
    tpu.vector_store %arg11[%c0_42, %c24], %25 {strides = array<i32>} : memref<256x27xf32, #tpu.memory_space<vmem>>, vector<256x3xf32>,
    %c0_43 = arith.constant 0 : index
    %c0_44 = arith.constant 0 : index
    %27 = vector.load %arg11[%c0_43, %c0_44] : memref<256x27xf32, #tpu.memory_space<vmem>>, vector<256x27xf32>
    %28 = arith.truncf %27 : vector<256x27xf32> to vector<256x27xbf16>
    %c0_45 = arith.constant 0 : index
    %c0_46 = arith.constant 0 : index
    %29 = vector.load %arg2[%c0_45, %c0_46] : memref<27x64xbf16, #tpu.memory_space<vmem>>, vector<27x64xbf16>
    %cst = arith.constant dense<0.000000e+00> : vector<256x64xf32>
    %30 = tpu.matmul %28, %29, %cst {dimension_numbers = #tpu.dot_dimension_numbers<[1], [0], [0], [1], [0, 0, 1, 1], [], []>} : vector<256x27xbf16>, vector<27x64xbf16>, vector<256x64xf32> -> vector<256x64xf32>
    %c0_47 = arith.constant 0 : index
    %c0_48 = arith.constant 0 : index
    %31 = vector.load %arg3[%c0_47, %c0_48] : memref<1x64xf32, #tpu.memory_space<vmem>>, vector<1x64xf32>
    %32 = vector.broadcast %31 : vector<1x64xf32> to vector<256x64xf32>
    %33 = arith.addf %30, %32 : vector<256x64xf32>
    %cst_49 = arith.constant 0.000000e+00 : f32
    %34 = vector.broadcast %cst_49 : f32 to vector<256x64xf32>
    %35 = arith.maximumf %33, %34 : vector<256x64xf32>
    %36 = vector.shape_cast %35 : vector<256x64xf32> to vector<1x8x2x16x64xf32>
    %37 = vector.extract_strided_slice %36 {offsets = [0, 0, 0, 0, 0], sizes = [1, 8, 1, 16, 64], strides = [1, 1, 1, 1, 1]} : vector<1x8x2x16x64xf32> to vector<1x8x1x16x64xf32>
    %38 = vector.shape_cast %37 : vector<1x8x1x16x64xf32> to vector<1x8x16x64xf32>
    %39 = vector.extract_strided_slice %36 {offsets = [0, 0, 1, 0, 0], sizes = [1, 8, 1, 16, 64], strides = [1, 1, 1, 1, 1]} : vector<1x8x2x16x64xf32> to vector<1x8x1x16x64xf32>
    %40 = vector.shape_cast %39 : vector<1x8x1x16x64xf32> to vector<1x8x16x64xf32>
    %41 = arith.maximumf %38, %40 : vector<1x8x16x64xf32>
    %42 = vector.shape_cast %41 : vector<1x8x16x64xf32> to vector<128x64xf32>
    %c0_50 = arith.constant 0 : index
    %c0_51 = arith.constant 0 : index
    %43 = vector.load %arg12[%c0_50, %c0_51] : memref<128x64xf32, #tpu.memory_space<vmem>>, vector<128x64xf32>
    tpu.vector_store %arg12[%c0_50, %c0_51], %42 {strides = array<i32>} : memref<128x64xf32, #tpu.memory_space<vmem>>, vector<128x64xf32>,
    %c0_52 = arith.constant 0 : index
    %c0_53 = arith.constant 0 : index
    %44 = tpu.strided_load %arg12[%c0_52, %c0_53] {strides = array<i32: 2, 1>} : memref<128x64xf32, #tpu.memory_space<vmem>>, vector<64x64xf32>
    %c1_54 = arith.constant 1 : index
    %c0_55 = arith.constant 0 : index
    %45 = tpu.strided_load %arg12[%c1_54, %c0_55] {strides = array<i32: 2, 1>} : memref<128x64xf32, #tpu.memory_space<vmem>>, vector<64x64xf32>
    %46 = arith.maximumf %44, %45 : vector<64x64xf32>
    %cst_56 = arith.constant 0.000000e+00 : f32
    %47 = vector.broadcast %cst_56 : f32 to vector<1x1x10x64xf32>
    %c0_57 = arith.constant 0 : index
    %c0_58 = arith.constant 0 : index
    %c0_59 = arith.constant 0 : index
    %c0_60 = arith.constant 0 : index
    %48 = vector.load %arg13[%c0_57, %c0_58, %c0_59, %c0_60] : memref<1x10x10x64xf32, #tpu.memory_space<vmem>>, vector<1x1x10x64xf32>
    tpu.vector_store %arg13[%c0_57, %c0_58, %c0_59, %c0_60], %47 {strides = array<i32>} : memref<1x10x10x64xf32, #tpu.memory_space<vmem>>, vector<1x1x10x64xf32>,
    %cst_61 = arith.constant 0.000000e+00 : f32
    %49 = vector.broadcast %cst_61 : f32 to vector<1x1x10x64xf32>
    %c0_62 = arith.constant 0 : index
    %c9_63 = arith.constant 9 : index
    %c0_64 = arith.constant 0 : index
    %c0_65 = arith.constant 0 : index
    %50 = vector.load %arg13[%c0_62, %c9_63, %c0_64, %c0_65] : memref<1x10x10x64xf32, #tpu.memory_space<vmem>>, vector<1x1x10x64xf32>
    tpu.vector_store %arg13[%c0_62, %c9_63, %c0_64, %c0_65], %49 {strides = array<i32>} : memref<1x10x10x64xf32, #tpu.memory_space<vmem>>, vector<1x1x10x64xf32>,
    %cst_66 = arith.constant 0.000000e+00 : f32
    %51 = vector.broadcast %cst_66 : f32 to vector<1x10x1x64xf32>
    %c0_67 = arith.constant 0 : index
    %c0_68 = arith.constant 0 : index
    %c0_69 = arith.constant 0 : index
    %c0_70 = arith.constant 0 : index
    %52 = vector.load %arg13[%c0_67, %c0_68, %c0_69, %c0_70] : memref<1x10x10x64xf32, #tpu.memory_space<vmem>>, vector<1x10x1x64xf32>
    tpu.vector_store %arg13[%c0_67, %c0_68, %c0_69, %c0_70], %51 {strides = array<i32>} : memref<1x10x10x64xf32, #tpu.memory_space<vmem>>, vector<1x10x1x64xf32>,
    %cst_71 = arith.constant 0.000000e+00 : f32
    %53 = vector.broadcast %cst_71 : f32 to vector<1x10x1x64xf32>
    %c0_72 = arith.constant 0 : index
    %c0_73 = arith.constant 0 : index
    %c9_74 = arith.constant 9 : index
    %c0_75 = arith.constant 0 : index
    %54 = vector.load %arg13[%c0_72, %c0_73, %c9_74, %c0_75] : memref<1x10x10x64xf32, #tpu.memory_space<vmem>>, vector<1x10x1x64xf32>
    tpu.vector_store %arg13[%c0_72, %c0_73, %c9_74, %c0_75], %53 {strides = array<i32>} : memref<1x10x10x64xf32, #tpu.memory_space<vmem>>, vector<1x10x1x64xf32>,
    %55 = vector.shape_cast %46 : vector<64x64xf32> to vector<1x8x8x64xf32>
    %c0_76 = arith.constant 0 : index
    %c1_77 = arith.constant 1 : index
    %c1_78 = arith.constant 1 : index
    %c0_79 = arith.constant 0 : index
    %56 = vector.load %arg13[%c0_76, %c1_77, %c1_78, %c0_79] : memref<1x10x10x64xf32, #tpu.memory_space<vmem>>, vector<1x8x8x64xf32>
    tpu.vector_store %arg13[%c0_76, %c1_77, %c1_78, %c0_79], %55 {strides = array<i32>} : memref<1x10x10x64xf32, #tpu.memory_space<vmem>>, vector<1x8x8x64xf32>,
    %c0_80 = arith.constant 0 : index
    %c0_81 = arith.constant 0 : index
    %c0_82 = arith.constant 0 : index
    %c0_83 = arith.constant 0 : index
    %57 = vector.load %arg13[%c0_80, %c0_81, %c0_82, %c0_83] : memref<1x10x10x64xf32, #tpu.memory_space<vmem>>, vector<1x8x8x64xf32>
    %58 = vector.shape_cast %57 : vector<1x8x8x64xf32> to vector<64x64xf32>
    %c0_84 = arith.constant 0 : index
    %c0_85 = arith.constant 0 : index
    %59 = vector.load %arg14[%c0_84, %c0_85] : memref<64x576xf32, #tpu.memory_space<vmem>>, vector<64x64xf32>
    tpu.vector_store %arg14[%c0_84, %c0_85], %58 {strides = array<i32>} : memref<64x576xf32, #tpu.memory_space<vmem>>, vector<64x64xf32>,
    %c0_86 = arith.constant 0 : index
    %c0_87 = arith.constant 0 : index
    %c1_88 = arith.constant 1 : index
    %c0_89 = arith.constant 0 : index
    %60 = vector.load %arg13[%c0_86, %c0_87, %c1_88, %c0_89] : memref<1x10x10x64xf32, #tpu.memory_space<vmem>>, vector<1x8x8x64xf32>
    %61 = vector.shape_cast %60 : vector<1x8x8x64xf32> to vector<64x64xf32>
    %c0_90 = arith.constant 0 : index
    %c64 = arith.constant 64 : index
    %62 = vector.load %arg14[%c0_90, %c64] : memref<64x576xf32, #tpu.memory_space<vmem>>, vector<64x64xf32>
    tpu.vector_store %arg14[%c0_90, %c64], %61 {strides = array<i32>} : memref<64x576xf32, #tpu.memory_space<vmem>>, vector<64x64xf32>,
    %c0_91 = arith.constant 0 : index
    %c0_92 = arith.constant 0 : index
    %c2_93 = arith.constant 2 : index
    %c0_94 = arith.constant 0 : index
    %63 = vector.load %arg13[%c0_91, %c0_92, %c2_93, %c0_94] : memref<1x10x10x64xf32, #tpu.memory_space<vmem>>, vector<1x8x8x64xf32>
    %64 = vector.shape_cast %63 : vector<1x8x8x64xf32> to vector<64x64xf32>
    %c0_95 = arith.constant 0 : index
    %c128 = arith.constant 128 : index
    %65 = vector.load %arg14[%c0_95, %c128] : memref<64x576xf32, #tpu.memory_space<vmem>>, vector<64x64xf32>
    tpu.vector_store %arg14[%c0_95, %c128], %64 {strides = array<i32>} : memref<64x576xf32, #tpu.memory_space<vmem>>, vector<64x64xf32>,
    %c0_96 = arith.constant 0 : index
    %c1_97 = arith.constant 1 : index
    %c0_98 = arith.constant 0 : index
    %c0_99 = arith.constant 0 : index
    %66 = vector.load %arg13[%c0_96, %c1_97, %c0_98, %c0_99] : memref<1x10x10x64xf32, #tpu.memory_space<vmem>>, vector<1x8x8x64xf32>
    %67 = vector.shape_cast %66 : vector<1x8x8x64xf32> to vector<64x64xf32>
    %c0_100 = arith.constant 0 : index
    %c192 = arith.constant 192 : index
    %68 = vector.load %arg14[%c0_100, %c192] : memref<64x576xf32, #tpu.memory_space<vmem>>, vector<64x64xf32>
    tpu.vector_store %arg14[%c0_100, %c192], %67 {strides = array<i32>} : memref<64x576xf32, #tpu.memory_space<vmem>>, vector<64x64xf32>,
    %c0_101 = arith.constant 0 : index
    %c1_102 = arith.constant 1 : index
    %c1_103 = arith.constant 1 : index
    %c0_104 = arith.constant 0 : index
    %69 = vector.load %arg13[%c0_101, %c1_102, %c1_103, %c0_104] : memref<1x10x10x64xf32, #tpu.memory_space<vmem>>, vector<1x8x8x64xf32>
    %70 = vector.shape_cast %69 : vector<1x8x8x64xf32> to vector<64x64xf32>
    %c0_105 = arith.constant 0 : index
    %c256 = arith.constant 256 : index
    %71 = vector.load %arg14[%c0_105, %c256] : memref<64x576xf32, #tpu.memory_space<vmem>>, vector<64x64xf32>
    tpu.vector_store %arg14[%c0_105, %c256], %70 {strides = array<i32>} : memref<64x576xf32, #tpu.memory_space<vmem>>, vector<64x64xf32>,
    %c0_106 = arith.constant 0 : index
    %c1_107 = arith.constant 1 : index
    %c2_108 = arith.constant 2 : index
    %c0_109 = arith.constant 0 : index
    %72 = vector.load %arg13[%c0_106, %c1_107, %c2_108, %c0_109] : memref<1x10x10x64xf32, #tpu.memory_space<vmem>>, vector<1x8x8x64xf32>
    %73 = vector.shape_cast %72 : vector<1x8x8x64xf32> to vector<64x64xf32>
    %c0_110 = arith.constant 0 : index
    %c320 = arith.constant 320 : index
    %74 = vector.load %arg14[%c0_110, %c320] : memref<64x576xf32, #tpu.memory_space<vmem>>, vector<64x64xf32>
    tpu.vector_store %arg14[%c0_110, %c320], %73 {strides = array<i32>} : memref<64x576xf32, #tpu.memory_space<vmem>>, vector<64x64xf32>,
    %c0_111 = arith.constant 0 : index
    %c2_112 = arith.constant 2 : index
    %c0_113 = arith.constant 0 : index
    %c0_114 = arith.constant 0 : index
    %75 = vector.load %arg13[%c0_111, %c2_112, %c0_113, %c0_114] : memref<1x10x10x64xf32, #tpu.memory_space<vmem>>, vector<1x8x8x64xf32>
    %76 = vector.shape_cast %75 : vector<1x8x8x64xf32> to vector<64x64xf32>
    %c0_115 = arith.constant 0 : index
    %c384 = arith.constant 384 : index
    %77 = vector.load %arg14[%c0_115, %c384] : memref<64x576xf32, #tpu.memory_space<vmem>>, vector<64x64xf32>
    tpu.vector_store %arg14[%c0_115, %c384], %76 {strides = array<i32>} : memref<64x576xf32, #tpu.memory_space<vmem>>, vector<64x64xf32>,
    %c0_116 = arith.constant 0 : index
    %c2_117 = arith.constant 2 : index
    %c1_118 = arith.constant 1 : index
    %c0_119 = arith.constant 0 : index
    %78 = vector.load %arg13[%c0_116, %c2_117, %c1_118, %c0_119] : memref<1x10x10x64xf32, #tpu.memory_space<vmem>>, vector<1x8x8x64xf32>
    %79 = vector.shape_cast %78 : vector<1x8x8x64xf32> to vector<64x64xf32>
    %c0_120 = arith.constant 0 : index
    %c448 = arith.constant 448 : index
    %80 = vector.load %arg14[%c0_120, %c448] : memref<64x576xf32, #tpu.memory_space<vmem>>, vector<64x64xf32>
    tpu.vector_store %arg14[%c0_120, %c448], %79 {strides = array<i32>} : memref<64x576xf32, #tpu.memory_space<vmem>>, vector<64x64xf32>,
    %c0_121 = arith.constant 0 : index
    %c2_122 = arith.constant 2 : index
    %c2_123 = arith.constant 2 : index
    %c0_124 = arith.constant 0 : index
    %81 = vector.load %arg13[%c0_121, %c2_122, %c2_123, %c0_124] : memref<1x10x10x64xf32, #tpu.memory_space<vmem>>, vector<1x8x8x64xf32>
    %82 = vector.shape_cast %81 : vector<1x8x8x64xf32> to vector<64x64xf32>
    %c0_125 = arith.constant 0 : index
    %c512 = arith.constant 512 : index
    %83 = vector.load %arg14[%c0_125, %c512] : memref<64x576xf32, #tpu.memory_space<vmem>>, vector<64x64xf32>
    tpu.vector_store %arg14[%c0_125, %c512], %82 {strides = array<i32>} : memref<64x576xf32, #tpu.memory_space<vmem>>, vector<64x64xf32>,
    %c0_126 = arith.constant 0 : index
    %c0_127 = arith.constant 0 : index
    %84 = vector.load %arg14[%c0_126, %c0_127] : memref<64x576xf32, #tpu.memory_space<vmem>>, vector<64x576xf32>
    %85 = arith.truncf %84 : vector<64x576xf32> to vector<64x576xbf16>
    %c0_128 = arith.constant 0 : index
    %c0_129 = arith.constant 0 : index
    %86 = vector.load %arg4[%c0_128, %c0_129] : memref<576x128xbf16, #tpu.memory_space<vmem>>, vector<576x128xbf16>
    %cst_130 = arith.constant dense<0.000000e+00> : vector<64x128xf32>
    %87 = tpu.matmul %85, %86, %cst_130 {dimension_numbers = #tpu.dot_dimension_numbers<[1], [0], [0], [1], [0, 0, 1, 1], [], []>} : vector<64x576xbf16>, vector<576x128xbf16>, vector<64x128xf32> -> vector<64x128xf32>
    %c0_131 = arith.constant 0 : index
    %c0_132 = arith.constant 0 : index
    %88 = vector.load %arg5[%c0_131, %c0_132] : memref<1x128xf32, #tpu.memory_space<vmem>>, vector<1x128xf32>
    %89 = vector.broadcast %88 : vector<1x128xf32> to vector<64x128xf32>
    %90 = arith.addf %87, %89 : vector<64x128xf32>
    %cst_133 = arith.constant 0.000000e+00 : f32
    %91 = vector.broadcast %cst_133 : f32 to vector<64x128xf32>
    %92 = arith.maximumf %90, %91 : vector<64x128xf32>
    %93 = vector.shape_cast %92 : vector<64x128xf32> to vector<1x4x2x8x128xf32>
    %94 = vector.extract_strided_slice %93 {offsets = [0, 0, 0, 0, 0], sizes = [1, 4, 1, 8, 128], strides = [1, 1, 1, 1, 1]} : vector<1x4x2x8x128xf32> to vector<1x4x1x8x128xf32>
    %95 = vector.shape_cast %94 : vector<1x4x1x8x128xf32> to vector<1x4x8x128xf32>
    %96 = vector.extract_strided_slice %93 {offsets = [0, 0, 1, 0, 0], sizes = [1, 4, 1, 8, 128], strides = [1, 1, 1, 1, 1]} : vector<1x4x2x8x128xf32> to vector<1x4x1x8x128xf32>
    %97 = vector.shape_cast %96 : vector<1x4x1x8x128xf32> to vector<1x4x8x128xf32>
    %98 = arith.maximumf %95, %97 : vector<1x4x8x128xf32>
    %99 = vector.shape_cast %98 : vector<1x4x8x128xf32> to vector<32x128xf32>
    %c0_134 = arith.constant 0 : index
    %c0_135 = arith.constant 0 : index
    %100 = vector.load %arg15[%c0_134, %c0_135] : memref<32x128xf32, #tpu.memory_space<vmem>>, vector<32x128xf32>
    tpu.vector_store %arg15[%c0_134, %c0_135], %99 {strides = array<i32>} : memref<32x128xf32, #tpu.memory_space<vmem>>, vector<32x128xf32>,
    %c0_136 = arith.constant 0 : index
    %c0_137 = arith.constant 0 : index
    %101 = tpu.strided_load %arg15[%c0_136, %c0_137] {strides = array<i32: 2, 1>} : memref<32x128xf32, #tpu.memory_space<vmem>>, vector<16x128xf32>
    %c1_138 = arith.constant 1 : index
    %c0_139 = arith.constant 0 : index
    %102 = tpu.strided_load %arg15[%c1_138, %c0_139] {strides = array<i32: 2, 1>} : memref<32x128xf32, #tpu.memory_space<vmem>>, vector<16x128xf32>
    %103 = arith.maximumf %101, %102 : vector<16x128xf32>
    %104 = arith.truncf %103 : vector<16x128xf32> to vector<16x128xbf16>
    %c0_140 = arith.constant 0 : index
    %c0_141 = arith.constant 0 : index
    %105 = vector.load %arg6[%c0_140, %c0_141] : memref<128x256xbf16, #tpu.memory_space<vmem>>, vector<128x256xbf16>
    %cst_142 = arith.constant dense<0.000000e+00> : vector<16x256xf32>
    %106 = tpu.matmul %104, %105, %cst_142 {dimension_numbers = #tpu.dot_dimension_numbers<[1], [0], [0], [1], [0, 0, 1, 1], [], []>} : vector<16x128xbf16>, vector<128x256xbf16>, vector<16x256xf32> -> vector<16x256xf32>
    %c0_143 = arith.constant 0 : index
    %c0_144 = arith.constant 0 : index
    %107 = vector.load %arg7[%c0_143, %c0_144] : memref<1x256xf32, #tpu.memory_space<vmem>>, vector<1x256xf32>
    %108 = vector.broadcast %107 : vector<1x256xf32> to vector<16x256xf32>
    %109 = arith.addf %106, %108 : vector<16x256xf32>
    %cst_145 = arith.constant 0.000000e+00 : f32
    %110 = vector.broadcast %cst_145 : f32 to vector<16x256xf32>
    %111 = arith.maximumf %109, %110 : vector<16x256xf32>
    %112 = arith.truncf %111 : vector<16x256xf32> to vector<16x256xbf16>
    %c0_146 = arith.constant 0 : index
    %c0_147 = arith.constant 0 : index
    %113 = vector.load %arg8[%c0_146, %c0_147] : memref<256x48xbf16, #tpu.memory_space<vmem>>, vector<256x48xbf16>
    %cst_148 = arith.constant dense<0.000000e+00> : vector<16x48xf32>
    %114 = tpu.matmul %112, %113, %cst_148 {dimension_numbers = #tpu.dot_dimension_numbers<[1], [0], [0], [1], [0, 0, 1, 1], [], []>} : vector<16x256xbf16>, vector<256x48xbf16>, vector<16x48xf32> -> vector<16x48xf32>
    %c0_149 = arith.constant 0 : index
    %c0_150 = arith.constant 0 : index
    %115 = vector.load %arg9[%c0_149, %c0_150] : memref<1x48xf32, #tpu.memory_space<vmem>>, vector<1x48xf32>
    %116 = vector.broadcast %115 : vector<1x48xf32> to vector<16x48xf32>
    %117 = arith.addf %114, %116 : vector<16x48xf32>
    %cst_151 = arith.constant 0.000000e+00 : f32
    %118 = vector.broadcast %cst_151 : f32 to vector<16x48xf32>
    %119 = arith.subf %118, %117 : vector<16x48xf32>
    %120 = math.exp %119 : vector<16x48xf32>
    %cst_152 = arith.constant 1.000000e+00 : f32
    %121 = vector.broadcast %cst_152 : f32 to vector<16x48xf32>
    %122 = arith.addf %121, %120 : vector<16x48xf32>
    %123 = tpu.reciprocal %122 {approx = true} : vector<16x48xf32> -> vector<16x48xf32>
    %124 = vector.shape_cast %123 : vector<16x48xf32> to vector<1x16x48xf32>
    %c0_153 = arith.constant 0 : index
    %c0_154 = arith.constant 0 : index
    %c0_155 = arith.constant 0 : index
    %125 = vector.load %arg10[%c0_153, %c0_154, %c0_155] : memref<1x16x48xf32, #tpu.memory_space<vmem>>, vector<1x16x48xf32>
    tpu.vector_store %arg10[%c0_153, %c0_154, %c0_155], %124 {strides = array<i32>} : memref<1x16x48xf32, #tpu.memory_space<vmem>>, vector<1x16x48xf32>,
    return
  }
  func.func @transform_0(%arg0: i32) -> (i32, i32, i32, i32) {
    %c0_i32 = arith.constant 0 : i32
    %c0_i32_0 = arith.constant 0 : i32
    %c0_i32_1 = arith.constant 0 : i32
    %c0_i32_2 = arith.constant 0 : i32
    return %arg0, %c0_i32, %c0_i32_0, %c0_i32_1 : i32, i32, i32, i32
  }
  func.func @transform_1(%arg0: i32) -> (i32, i32) {
    %c0_i32 = arith.constant 0 : i32
    %c0_i32_0 = arith.constant 0 : i32
    %c0_i32_1 = arith.constant 0 : i32
    return %c0_i32, %c0_i32_0 : i32, i32
  }
  func.func @transform_2(%arg0: i32) -> (i32, i32) {
    %c0_i32 = arith.constant 0 : i32
    %c0_i32_0 = arith.constant 0 : i32
    %c0_i32_1 = arith.constant 0 : i32
    return %c0_i32, %c0_i32_0 : i32, i32
  }
  func.func @transform_3(%arg0: i32) -> (i32, i32) {
    %c0_i32 = arith.constant 0 : i32
    %c0_i32_0 = arith.constant 0 : i32
    %c0_i32_1 = arith.constant 0 : i32
    return %c0_i32, %c0_i32_0 : i32, i32
  }
  func.func @transform_4(%arg0: i32) -> (i32, i32) {
    %c0_i32 = arith.constant 0 : i32
    %c0_i32_0 = arith.constant 0 : i32
    %c0_i32_1 = arith.constant 0 : i32
    return %c0_i32, %c0_i32_0 : i32, i32
  }
  func.func @transform_5(%arg0: i32) -> (i32, i32) {
    %c0_i32 = arith.constant 0 : i32
    %c0_i32_0 = arith.constant 0 : i32
    %c0_i32_1 = arith.constant 0 : i32
    return %c0_i32, %c0_i32_0 : i32, i32
  }
  func.func @transform_6(%arg0: i32) -> (i32, i32) {
    %c0_i32 = arith.constant 0 : i32
    %c0_i32_0 = arith.constant 0 : i32
    %c0_i32_1 = arith.constant 0 : i32
    return %c0_i32, %c0_i32_0 : i32, i32
  }
  func.func @transform_7(%arg0: i32) -> (i32, i32) {
    %c0_i32 = arith.constant 0 : i32
    %c0_i32_0 = arith.constant 0 : i32
    %c0_i32_1 = arith.constant 0 : i32
    return %c0_i32, %c0_i32_0 : i32, i32
  }
  func.func @transform_8(%arg0: i32) -> (i32, i32) {
    %c0_i32 = arith.constant 0 : i32
    %c0_i32_0 = arith.constant 0 : i32
    %c0_i32_1 = arith.constant 0 : i32
    return %c0_i32, %c0_i32_0 : i32, i32
  }
  func.func @transform_9(%arg0: i32) -> (i32, i32, i32) {
    %c0_i32 = arith.constant 0 : i32
    %c0_i32_0 = arith.constant 0 : i32
    %c0_i32_1 = arith.constant 0 : i32
    return %arg0, %c0_i32, %c0_i32_0 : i32, i32, i32
  }
}

</mosaic_0001>

<bundles_post_ra>
// kernel: tile.13
= control target key start
LH: loop header
LB: loop body
LE: loop exit
PB: predicated region body
PF: predicated region fallthrough
CT: control target
= control target key end

     0   :  { %s22_s0 = inlined_call_operand.vmem [shape: f32[64], index: 0, kind: input, shape index: {}]   ;;  %s23_s1 = inlined_call_operand.vmem [shape: f32[4,64], index: 1, kind: output, shape index: {}]  }
   0x1   :  { %v4_v0 = vld [vmem:[%s22_s0] ss:$0 sm:$0xff] }
   0x2   :  { %5 = vst [vmem:[%s23_s1] sm:$0xf] %v4_v0 }

// kernel: tile.14
= control target key start
LH: loop header
LB: loop body
LE: loop exit
PB: predicated region body
PF: predicated region fallthrough
CT: control target
= control target key end

     0   :  { %s6_s8 = smov 3  ;;  %vm8_vm0 = vcmask 523264   ;;  %s30_s9 = smov 64   ;;  %vm15_vm1 = vcmask 1048064   ;;  %s50_s0 = inlined_call_operand.vmem [shape: f32[4,64], index: 0, kind: input, shape index: {}]   ;;  %s51_s1 = inlined_call_operand.vmem [shape: f32[1,256], index: 1, kind: output, shape index: {}]  }
   0x1   :  { %v4_v0 = vld [vmem:[%s50_s0] sm:$0xf]  ;;  %s11_s0 = smov 3 }
   0x2   :  { %5 = vst [vmem:[#allocation1] sm:$0xf] %v4_v0 }
   0x9   :  { %v12_v1 = vld [vmem:[#allocation1 + $0x1] ss:$2 sm:%s11_s0]   ;;  %v7_v2 = vld [vmem:[#allocation1] ss:$2 sm:%s6_s8]  }
   0xa   :  { %13 = vrot.lane.b32.xlu0 %v12_v1, %s30_s9  ;;  %9 = vst.msk [vmem:[#allocation0] ss:$8 sm:$0x3] %vm8_vm0, %v7_v2  }
  0x7c   :  { %v14_v3 = vpop.permute.xlu0 %13  }
  0x7d   :  { %16 = vst.msk [vmem:[#allocation0] ss:$8 sm:$0x3] %vm15_vm1, %v14_v3  }
  0x84   :  { %v20_v4 = vld [vmem:[#allocation0] sm:$0x1]  ;;  %v24_v5 = vld [vmem:[#allocation0 + $0x8] sm:$0x1] }
  0x85   :  { %22 = vst [vmem:[%s51_s1] sm:$0x1] %v20_v4  ;;  %28 = vst [vmem:[%s51_s1 + $0x1] sm:$0x1] %v24_v5 }

// kernel: mul.4
= control target key start
LH: loop header
LB: loop body
LE: loop exit
PB: predicated region body
PF: predicated region fallthrough
CT: control target
= control target key end

     0   :  { %vm21_vm0 = vcmask 523264   ;;  %s80_s0 = inlined_call_operand.vmem [shape: f32[64,2,2,3], index: 0, kind: input, shape index: {}]   ;;  %s81_s1 = inlined_call_operand.vmem [shape: f32[64,12], index: 1, kind: output, shape index: {}]  }
   0x1   :  { %v40_v0 = vld [vmem:[%s80_s0 + $0xc] sm:$0xf]  ;;  %v41_v1 = vld [vmem:[%s80_s0 + $0x8] sm:$0xf]  ;;  %v42_v2 = vld [vmem:[%s80_s0 + $0x4] sm:$0xf] }
   0x2   :  { %8 = vst [vmem:[#allocation0 + $0x18] sm:$0xf] %v40_v0  ;;  %13 = vst [vmem:[#allocation0 + $0x10] sm:$0xf] %v41_v1  ;;  %v18_v3 = vld [vmem:[%s80_s0] sm:$0xf] }
   0x3   :  { %17 = vst [vmem:[#allocation0 + $0x8] sm:$0xf] %v42_v2  ;;  %19 = vst [vmem:[#allocation0] sm:$0xf] %v18_v3 }
   0x9   :  { %v29_v5 = vld [vmem:[#allocation0 + $0x10] sm:$0x7]   ;;  %v34_v6 = vld [vmem:[#allocation0 + $0x18] sm:$0x7]  }
   0xa   :  { %v24_v4 = vld [vmem:[#allocation0 + $0x8] sm:$0x7]   ;;  %v20_v7 = vld [vmem:[#allocation0] sm:$0x7]   ;;  %44 = vst.msk [vmem:[%s81_s1 + $0x6] sm:$0x7] %vm21_vm0, %v29_v5  }
   0xb   :  { %43 = vst.msk [vmem:[%s81_s1 + $0x3] sm:$0x7] %vm21_vm0, %v24_v4   ;;  %45 = vst.msk [vmem:[%s81_s1 + $0x9] sm:$0x7] %vm21_vm0, %v34_v6  }
   0xc   :  { %22 = vst.msk [vmem:[%s81_s1] sm:$0x7] %vm21_vm0, %v20_v7  }

// kernel: tile.18
= control target key start
LH: loop header
LB: loop body
LE: loop exit
PB: predicated region body
PF: predicated region fallthrough
CT: control target
= control target key end

     0   :  { %s28_s0 = inlined_call_operand.vmem [shape: f32[3], index: 0, kind: input, shape index: {}]   ;;  %s29_s1 = inlined_call_operand.vmem [shape: f32[16,3], index: 1, kind: output, shape index: {}]  }
   0x1   :  { %v4_v0 = vld [vmem:[%s28_s0] ss:$0 sm:$0xff] }
   0x2   :  { %5 = vst [vmem:[%s29_s1] sm:$0xff] %v4_v0  ;;  %8 = vst [vmem:[%s29_s1 + $0x8] sm:$0xff] %v4_v0 }

// kernel: tile.19
= control target key start
LH: loop header
LB: loop body
LE: loop exit
PB: predicated region body
PF: predicated region fallthrough
CT: control target
= control target key end

     0   :  { %s131_s10 = smov 45   ;;  %s132_s11 = smov 39   ;;  %vm3_vm0 = vcmask 23552   ;;  %vm9_vm1 = vcmask 392552   ;;  %vm15_vm2 = vcmask 367952   ;;  %vm21_vm3 = vcmask 343352   ;;  %s207_s0 = inlined_call_operand.vmem [shape: f32[16,3], index: 0, kind: input, shape index: {}]   ;;  %s208_s1 = inlined_call_operand.vmem [shape: f32[1,48], index: 1, kind: output, shape index: {}]  }
   0x1   :  { %v101_v0 = vld [vmem:[%s207_s0 + $0xf] sm:$0x1]   ;;  %v103_v1 = vld [vmem:[%s207_s0 + $0xd] sm:$0x1]   ;;  %v102_v2 = vld [vmem:[%s207_s0 + $0xe] sm:$0x1]  }
   0x2   :  { %7 = vrot.lane.b32.xlu0 %v101_v0, %s131_s10  ;;  %19 = vrot.lane.b32.xlu1 %v103_v1, %s132_s11  ;;  %v104_v3 = vld [vmem:[%s207_s0 + $0xc] sm:$0x1]   ;;  %s133_s16 = smov 42   ;;  %s134_s17 = smov 36   ;;  %v105_v4 = vld [vmem:[%s207_s0 + $0xb] sm:$0x1]  }
   0x3   :  { %v106_v5 = vld [vmem:[%s207_s0 + $0xa] sm:$0x1]   ;;  %v2_v6 = vld [vmem:[%s207_s0] sm:$0x1]   ;;  %s135_s24 = smov 33   ;;  %s136_s25 = smov 30  }
   0x4   :  { %4 = vst.msk [vmem:[#allocation0] sm:$0x1] %vm3_vm0, %v2_v6   ;;  %v107_v7 = vld [vmem:[%s207_s0 + $0x9] sm:$0x1]   ;;  %v108_v8 = vld [vmem:[%s207_s0 + $0x8] sm:$0x1]  }
   0x5   :  { %s137_s30 = smov 27   ;;  %s138_s2 = smov 24   ;;  %v109_v9 = vld [vmem:[%s207_s0 + $0x7] sm:$0x1]   ;;  %v110_v10 = vld [vmem:[%s207_s0 + $0x6] sm:$0x1]  }
   0x6   :  { %13 = vrot.lane.b32.xlu0 %v102_v2, %s133_s16  ;;  %25 = vrot.lane.b32.xlu1 %v104_v3, %s134_s17  ;;  %s139_s7 = smov 21   ;;  %s140_s8 = smov 18   ;;  %v111_v11 = vld [vmem:[%s207_s0 + $0x5] sm:$0x1]   ;;  %v112_v12 = vld [vmem:[%s207_s0 + $0x4] sm:$0x1]  }
   0x7   :  { %s141_s13 = smov 15   ;;  %s142_s14 = smov 12   ;;  %v113_v13 = vld [vmem:[%s207_s0 + $0x3] sm:$0x1]   ;;  %v114_v14 = vld [vmem:[%s207_s0 + $0x2] sm:$0x1]  }
   0x8   :  { %s143_s19 = smov 9   ;;  %s144_s20 = smov 6   ;;  %v115_v15 = vld [vmem:[%s207_s0 + $0x1] sm:$0x1]   ;;  %vm27_vm4 = vcmask 318752   ;;  %vm33_vm5 = vcmask 294152  }
   0x9   :  { %s145_s0 = smov 3   ;;  %vm39_vm6 = vcmask 269552   ;;  %vm45_vm7 = vcmask 244952   ;;  %vm51_vm8 = vcmask 220352   ;;  %vm57_vm9 = vcmask 195752  }
   0xa   :  { %31 = vrot.lane.b32.xlu0 %v105_v4, %s135_s24  ;;  %37 = vrot.lane.b32.xlu1 %v106_v5, %s136_s25  ;;  %vm63_vm10 = vcmask 171152   ;;  %vm69_vm11 = vcmask 146552   ;;  %vm75_vm12 = vcmask 121952   ;;  %vm81_vm13 = vcmask 97352  }
   0xb   :  { %vm87_vm14 = vcmask 72752   ;;  %vm93_vm15 = vcmask 48152  }
   0xe   :  { %43 = vrot.lane.b32.xlu0 %v107_v7, %s137_s30  ;;  %49 = vrot.lane.b32.xlu1 %v108_v8, %s138_s2 }
  0x12   :  { %55 = vrot.lane.b32.xlu0 %v109_v9, %s139_s7  ;;  %61 = vrot.lane.b32.xlu1 %v110_v10, %s140_s8 }
  0x16   :  { %67 = vrot.lane.b32.xlu0 %v111_v11, %s141_s13  ;;  %73 = vrot.lane.b32.xlu1 %v112_v12, %s142_s14 }
  0x1a   :  { %79 = vrot.lane.b32.xlu0 %v113_v13, %s143_s19  ;;  %85 = vrot.lane.b32.xlu1 %v114_v14, %s144_s20 }
  0x1e   :  { %91 = vrot.lane.b32.xlu0 %v115_v15, %s145_s0 }
  0x74   :  { %v8_v16 = vpop.permute.xlu0 %7   ;;  %v20_v17 = vpop.permute.xlu1 %19  }
  0x75   :  { %10 = vst.msk [vmem:[#allocation0] sm:$0x1] %vm9_vm1, %v8_v16  }
  0x78   :  { %v14_v18 = vpop.permute.xlu0 %13   ;;  %v26_v19 = vpop.permute.xlu1 %25  }
  0x79   :  { %16 = vst.msk [vmem:[#allocation0] sm:$0x1] %vm15_vm2, %v14_v18  }
  0x7a   :  { %22 = vst.msk [vmem:[#allocation0] sm:$0x1] %vm21_vm3, %v20_v17  }
  0x7b   :  { %28 = vst.msk [vmem:[#allocation0] sm:$0x1] %vm27_vm4, %v26_v19  }
  0x7c   :  { %v32_v20 = vpop.permute.xlu0 %31   ;;  %v38_v21 = vpop.permute.xlu1 %37  }
  0x7d   :  { %34 = vst.msk [vmem:[#allocation0] sm:$0x1] %vm33_vm5, %v32_v20  }
  0x7e   :  { %40 = vst.msk [vmem:[#allocation0] sm:$0x1] %vm39_vm6, %v38_v21  }
  0x80   :  { %v44_v22 = vpop.permute.xlu0 %43   ;;  %v50_v23 = vpop.permute.xlu1 %49  }
  0x81   :  { %46 = vst.msk [vmem:[#allocation0] sm:$0x1] %vm45_vm7, %v44_v22  }
  0x82   :  { %52 = vst.msk [vmem:[#allocation0] sm:$0x1] %vm51_vm8, %v50_v23  }
  0x84   :  { %v56_v24 = vpop.permute.xlu0 %55   ;;  %v62_v25 = vpop.permute.xlu1 %61  }
  0x85   :  { %58 = vst.msk [vmem:[#allocation0] sm:$0x1] %vm57_vm9, %v56_v24  }
  0x86   :  { %64 = vst.msk [vmem:[#allocation0] sm:$0x1] %vm63_vm10, %v62_v25  }
  0x88   :  { %v68_v26 = vpop.permute.xlu0 %67   ;;  %v74_v27 = vpop.permute.xlu1 %73  }
  0x89   :  { %70 = vst.msk [vmem:[#allocation0] sm:$0x1] %vm69_vm11, %v68_v26  }
  0x8a   :  { %76 = vst.msk [vmem:[#allocation0] sm:$0x1] %vm75_vm12, %v74_v27  }
  0x8c   :  { %v80_v28 = vpop.permute.xlu0 %79   ;;  %v86_v29 = vpop.permute.xlu1 %85  }
  0x8d   :  { %82 = vst.msk [vmem:[#allocation0] sm:$0x1] %vm81_vm13, %v80_v28  }
  0x8e   :  { %88 = vst.msk [vmem:[#allocation0] sm:$0x1] %vm87_vm14, %v86_v29  }
  0x90   :  { %v92_v30 = vpop.permute.xlu0 %91  }
  0x91   :  { %94 = vst.msk [vmem:[#allocation0] sm:$0x1] %vm93_vm15, %v92_v30  }
  0x98   :  { %v98_v31 = vld [vmem:[#allocation0] sm:$0x1] }
  0x99   :  { %100 = vst [vmem:[%s208_s1] sm:$0x1] %v98_v31 }

// kernel: vae_forward.1
= control target key start
LH: loop header
LB: loop body
LE: loop exit
PB: predicated region body
PF: predicated region fallthrough
CT: control target
= control target key end

     0   :  { %s4289_s30 = smov 0   ;;  %s5871_s0 = inlined_call_operand.vmem [shape: f32[2,18,18,3], index: 0, kind: input, shape index: {}]   ;;  %s5872_s1 = inlined_call_operand.vmem [shape: bf16[27,64], index: 1, kind: input, shape index: {}]   ;;  %s5873_s2 = inlined_call_operand.vmem [shape: f32[1,64], index: 2, kind: input, shape index: {}]   ;;  %s5874_s3 = inlined_call_operand.vmem [shape: bf16[576,128], index: 3, kind: input, shape index: {}]   ;;  %s5875_s4 = inlined_call_operand.vmem [shape: f32[1,128], index: 4, kind: input, shape index: {}]   ;;  %s5876_s5 = inlined_call_operand.vmem [shape: bf16[128,256], index: 5, kind: input, shape index: {}]   ;;  %s5877_s6 = inlined_call_operand.vmem [shape: f32[1,256], index: 6, kind: input, shape index: {}]   ;;  %s5878_s7 = inlined_call_operand.vmem [shape: bf16[256,48], index: 7, kind: input, shape index: {}]   ;;  %s5879_s8 = inlined_call_operand.vmem [shape: f32[1,48], index: 8, kind: input, shape index: {}]   ;;  %s5880_s9 = inlined_call_operand.vmem [shape: f32[2,16,48], index: 9, kind: output, shape index: {}]  }
   0x1 LB: > { %s3635_s10 = sadd.s32 4294967295, %s4225_s30   ;;  %p3639_p0 = scmp.ge.s32.totalorder %s4225_s30, 1  ;;  %s4225_s30 = sphi %s4289_s30, %s19_s30  }
   0x2   : > { %p287_p1 = scmp.lt.s32.totalorder %s4225_s30, 3 }
   0x4   : > { %p288_p2 = pnand %p3639_p0, %p287_p1 }
   0x5   : > { %p323_p3 = scmp.lt.s32.totalorder (!%p288_p2), %s3635_s10, 1  ;;  %s4227_s15 = smov (!%p288_p2), 3   ;;  %vm366_vm0 = vcmask (!%p288_p2), 23552   ;;  %v4132_v30 = vld [vmem:[%s5872_s1] sm:$0xff] (!%p288_p2)   ;;  %vm2064_vm1 = vcmask (!%p288_p2), 1044480   ;;  %vm2065_vm2 = vcmask (!%p288_p2), 1045504  }
   0x6   : > { %291 = sbr.rel (%p288_p2) target bundleno = 1760 (0x6e0), region = 56  ;;  %s4228_s16 = smov (!%p288_p2), 6   ;;  %4059 = vmatprep.subr.bf16.mxu0 (!%p288_p2), %v4132_v30  ;;  %v4133_v31 = vld [vmem:[%s5872_s1 + $0x8] sm:$0x3f] (!%p288_p2)   ;;  %v4234_v32 = vmov (!%p288_p2), 65535   ;;  %vm559_vm3 = vcmask (!%p288_p2), 48152  }
   0x7   : > { %s4229_s17 = smov (!%p288_p2), 9   ;;  %s4230_s18 = smov (!%p288_p2), 12   ;;  %v2066_v33 = vsel (!%p288_p2), %vm2064_vm1, 4294967295, %v4234_v32  ;;  %4060 = vmatpush3.bf16.msra.mxu0 (!%p288_p2), %v4132_v30  ;;  %vm752_vm4 = vcmask (!%p288_p2), 72752   ;;  %vm946_vm5 = vcmask (!%p288_p2), 97352   ;;  %vm1139_vm6 = vcmask (!%p288_p2), 121952  }
   0x8   : > { %s4231_s19 = smov (!%p288_p2), 15   ;;  %s4232_s20 = smov (!%p288_p2), 18   ;;  %v2067_v34 = vsel (!%p288_p2), %vm2065_vm2, %v2066_v33, 0  ;;  %vm1332_vm7 = vcmask (!%p288_p2), 146552   ;;  %vm1526_vm8 = vcmask (!%p288_p2), 171152   ;;  %vm1719_vm9 = vcmask (!%p288_p2), 195752  }
   0x9   : > { %s4233_s21 = smov (!%p288_p2), 21   ;;  %v2069_v35 = vand.u32 (!%p288_p2), %v4133_v31, %v2067_v34  ;;  %s4235_s26 = smov (!%p288_p2), 24   ;;  %vm1912_vm10 = vcmask (!%p288_p2), 220352   ;;  %vm2015_vm11 = vcmask (!%p288_p2), 220160   ;;  %vm2280_vm12 = vcmask (!%p288_p2), 523264  }
   0xa   : > { %vm2342_vm13 = vcmask (!%p288_p2), 516096   ;;  %vm2337_vm14 = vcmask (!%p288_p2), 517120   ;;  %s4237_s28 = smov (!%p288_p2), 64   ;;  %vm2428_vm15 = vcmask (!%p288_p2), 1048064  }
   0xb   : > { %4061 = vmatprep.subr.bf16.mxu0 (!%p288_p2), %v2069_v35 }
   0xc   : > { %4062 = vmatpush3.bf16.msra.mxu0 (!%p288_p2), %v2069_v35 }
   0xd   : > { %s5882_s10 = smov (!%p323_p3, %s3635_s10), 1 }
   0xe   : > { %s4111_s11 = smul.u32 432, %s5882_s10 }
  0x10   : > { %s4303_s14 = scalar_lea.vmem %s5871_s0, %s4111_s11 }
  0x11   : > { %v401_v0 = vld [vmem:[%s4303_s14 + $0x19] sm:$0xff]  ;;  %v399_v1 = vld [vmem:[%s4303_s14 + $0x1] sm:$0xff]  ;;  %v400_v3 = vld [vmem:[%s4303_s14 + $0x9] sm:$0xff] }
  0x12   : > { %467 = vrot.lane.b32.xlu1 %v401_v0, %s4227_s15  ;;  %463 = vrot.lane.b32.xlu0 %v399_v1, %s4227_s15  ;;  %v402_v2 = vld [vmem:[%s4303_s14 + $0x21] sm:$0xff]  ;;  %v3643_v5 = vld [vmem:[%s4303_s14 + $0x18] sm:$0xff] }
  0x13   : > { %v3644_v4 = vld [vmem:[%s4303_s14 + $0x20] sm:$0xff]  ;;  %v3646_v6 = vld [vmem:[%s4303_s14 + $0x38] sm:$0xff]  ;;  %v3645_v7 = vld [vmem:[%s4303_s14 + $0x30] sm:$0xff]  ;;  %369 = vst.msk [vmem:[#allocation2 + $0x10] sm:$0xff] %vm366_vm0, %v3643_v5 }
  0x14   : > { %370 = vst.msk [vmem:[#allocation2 + $0x18] sm:$0xff] %vm366_vm0, %v3644_v4  ;;  %372 = vst.msk [vmem:[#allocation2 + $0x28] sm:$0xff] %vm366_vm0, %v3646_v6  ;;  %v593_v8 = vld [vmem:[%s4303_s14 + $0xa] sm:$0xff]  ;;  %v592_v9 = vld [vmem:[%s4303_s14 + $0x2] sm:$0xff] }
  0x15   : > { %371 = vst.msk [vmem:[#allocation2 + $0x20] sm:$0xff] %vm366_vm0, %v3645_v7  ;;  %v4324_v10 = vld [vmem:[%s4303_s14 + $0x50] sm:$0xff]  ;;  %v4327_v11 = vld [vmem:[%s4303_s14 + $0x48] sm:$0xff]  ;;  %v4337_v13 = vld [vmem:[%s4303_s14 + $0x60] sm:$0xff] }
  0x16   : > { %469 = vrot.lane.b32.xlu1 %v402_v2, %s4227_s15  ;;  %465 = vrot.lane.b32.xlu0 %v400_v3, %s4227_s15  ;;  %374 = vst.msk [vmem:[#allocation2 + $0x38] sm:$0xff] %vm366_vm0, %v4324_v10  ;;  %373 = vst.msk [vmem:[#allocation2 + $0x30] sm:$0xff] %vm366_vm0, %v4327_v11  ;;  %v4334_v12 = vld [vmem:[%s4303_s14 + $0x68] sm:$0xff]  ;;  %v594_v15 = vld [vmem:[%s4303_s14 + $0x1a] sm:$0xff] }
  0x17   : > { %v595_v14 = vld [vmem:[%s4303_s14 + $0x22] sm:$0xff]  ;;  %376 = vst.msk [vmem:[#allocation2 + $0x48] sm:$0xff] %vm366_vm0, %v4334_v12  ;;  %375 = vst.msk [vmem:[#allocation2 + $0x40] sm:$0xff] %vm366_vm0, %v4337_v13  ;;  %v4351_v17 = vld [vmem:[%s4303_s14 + $0x78] sm:$0xff] }
  0x18   : > { %v4348_v16 = vld [vmem:[%s4303_s14 + $0x80] sm:$0xff]  ;;  %377 = vst.msk [vmem:[#allocation2 + $0x50] sm:$0xff] %vm366_vm0, %v4351_v17  ;;  %v335_v19 = vld [vmem:[%s4303_s14 + $0x8] sm:$0xff]  ;;  %v4366_v20 = vld [vmem:[%s4303_s14 + $0x98] sm:$0xff] }
  0x19   : > { %v334_v18 = vld [vmem:[%s4303_s14] sm:$0xff]  ;;  %378 = vst.msk [vmem:[#allocation2 + $0x58] sm:$0xff] %vm366_vm0, %v4348_v16  ;;  %368 = vst.msk [vmem:[#allocation2 + $0x8] sm:$0xff] %vm366_vm0, %v335_v19  ;;  %v4369_v21 = vld [vmem:[%s4303_s14 + $0x90] sm:$0xff] }
  0x1a   : > { %658 = vrot.lane.b32.xlu1 %v593_v8, %s4228_s16  ;;  %656 = vrot.lane.b32.xlu0 %v592_v9, %s4228_s16  ;;  %367 = vst.msk [vmem:[#allocation2] sm:$0xff] %vm366_vm0, %v334_v18  ;;  %380 = vst.msk [vmem:[#allocation2 + $0x68] sm:$0xff] %vm366_vm0, %v4366_v20  ;;  %v3678_v22 = vld [vmem:[%s4303_s14 + $0x39] sm:$0xff]  ;;  %v3677_v23 = vld [vmem:[%s4303_s14 + $0x31] sm:$0xff] }
  0x1b   : > { %379 = vst.msk [vmem:[#allocation2 + $0x60] sm:$0xff] %vm366_vm0, %v4369_v21  ;;  %v3710_v24 = vld [vmem:[%s4303_s14 + $0x3a] sm:$0xff]  ;;  %v3709_v25 = vld [vmem:[%s4303_s14 + $0x32] sm:$0xff]  ;;  %v4395_v27 = vld [vmem:[%s4303_s14 + $0xa8] sm:$0xff] }
  0x1c   : > { %v4392_v26 = vld [vmem:[%s4303_s14 + $0xb0] sm:$0xff]  ;;  %381 = vst.msk [vmem:[#allocation2 + $0x70] sm:$0xff] %vm366_vm0, %v4395_v27  ;;  %v4436_v38 = vld [vmem:[%s4303_s14 + $0xc8] sm:$0xff]  ;;  %v4439_v39 = vld [vmem:[%s4303_s14 + $0xc0] sm:$0xff] }
  0x1d   : > { %382 = vst.msk [vmem:[#allocation2 + $0x78] sm:$0xff] %vm366_vm0, %v4392_v26  ;;  %v3774_v28 = vld [vmem:[%s4303_s14 + $0x51] sm:$0xff]  ;;  %v3773_v29 = vld [vmem:[%s4303_s14 + $0x49] sm:$0xff]  ;;  %384 = vst.msk [vmem:[#allocation2 + $0x88] sm:$0xff] %vm366_vm0, %v4436_v38 }
  0x1e   : > { %662 = vrot.lane.b32.xlu1 %v595_v14, %s4228_s16  ;;  %660 = vrot.lane.b32.xlu0 %v594_v15, %s4228_s16  ;;  %v3806_v36 = vld [vmem:[%s4303_s14 + $0x52] sm:$0xff]  ;;  %v3805_v37 = vld [vmem:[%s4303_s14 + $0x4a] sm:$0xff]  ;;  %383 = vst.msk [vmem:[#allocation2 + $0x80] sm:$0xff] %vm366_vm0, %v4439_v39 }
  0x1f   : > { %v3682_v40 = vld [vmem:[%s4303_s14 + $0x69] sm:$0xff]  ;;  %v3681_v41 = vld [vmem:[%s4303_s14 + $0x61] sm:$0xff]  ;;  %v4469_v45 = vld [vmem:[%s4303_s14 + $0xd8] sm:$0xff] }
  0x20   : > { %v3714_v42 = vld [vmem:[%s4303_s14 + $0x6a] sm:$0xff]  ;;  %v3713_v43 = vld [vmem:[%s4303_s14 + $0x62] sm:$0xff]  ;;  %385 = vst.msk [vmem:[#allocation2 + $0x90] sm:$0xff] %vm366_vm0, %v4469_v45  ;;  %v4485_v47 = vld [vmem:[%s4303_s14 + $0x79] sm:$0xff] }
  0x21   : > { %v4466_v44 = vld [vmem:[%s4303_s14 + $0xe0] sm:$0xff]  ;;  %v4561_v9 = vld [vmem:[%s4303_s14 + $0x91] sm:$0xff] }
  0x22   : > { %852 = vrot.lane.b32.xlu1 %v3644_v4, %s4229_s17  ;;  %850 = vrot.lane.b32.xlu0 %v3643_v5, %s4229_s17  ;;  %386 = vst.msk [vmem:[#allocation2 + $0x98] sm:$0xff] %vm366_vm0, %v4466_v44  ;;  %v4482_v46 = vld [vmem:[%s4303_s14 + $0x81] sm:$0xff]  ;;  %v4538_v4 = vld [vmem:[%s4303_s14 + $0xf8] sm:$0xff] }
  0x23   : > { %v4502_v54 = vld [vmem:[%s4303_s14 + $0x82] sm:$0xff]  ;;  %v4505_v55 = vld [vmem:[%s4303_s14 + $0x7a] sm:$0xff]  ;;  %v4541_v5 = vld [vmem:[%s4303_s14 + $0xf0] sm:$0xff]  ;;  %388 = vst.msk [vmem:[#allocation2 + $0xa8] sm:$0xff] %vm366_vm0, %v4538_v4 }
  0x24   : > { %387 = vst.msk [vmem:[#allocation2 + $0xa0] sm:$0xff] %vm366_vm0, %v4541_v5  ;;  %v4558_v8 = vld [vmem:[%s4303_s14 + $0x99] sm:$0xff] }
  0x26   : > { %856 = vrot.lane.b32.xlu1 %v3646_v6, %s4229_s17  ;;  %854 = vrot.lane.b32.xlu0 %v3645_v7, %s4229_s17 }
  0x2a   : > { %1045 = vrot.lane.b32.xlu1 %v402_v2, %s4230_s18  ;;  %1043 = vrot.lane.b32.xlu0 %v401_v0, %s4230_s18 }
  0x2e   : > { %1049 = vrot.lane.b32.xlu1 %v3678_v22, %s4230_s18  ;;  %1047 = vrot.lane.b32.xlu0 %v3677_v23, %s4230_s18 }
  0x32   : > { %1238 = vrot.lane.b32.xlu1 %v595_v14, %s4231_s19  ;;  %1236 = vrot.lane.b32.xlu0 %v594_v15, %s4231_s19  ;;  %v4576_v14 = vld [vmem:[%s4303_s14 + $0x9a] sm:$0xff]  ;;  %v4579_v15 = vld [vmem:[%s4303_s14 + $0x92] sm:$0xff] }
  0x36   : > { %1242 = vrot.lane.b32.xlu1 %v3710_v24, %s4231_s19  ;;  %1240 = vrot.lane.b32.xlu0 %v3709_v25, %s4231_s19 }
  0x3a   : > { %1432 = vrot.lane.b32.xlu1 %v3646_v6, %s4232_s20  ;;  %1430 = vrot.lane.b32.xlu0 %v3645_v7, %s4232_s20 }
  0x3e   : > { %1436 = vrot.lane.b32.xlu1 %v4324_v10, %s4232_s20  ;;  %1434 = vrot.lane.b32.xlu0 %v4327_v11, %s4232_s20 }
  0x42   : > { %1625 = vrot.lane.b32.xlu1 %v3678_v22, %s4233_s21  ;;  %1623 = vrot.lane.b32.xlu0 %v3677_v23, %s4233_s21 }
  0x46   : > { %1629 = vrot.lane.b32.xlu1 %v3774_v28, %s4233_s21  ;;  %1627 = vrot.lane.b32.xlu0 %v3773_v29, %s4233_s21 }
  0x4a   : > { %1818 = vrot.lane.b32.xlu1 %v3710_v24, %s4235_s26  ;;  %1816 = vrot.lane.b32.xlu0 %v3709_v25, %s4235_s26 }
  0x4e   : > { %473 = vrot.lane.b32.xlu1 %v3678_v22, %s4227_s15  ;;  %471 = vrot.lane.b32.xlu0 %v3677_v23, %s4227_s15 }
  0x52   : > { %1822 = vrot.lane.b32.xlu1 %v3806_v36, %s4235_s26  ;;  %1820 = vrot.lane.b32.xlu0 %v3805_v37, %s4235_s26 }
  0x56   : > { %477 = vrot.lane.b32.xlu1 %v3774_v28, %s4227_s15  ;;  %475 = vrot.lane.b32.xlu0 %v3773_v29, %s4227_s15 }
  0x5a   : > { %666 = vrot.lane.b32.xlu1 %v3710_v24, %s4228_s16  ;;  %664 = vrot.lane.b32.xlu0 %v3709_v25, %s4228_s16  ;;  %v4596_v24 = vld [vmem:[%s4303_s14 + $0x110] sm:$0xff]  ;;  %v4599_v25 = vld [vmem:[%s4303_s14 + $0x108] sm:$0xff] }
  0x5b   : > { %390 = vst.msk [vmem:[#allocation2 + $0xb8] sm:$0xff] %vm366_vm0, %v4596_v24  ;;  %389 = vst.msk [vmem:[#allocation2 + $0xb0] sm:$0xff] %vm366_vm0, %v4599_v25 }
  0x5e   : > { %670 = vrot.lane.b32.xlu1 %v3806_v36, %s4228_s16  ;;  %668 = vrot.lane.b32.xlu0 %v3805_v37, %s4228_s16 }
  0x62   : > { %860 = vrot.lane.b32.xlu1 %v4324_v10, %s4229_s17  ;;  %858 = vrot.lane.b32.xlu0 %v4327_v11, %s4229_s17 }
  0x66   : > { %864 = vrot.lane.b32.xlu1 %v4334_v12, %s4229_s17  ;;  %862 = vrot.lane.b32.xlu0 %v4337_v13, %s4229_s17 }
  0x6a   : > { %1053 = vrot.lane.b32.xlu1 %v3774_v28, %s4230_s18  ;;  %1051 = vrot.lane.b32.xlu0 %v3773_v29, %s4230_s18  ;;  %v4616_v28 = vld [vmem:[%s4303_s14 + $0xb1] sm:$0xff]  ;;  %v4619_v29 = vld [vmem:[%s4303_s14 + $0xa9] sm:$0xff] }
  0x6e   : > { %1057 = vrot.lane.b32.xlu1 %v3682_v40, %s4230_s18  ;;  %1055 = vrot.lane.b32.xlu0 %v3681_v41, %s4230_s18 }
  0x72   : > { %1246 = vrot.lane.b32.xlu1 %v3806_v36, %s4231_s19  ;;  %1244 = vrot.lane.b32.xlu0 %v3805_v37, %s4231_s19 }
  0x76   : > { %1250 = vrot.lane.b32.xlu1 %v3714_v42, %s4231_s19  ;;  %1248 = vrot.lane.b32.xlu0 %v3713_v43, %s4231_s19 }
  0x7a   : > { %1440 = vrot.lane.b32.xlu1 %v4334_v12, %s4232_s20  ;;  %1438 = vrot.lane.b32.xlu0 %v4337_v13, %s4232_s20 }
  0x7e   : > { %1444 = vrot.lane.b32.xlu1 %v4348_v16, %s4232_s20  ;;  %1442 = vrot.lane.b32.xlu0 %v4351_v17, %s4232_s20 }
  0x82   : > { %1633 = vrot.lane.b32.xlu1 %v3682_v40, %s4233_s21  ;;  %1631 = vrot.lane.b32.xlu0 %v3681_v41, %s4233_s21 }
  0x84   : > { %v468_v48 = vpop.permute.xlu1 %467  ;;  %v464_v49 = vpop.permute.xlu0 %463 }
  0x85   : > { %562 = vst.msk [vmem:[#allocation2 + $0x10] sm:$0xff] %vm559_vm3, %v468_v48  ;;  %560 = vst.msk [vmem:[#allocation2] sm:$0xff] %vm559_vm3, %v464_v49 }
  0x86   : > { %1637 = vrot.lane.b32.xlu1 %v4482_v46, %s4233_s21  ;;  %1635 = vrot.lane.b32.xlu0 %v4485_v47, %s4233_s21 }
  0x88   : > { %v470_v50 = vpop.permute.xlu1 %469  ;;  %v466_v51 = vpop.permute.xlu0 %465 }
  0x89   : > { %563 = vst.msk [vmem:[#allocation2 + $0x18] sm:$0xff] %vm559_vm3, %v470_v50  ;;  %561 = vst.msk [vmem:[#allocation2 + $0x8] sm:$0xff] %vm559_vm3, %v466_v51 }
  0x8a   : > { %1826 = vrot.lane.b32.xlu1 %v3714_v42, %s4235_s26  ;;  %1824 = vrot.lane.b32.xlu0 %v3713_v43, %s4235_s26 }
  0x8c   : > { %v659_v52 = vpop.permute.xlu1 %658  ;;  %v657_v53 = vpop.permute.xlu0 %656 }
  0x8d   : > { %754 = vst.msk [vmem:[#allocation2 + $0x8] sm:$0xff] %vm752_vm4, %v659_v52  ;;  %753 = vst.msk [vmem:[#allocation2] sm:$0xff] %vm752_vm4, %v657_v53 }
  0x8e   : > { %481 = vrot.lane.b32.xlu1 %v3682_v40, %s4227_s15  ;;  %479 = vrot.lane.b32.xlu0 %v3681_v41, %s4227_s15 }
  0x90   : > { %v663_v56 = vpop.permute.xlu1 %662  ;;  %v661_v57 = vpop.permute.xlu0 %660 }
  0x91   : > { %756 = vst.msk [vmem:[#allocation2 + $0x18] sm:$0xff] %vm752_vm4, %v663_v56  ;;  %755 = vst.msk [vmem:[#allocation2 + $0x10] sm:$0xff] %vm752_vm4, %v661_v57 }
  0x92   : > { %1830 = vrot.lane.b32.xlu1 %v4502_v54, %s4235_s26  ;;  %1828 = vrot.lane.b32.xlu0 %v4505_v55, %s4235_s26 }
  0x94   : > { %v853_v58 = vpop.permute.xlu1 %852  ;;  %v851_v59 = vpop.permute.xlu0 %850 }
  0x95   : > { %948 = vst.msk [vmem:[#allocation2 + $0x8] sm:$0xff] %vm946_vm5, %v853_v58  ;;  %947 = vst.msk [vmem:[#allocation2] sm:$0xff] %vm946_vm5, %v851_v59 }
  0x96   : > { %485 = vrot.lane.b32.xlu1 %v4482_v46, %s4227_s15  ;;  %483 = vrot.lane.b32.xlu0 %v4485_v47, %s4227_s15 }
  0x98   : > { %v857_v60 = vpop.permute.xlu1 %856  ;;  %v855_v61 = vpop.permute.xlu0 %854 }
  0x99   : > { %950 = vst.msk [vmem:[#allocation2 + $0x18] sm:$0xff] %vm946_vm5, %v857_v60  ;;  %949 = vst.msk [vmem:[#allocation2 + $0x10] sm:$0xff] %vm946_vm5, %v855_v61  ;;  %v4672_v60 = vld [vmem:[%s4303_s14 + $0x128] sm:$0xff]  ;;  %v4675_v61 = vld [vmem:[%s4303_s14 + $0x120] sm:$0xff] }
  0x9a   : > { %674 = vrot.lane.b32.xlu1 %v3714_v42, %s4228_s16  ;;  %672 = vrot.lane.b32.xlu0 %v3713_v43, %s4228_s16  ;;  %392 = vst.msk [vmem:[#allocation2 + $0xc8] sm:$0xff] %vm366_vm0, %v4672_v60  ;;  %391 = vst.msk [vmem:[#allocation2 + $0xc0] sm:$0xff] %vm366_vm0, %v4675_v61 }
  0x9c   : > { %v1046_v62 = vpop.permute.xlu1 %1045  ;;  %v1044_v63 = vpop.permute.xlu0 %1043 }
  0x9d   : > { %1141 = vst.msk [vmem:[#allocation2 + $0x8] sm:$0xff] %vm1139_vm6, %v1046_v62  ;;  %1140 = vst.msk [vmem:[#allocation2] sm:$0xff] %vm1139_vm6, %v1044_v63  ;;  %v4692_v62 = vld [vmem:[%s4303_s14 + $0xc9] sm:$0xff]  ;;  %v4695_v63 = vld [vmem:[%s4303_s14 + $0xc1] sm:$0xff] }
  0x9e   : > { %678 = vrot.lane.b32.xlu1 %v4502_v54, %s4228_s16  ;;  %676 = vrot.lane.b32.xlu0 %v4505_v55, %s4228_s16 }
  0xa0   : > { %v1050_v0 = vpop.permute.xlu1 %1049  ;;  %v1048_v1 = vpop.permute.xlu0 %1047 }
  0xa1   : > { %1143 = vst.msk [vmem:[#allocation2 + $0x18] sm:$0xff] %vm1139_vm6, %v1050_v0  ;;  %1142 = vst.msk [vmem:[#allocation2 + $0x10] sm:$0xff] %vm1139_vm6, %v1048_v1 }
  0xa2   : > { %868 = vrot.lane.b32.xlu1 %v4348_v16, %s4229_s17  ;;  %866 = vrot.lane.b32.xlu0 %v4351_v17, %s4229_s17 }
  0xa4   : > { %v1239_v2 = vpop.permute.xlu1 %1238  ;;  %v1237_v3 = vpop.permute.xlu0 %1236 }
  0xa5   : > { %1334 = vst.msk [vmem:[#allocation2 + $0x8] sm:$0xff] %vm1332_vm7, %v1239_v2  ;;  %1333 = vst.msk [vmem:[#allocation2] sm:$0xff] %vm1332_vm7, %v1237_v3 }
  0xa6   : > { %872 = vrot.lane.b32.xlu1 %v4366_v20, %s4229_s17  ;;  %870 = vrot.lane.b32.xlu0 %v4369_v21, %s4229_s17 }
  0xa8   : > { %v1243_v6 = vpop.permute.xlu1 %1242  ;;  %v1241_v7 = vpop.permute.xlu0 %1240 }
  0xa9   : > { %1336 = vst.msk [vmem:[#allocation2 + $0x18] sm:$0xff] %vm1332_vm7, %v1243_v6  ;;  %1335 = vst.msk [vmem:[#allocation2 + $0x10] sm:$0xff] %vm1332_vm7, %v1241_v7  ;;  %v4708_v6 = vld [vmem:[%s4303_s14 + $0xca] sm:$0xff]  ;;  %v4711_v7 = vld [vmem:[%s4303_s14 + $0xc2] sm:$0xff] }
  0xaa   : > { %1061 = vrot.lane.b32.xlu1 %v4482_v46, %s4230_s18  ;;  %1059 = vrot.lane.b32.xlu0 %v4485_v47, %s4230_s18  ;;  %v3814_v46 = vld [vmem:[%s4303_s14 + $0xb2] sm:$0xff]  ;;  %v3813_v47 = vld [vmem:[%s4303_s14 + $0xaa] sm:$0xff] }
  0xac   : > { %v1433_v10 = vpop.permute.xlu1 %1432  ;;  %v1431_v11 = vpop.permute.xlu0 %1430 }
  0xad   : > { %1528 = vst.msk [vmem:[#allocation2 + $0x8] sm:$0xff] %vm1526_vm8, %v1433_v10  ;;  %1527 = vst.msk [vmem:[#allocation2] sm:$0xff] %vm1526_vm8, %v1431_v11 }
  0xae   : > { %1065 = vrot.lane.b32.xlu1 %v4558_v8, %s4230_s18  ;;  %1063 = vrot.lane.b32.xlu0 %v4561_v9, %s4230_s18 }
  0xb0   : > { %v1437_v12 = vpop.permute.xlu1 %1436  ;;  %v1435_v13 = vpop.permute.xlu0 %1434 }
  0xb1   : > { %1530 = vst.msk [vmem:[#allocation2 + $0x18] sm:$0xff] %vm1526_vm8, %v1437_v12  ;;  %1529 = vst.msk [vmem:[#allocation2 + $0x10] sm:$0xff] %vm1526_vm8, %v1435_v13 }
  0xb2   : > { %1254 = vrot.lane.b32.xlu1 %v4502_v54, %s4231_s19  ;;  %1252 = vrot.lane.b32.xlu0 %v4505_v55, %s4231_s19 }
  0xb4   : > { %v1626_v16 = vpop.permute.xlu1 %1625  ;;  %v1624_v17 = vpop.permute.xlu0 %1623 }
  0xb5   : > { %1721 = vst.msk [vmem:[#allocation2 + $0x8] sm:$0xff] %vm1719_vm9, %v1626_v16  ;;  %1720 = vst.msk [vmem:[#allocation2] sm:$0xff] %vm1719_vm9, %v1624_v17  ;;  %v4748_v16 = vld [vmem:[%s4303_s14 + $0xe1] sm:$0xff]  ;;  %v4751_v17 = vld [vmem:[%s4303_s14 + $0xd9] sm:$0xff] }
  0xb6   : > { %1258 = vrot.lane.b32.xlu1 %v4576_v14, %s4231_s19  ;;  %1256 = vrot.lane.b32.xlu0 %v4579_v15, %s4231_s19 }
  0xb8   : > { %v1630_v18 = vpop.permute.xlu1 %1629  ;;  %v1628_v19 = vpop.permute.xlu0 %1627 }
  0xb9   : > { %1723 = vst.msk [vmem:[#allocation2 + $0x18] sm:$0xff] %vm1719_vm9, %v1630_v18  ;;  %1722 = vst.msk [vmem:[#allocation2 + $0x10] sm:$0xff] %vm1719_vm9, %v1628_v19 }
  0xba   : > { %1448 = vrot.lane.b32.xlu1 %v4366_v20, %s4232_s20  ;;  %1446 = vrot.lane.b32.xlu0 %v4369_v21, %s4232_s20 }
  0xbc   : > { %v1819_v22 = vpop.permute.xlu1 %1818  ;;  %v1817_v23 = vpop.permute.xlu0 %1816 }
  0xbd   : > { %1914 = vst.msk [vmem:[#allocation2 + $0x8] sm:$0xff] %vm1912_vm10, %v1819_v22  ;;  %1913 = vst.msk [vmem:[#allocation2] sm:$0xff] %vm1912_vm10, %v1817_v23 }
  0xbe   : > { %1452 = vrot.lane.b32.xlu1 %v4392_v26, %s4232_s20  ;;  %1450 = vrot.lane.b32.xlu0 %v4395_v27, %s4232_s20 }
  0xc0   : > { %v474_v20 = vpop.permute.xlu1 %473  ;;  %v472_v21 = vpop.permute.xlu0 %471 }
  0xc1   : > { %565 = vst.msk [vmem:[#allocation2 + $0x28] sm:$0xff] %vm559_vm3, %v474_v20  ;;  %564 = vst.msk [vmem:[#allocation2 + $0x20] sm:$0xff] %vm559_vm3, %v472_v21 }
  0xc2   : > { %1641 = vrot.lane.b32.xlu1 %v4558_v8, %s4233_s21  ;;  %1639 = vrot.lane.b32.xlu0 %v4561_v9, %s4233_s21 }
  0xc4   : > { %v1823_v30 = vpop.permute.xlu1 %1822  ;;  %v1821_v31 = vpop.permute.xlu0 %1820  ;;  %v1945_v32 = vld [vmem:[#allocation2] sm:$0xff]  ;;  %v1946_v33 = vld [vmem:[#allocation2 + $0x8] sm:$0xff] }
  0xc5   : > { %1916 = vst.msk [vmem:[#allocation2 + $0x18] sm:$0xff] %vm1912_vm10, %v1823_v30  ;;  %1915 = vst.msk [vmem:[#allocation2 + $0x10] sm:$0xff] %vm1912_vm10, %v1821_v31  ;;  %v1977_v34 = vpack.c.bf16 %v1946_v33, %v1945_v32 }
  0xc6   : > { %1645 = vrot.lane.b32.xlu1 %v4616_v28, %s4233_s21  ;;  %1643 = vrot.lane.b32.xlu0 %v4619_v29, %s4233_s21 }
  0xc7   : > { %4063 = vmatprep.mubr.msk.bf16.mxu0 %vm2015_vm11, %v1977_v34  ;;  %v3818_v34 = vld [vmem:[%s4303_s14 + $0xe2] sm:$0xff] }
  0xc8   : > { %v478_v35 = vpop.permute.xlu1 %477  ;;  %v476_v36 = vpop.permute.xlu0 %475 }
  0xc9   : > { %567 = vst.msk [vmem:[#allocation2 + $0x38] sm:$0xff] %vm559_vm3, %v478_v35  ;;  %566 = vst.msk [vmem:[#allocation2 + $0x30] sm:$0xff] %vm559_vm3, %v476_v36  ;;  %v3817_v35 = vld [vmem:[%s4303_s14 + $0xda] sm:$0xff] }
  0xca   : > { %1834 = vrot.lane.b32.xlu1 %v4576_v14, %s4235_s26  ;;  %1832 = vrot.lane.b32.xlu0 %v4579_v15, %s4235_s26 }
  0xcc   : > { %v667_v37 = vpop.permute.xlu1 %666  ;;  %v665_v40 = vpop.permute.xlu0 %664  ;;  %v1947_v41 = vld [vmem:[#allocation2 + $0x10] sm:$0xff]  ;;  %v1948_v42 = vld [vmem:[#allocation2 + $0x18] sm:$0xff] }
  0xcd   : > { %758 = vst.msk [vmem:[#allocation2 + $0x28] sm:$0xff] %vm752_vm4, %v667_v37  ;;  %757 = vst.msk [vmem:[#allocation2 + $0x20] sm:$0xff] %vm752_vm4, %v665_v40  ;;  %v1978_v43 = vpack.c.bf16 %v1948_v42, %v1947_v41 }
  0xce   : > { %489 = vrot.lane.b32.xlu1 %v4558_v8, %s4227_s15  ;;  %487 = vrot.lane.b32.xlu0 %v4561_v9, %s4227_s15 }
  0xcf   : > { %4064 = vmatmul.mubr.msk.bf16.vlgmr.msra.gmra.mrb[0].mxu0 %vm2015_vm11, %v1978_v43 }
  0xd0   : > { %v671_v48 = vpop.permute.xlu1 %670  ;;  %v669_v49 = vpop.permute.xlu0 %668 }
  0xd1   : > { %760 = vst.msk [vmem:[#allocation2 + $0x38] sm:$0xff] %vm752_vm4, %v671_v48  ;;  %759 = vst.msk [vmem:[#allocation2 + $0x30] sm:$0xff] %vm752_vm4, %v669_v49 }
  0xd2   : > { %1838 = vrot.lane.b32.xlu1 %v3814_v46, %s4235_s26  ;;  %1836 = vrot.lane.b32.xlu0 %v3813_v47, %s4235_s26 }
  0xd4   : > { %v861_v50 = vpop.permute.xlu1 %860  ;;  %v859_v51 = vpop.permute.xlu0 %858 }
  0xd5   : > { %952 = vst.msk [vmem:[#allocation2 + $0x28] sm:$0xff] %vm946_vm5, %v861_v50  ;;  %951 = vst.msk [vmem:[#allocation2 + $0x20] sm:$0xff] %vm946_vm5, %v859_v51 }
  0xd6   : > { %493 = vrot.lane.b32.xlu1 %v4616_v28, %s4227_s15  ;;  %491 = vrot.lane.b32.xlu0 %v4619_v29, %s4227_s15 }
  0xd8   : > { %v865_v52 = vpop.permute.xlu1 %864  ;;  %v863_v53 = vpop.permute.xlu0 %862 }
  0xd9   : > { %954 = vst.msk [vmem:[#allocation2 + $0x38] sm:$0xff] %vm946_vm5, %v865_v52  ;;  %953 = vst.msk [vmem:[#allocation2 + $0x30] sm:$0xff] %vm946_vm5, %v863_v53  ;;  %v4808_v52 = vld [vmem:[%s4303_s14 + $0x158] sm:$0xff] }
  0xda   : > { %682 = vrot.lane.b32.xlu1 %v4576_v14, %s4228_s16  ;;  %680 = vrot.lane.b32.xlu0 %v4579_v15, %s4228_s16  ;;  %v4728_v14 = vld [vmem:[%s4303_s14 + $0x140] sm:$0xff]  ;;  %v4731_v15 = vld [vmem:[%s4303_s14 + $0x138] sm:$0xff]  ;;  %396 = vst.msk [vmem:[#allocation2 + $0xe8] sm:$0xff] %vm366_vm0, %v4808_v52 }
  0xdb   : > { %394 = vst.msk [vmem:[#allocation2 + $0xd8] sm:$0xff] %vm366_vm0, %v4728_v14  ;;  %393 = vst.msk [vmem:[#allocation2 + $0xd0] sm:$0xff] %vm366_vm0, %v4731_v15 }
  0xdc   : > { %v1054_v54 = vpop.permute.xlu1 %1053  ;;  %v1052_v55 = vpop.permute.xlu0 %1051 }
  0xdd   : > { %1145 = vst.msk [vmem:[#allocation2 + $0x28] sm:$0xff] %vm1139_vm6, %v1054_v54  ;;  %1144 = vst.msk [vmem:[#allocation2 + $0x20] sm:$0xff] %vm1139_vm6, %v1052_v55  ;;  %v4824_v54 = vld [vmem:[%s4303_s14 + $0xf9] sm:$0xff]  ;;  %v4827_v55 = vld [vmem:[%s4303_s14 + $0xf1] sm:$0xff] }
  0xde   : > { %686 = vrot.lane.b32.xlu1 %v3814_v46, %s4228_s16  ;;  %684 = vrot.lane.b32.xlu0 %v3813_v47, %s4228_s16 }
  0xe0   : > { %v1058_v56 = vpop.permute.xlu1 %1057  ;;  %v1056_v57 = vpop.permute.xlu0 %1055 }
  0xe1   : > { %1147 = vst.msk [vmem:[#allocation2 + $0x38] sm:$0xff] %vm1139_vm6, %v1058_v56  ;;  %1146 = vst.msk [vmem:[#allocation2 + $0x30] sm:$0xff] %vm1139_vm6, %v1056_v57 }
  0xe2   : > { %876 = vrot.lane.b32.xlu1 %v4392_v26, %s4229_s17  ;;  %874 = vrot.lane.b32.xlu0 %v4395_v27, %s4229_s17 }
  0xe4   : > { %v1247_v58 = vpop.permute.xlu1 %1246  ;;  %v1245_v59 = vpop.permute.xlu0 %1244 }
  0xe5   : > { %1338 = vst.msk [vmem:[#allocation2 + $0x28] sm:$0xff] %vm1332_vm7, %v1247_v58  ;;  %1337 = vst.msk [vmem:[#allocation2 + $0x20] sm:$0xff] %vm1332_vm7, %v1245_v59 }
  0xe6   : > { %880 = vrot.lane.b32.xlu1 %v4436_v38, %s4229_s17  ;;  %878 = vrot.lane.b32.xlu0 %v4439_v39, %s4229_s17 }
  0xe8   : > { %v1251_v26 = vpop.permute.xlu1 %1250  ;;  %v1249_v27 = vpop.permute.xlu0 %1248 }
  0xe9   : > { %1340 = vst.msk [vmem:[#allocation2 + $0x38] sm:$0xff] %vm1332_vm7, %v1251_v26  ;;  %1339 = vst.msk [vmem:[#allocation2 + $0x30] sm:$0xff] %vm1332_vm7, %v1249_v27  ;;  %v4840_v26 = vld [vmem:[%s4303_s14 + $0xfa] sm:$0xff]  ;;  %v4843_v27 = vld [vmem:[%s4303_s14 + $0xf2] sm:$0xff] }
  0xea   : > { %1069 = vrot.lane.b32.xlu1 %v4616_v28, %s4230_s18  ;;  %1067 = vrot.lane.b32.xlu0 %v4619_v29, %s4230_s18 }
  0xec   : > { %v1441_v0 = vpop.permute.xlu1 %1440  ;;  %v1439_v1 = vpop.permute.xlu0 %1438 }
  0xed   : > { %1532 = vst.msk [vmem:[#allocation2 + $0x28] sm:$0xff] %vm1526_vm8, %v1441_v0  ;;  %1531 = vst.msk [vmem:[#allocation2 + $0x20] sm:$0xff] %vm1526_vm8, %v1439_v1  ;;  %v4236_v0 = vmov 0.0  }
  0xee   : > { %1073 = vrot.lane.b32.xlu1 %v4692_v62, %s4230_s18  ;;  %1071 = vrot.lane.b32.xlu0 %v4695_v63, %s4230_s18  ;;  %2345 = vst.msk [vmem:[#allocation4 + $0x20] sm:$0x1] %vm2342_vm13, %v4236_v0  ;;  %2344 = vst.msk [vmem:[#allocation4 + $0x10] sm:$0x1] %vm2342_vm13, %v4236_v0 }
  0xef   : > { %2336 = vst.msk [vmem:[#allocation4] sm:$0xff] %vm2280_vm12, %v4236_v0  ;;  %2340 = vst.msk [vmem:[#allocation4 + $0x90] sm:$0xff] %vm2280_vm12, %v4236_v0 }
  0xf0   : > { %v1445_v2 = vpop.permute.xlu1 %1444  ;;  %v1443_v3 = vpop.permute.xlu0 %1442  ;;  %2346 = vst.msk [vmem:[#allocation4 + $0x30] sm:$0x1] %vm2342_vm13, %v4236_v0  ;;  %2347 = vst.msk [vmem:[#allocation4 + $0x40] sm:$0x1] %vm2342_vm13, %v4236_v0 }
  0xf1   : > { %1534 = vst.msk [vmem:[#allocation2 + $0x38] sm:$0xff] %vm1526_vm8, %v1445_v2  ;;  %1533 = vst.msk [vmem:[#allocation2 + $0x30] sm:$0xff] %vm1526_vm8, %v1443_v3 }
  0xf2   : > { %1262 = vrot.lane.b32.xlu1 %v3814_v46, %s4231_s19  ;;  %1260 = vrot.lane.b32.xlu0 %v3813_v47, %s4231_s19  ;;  %2348 = vst.msk [vmem:[#allocation4 + $0x50] sm:$0x1] %vm2342_vm13, %v4236_v0  ;;  %2349 = vst.msk [vmem:[#allocation4 + $0x60] sm:$0x1] %vm2342_vm13, %v4236_v0 }
  0xf3   : > { %2350 = vst.msk [vmem:[#allocation4 + $0x70] sm:$0x1] %vm2342_vm13, %v4236_v0  ;;  %2351 = vst.msk [vmem:[#allocation4 + $0x80] sm:$0x1] %vm2342_vm13, %v4236_v0 }
  0xf4   : > { %v1634_v8 = vpop.permute.xlu1 %1633  ;;  %v1632_v9 = vpop.permute.xlu0 %1631  ;;  %2354 = vst.msk [vmem:[#allocation4 + $0x19] sm:$0x1] %vm2342_vm13, %v4236_v0  ;;  %2355 = vst.msk [vmem:[#allocation4 + $0x29] sm:$0x1] %vm2342_vm13, %v4236_v0 }
  0xf5   : > { %1725 = vst.msk [vmem:[#allocation2 + $0x28] sm:$0xff] %vm1719_vm9, %v1634_v8  ;;  %1724 = vst.msk [vmem:[#allocation2 + $0x20] sm:$0xff] %vm1719_vm9, %v1632_v9  ;;  %v4920_v9 = vld [vmem:[%s4303_s14 + $0x111] sm:$0xff] }
  0xf6   : > { %1266 = vrot.lane.b32.xlu1 %v4708_v6, %s4231_s19  ;;  %1264 = vrot.lane.b32.xlu0 %v4711_v7, %s4231_s19  ;;  %2356 = vst.msk [vmem:[#allocation4 + $0x39] sm:$0x1] %vm2342_vm13, %v4236_v0  ;;  %2357 = vst.msk [vmem:[#allocation4 + $0x49] sm:$0x1] %vm2342_vm13, %v4236_v0 }
  0xf7   : > { %2358 = vst.msk [vmem:[#allocation4 + $0x59] sm:$0x1] %vm2342_vm13, %v4236_v0  ;;  %2359 = vst.msk [vmem:[#allocation4 + $0x69] sm:$0x1] %vm2342_vm13, %v4236_v0 }
  0xf8   : > { %v1638_v10 = vpop.permute.xlu1 %1637  ;;  %v1636_v11 = vpop.permute.xlu0 %1635  ;;  %2360 = vst.msk [vmem:[#allocation4 + $0x79] sm:$0x1] %vm2342_vm13, %v4236_v0  ;;  %2361 = vst.msk [vmem:[#allocation4 + $0x89] sm:$0x1] %vm2342_vm13, %v4236_v0 }
  0xf9   : > { %1727 = vst.msk [vmem:[#allocation2 + $0x38] sm:$0xff] %vm1719_vm9, %v1638_v10  ;;  %1726 = vst.msk [vmem:[#allocation2 + $0x30] sm:$0xff] %vm1719_vm9, %v1636_v11  ;;  %v4923_v10 = vld [vmem:[%s4303_s14 + $0x109] sm:$0xff] }
  0xfa   : > { %1456 = vrot.lane.b32.xlu1 %v4436_v38, %s4232_s20  ;;  %1454 = vrot.lane.b32.xlu0 %v4439_v39, %s4232_s20  ;;  %2343 = vst.msk [vmem:[#allocation4] sm:$0x1] %vm2342_vm13, %v4236_v0  ;;  %2352 = vst.msk [vmem:[#allocation4 + $0x90] sm:$0x1] %vm2342_vm13, %v4236_v0 }
  0xfb   : > { %2338 = vst.msk [vmem:[#allocation4 + $0x8] sm:$0x3] %vm2337_vm14, %v4236_v0  ;;  %2341 = vst.msk [vmem:[#allocation4 + $0x98] sm:$0x3] %vm2337_vm14, %v4236_v0 }
  0xfc   : > { %v1827_v12 = vpop.permute.xlu1 %1826  ;;  %v1825_v13 = vpop.permute.xlu0 %1824  ;;  %2362 = vst.msk [vmem:[#allocation4 + $0x99] sm:$0x1] %vm2342_vm13, %v4236_v0  ;;  %2353 = vst.msk [vmem:[#allocation4 + $0x9] sm:$0x1] %vm2342_vm13, %v4236_v0 }
  0xfd   : > { %1918 = vst.msk [vmem:[#allocation2 + $0x28] sm:$0xff] %vm1912_vm10, %v1827_v12  ;;  %1917 = vst.msk [vmem:[#allocation2 + $0x20] sm:$0xff] %vm1912_vm10, %v1825_v13 }
  0xfe   : > { %1460 = vrot.lane.b32.xlu1 %v4466_v44, %s4232_s20  ;;  %1458 = vrot.lane.b32.xlu0 %v4469_v45, %s4232_s20 }
 0x100   : > { %v482_v38 = vpop.permute.xlu1 %481  ;;  %v480_v39 = vpop.permute.xlu0 %479 }
 0x101   : > { %569 = vst.msk [vmem:[#allocation2 + $0x48] sm:$0xff] %vm559_vm3, %v482_v38  ;;  %568 = vst.msk [vmem:[#allocation2 + $0x40] sm:$0xff] %vm559_vm3, %v480_v39 }
 0x102   : > { %1649 = vrot.lane.b32.xlu1 %v4692_v62, %s4233_s21  ;;  %1647 = vrot.lane.b32.xlu0 %v4695_v63, %s4233_s21 }
 0x104   : > { %v1831_v18 = vpop.permute.xlu1 %1830  ;;  %v1829_v19 = vpop.permute.xlu0 %1828  ;;  %v1949_v22 = vld [vmem:[#allocation2 + $0x20] sm:$0xff]  ;;  %v1950_v23 = vld [vmem:[#allocation2 + $0x28] sm:$0xff] }
 0x105   : > { %1920 = vst.msk [vmem:[#allocation2 + $0x38] sm:$0xff] %vm1912_vm10, %v1831_v18  ;;  %1919 = vst.msk [vmem:[#allocation2 + $0x30] sm:$0xff] %vm1912_vm10, %v1829_v19  ;;  %v1979_v20 = vpack.c.bf16 %v1950_v23, %v1949_v22 }
 0x106   : > { %1653 = vrot.lane.b32.xlu1 %v4748_v16, %s4233_s21  ;;  %1651 = vrot.lane.b32.xlu0 %v4751_v17, %s4233_s21 }
 0x107   : > { %4067 = vmatprep.mubr.msk.bf16.mxu0 %vm2015_vm11, %v1979_v20 }
 0x108   : > { %v486_v21 = vpop.permute.xlu1 %485  ;;  %v484_v28 = vpop.permute.xlu0 %483 }
 0x109   : > { %571 = vst.msk [vmem:[#allocation2 + $0x58] sm:$0xff] %vm559_vm3, %v486_v21  ;;  %570 = vst.msk [vmem:[#allocation2 + $0x50] sm:$0xff] %vm559_vm3, %v484_v28  ;;  %v3822_v21 = vld [vmem:[%s4303_s14 + $0x112] sm:$0xff]  ;;  %v3821_v28 = vld [vmem:[%s4303_s14 + $0x10a] sm:$0xff] }
 0x10a   : > { %1842 = vrot.lane.b32.xlu1 %v4708_v6, %s4235_s26  ;;  %1840 = vrot.lane.b32.xlu0 %v4711_v7, %s4235_s26 }
 0x10c   : > { %v675_v29 = vpop.permute.xlu1 %674  ;;  %v673_v30 = vpop.permute.xlu0 %672  ;;  %v1951_v31 = vld [vmem:[#allocation2 + $0x30] sm:$0xff]  ;;  %v1952_v32 = vld [vmem:[#allocation2 + $0x38] sm:$0xff] }
 0x10d   : > { %762 = vst.msk [vmem:[#allocation2 + $0x48] sm:$0xff] %vm752_vm4, %v675_v29  ;;  %761 = vst.msk [vmem:[#allocation2 + $0x40] sm:$0xff] %vm752_vm4, %v673_v30  ;;  %v1980_v33 = vpack.c.bf16 %v1952_v32, %v1951_v31 }
 0x10e   : > { %497 = vrot.lane.b32.xlu1 %v4692_v62, %s4227_s15  ;;  %495 = vrot.lane.b32.xlu0 %v4695_v63, %s4227_s15 }
 0x10f   : > { %4068 = vmatmul.mubr.msk.bf16.gmra.mrb[4].mxu0 %vm2015_vm11, %v1980_v33 }
 0x110   : > { %v679_v36 = vpop.permute.xlu1 %678  ;;  %v677_v37 = vpop.permute.xlu0 %676 }
 0x111   : > { %764 = vst.msk [vmem:[#allocation2 + $0x58] sm:$0xff] %vm752_vm4, %v679_v36  ;;  %763 = vst.msk [vmem:[#allocation2 + $0x50] sm:$0xff] %vm752_vm4, %v677_v37 }
 0x112   : > { %1846 = vrot.lane.b32.xlu1 %v3818_v34, %s4235_s26  ;;  %1844 = vrot.lane.b32.xlu0 %v3817_v35, %s4235_s26 }
 0x114   : > { %v869_v40 = vpop.permute.xlu1 %868  ;;  %v867_v41 = vpop.permute.xlu0 %866 }
 0x115   : > { %956 = vst.msk [vmem:[#allocation2 + $0x48] sm:$0xff] %vm946_vm5, %v869_v40  ;;  %955 = vst.msk [vmem:[#allocation2 + $0x40] sm:$0xff] %vm946_vm5, %v867_v41 }
 0x116   : > { %501 = vrot.lane.b32.xlu1 %v4748_v16, %s4227_s15  ;;  %499 = vrot.lane.b32.xlu0 %v4751_v17, %s4227_s15 }
 0x118   : > { %v873_v42 = vpop.permute.xlu1 %872  ;;  %v871_v43 = vpop.permute.xlu0 %870 }
 0x119   : > { %958 = vst.msk [vmem:[#allocation2 + $0x58] sm:$0xff] %vm946_vm5, %v873_v42  ;;  %957 = vst.msk [vmem:[#allocation2 + $0x50] sm:$0xff] %vm946_vm5, %v871_v43 }
 0x11a   : > { %690 = vrot.lane.b32.xlu1 %v4708_v6, %s4228_s16  ;;  %688 = vrot.lane.b32.xlu0 %v4711_v7, %s4228_s16  ;;  %v4900_v7 = vld [vmem:[%s4303_s14 + $0x170] sm:$0xff] }
 0x11b   : > { %398 = vst.msk [vmem:[#allocation2 + $0xf8] sm:$0xff] %vm366_vm0, %v4900_v7 }
 0x11c   : > { %v1062_v46 = vpop.permute.xlu1 %1061  ;;  %v1060_v47 = vpop.permute.xlu0 %1059 }
 0x11d   : > { %1149 = vst.msk [vmem:[#allocation2 + $0x48] sm:$0xff] %vm1139_vm6, %v1062_v46  ;;  %1148 = vst.msk [vmem:[#allocation2 + $0x40] sm:$0xff] %vm1139_vm6, %v1060_v47 }
 0x11e   : > { %694 = vrot.lane.b32.xlu1 %v3818_v34, %s4228_s16  ;;  %692 = vrot.lane.b32.xlu0 %v3817_v35, %s4228_s16 }
 0x120   : > { %v1066_v48 = vpop.permute.xlu1 %1065  ;;  %v1064_v49 = vpop.permute.xlu0 %1063 }
 0x121   : > { %1151 = vst.msk [vmem:[#allocation2 + $0x58] sm:$0xff] %vm1139_vm6, %v1066_v48  ;;  %1150 = vst.msk [vmem:[#allocation2 + $0x50] sm:$0xff] %vm1139_vm6, %v1064_v49 }
 0x122   : > { %884 = vrot.lane.b32.xlu1 %v4466_v44, %s4229_s17  ;;  %882 = vrot.lane.b32.xlu0 %v4469_v45, %s4229_s17  ;;  %v4811_v44 = vld [vmem:[%s4303_s14 + $0x150] sm:$0xff] }
 0x123   : > { %395 = vst.msk [vmem:[#allocation2 + $0xe0] sm:$0xff] %vm366_vm0, %v4811_v44 }
 0x124   : > { %v1255_v50 = vpop.permute.xlu1 %1254  ;;  %v1253_v51 = vpop.permute.xlu0 %1252 }
 0x125   : > { %1342 = vst.msk [vmem:[#allocation2 + $0x48] sm:$0xff] %vm1332_vm7, %v1255_v50  ;;  %1341 = vst.msk [vmem:[#allocation2 + $0x40] sm:$0xff] %vm1332_vm7, %v1253_v51  ;;  %v5002_v51 = vld [vmem:[%s4303_s14 + $0x12a] sm:$0xff] }
 0x126   : > { %888 = vrot.lane.b32.xlu1 %v4538_v4, %s4229_s17  ;;  %886 = vrot.lane.b32.xlu0 %v4541_v5, %s4229_s17 }
 0x128   : > { %v1259_v45 = vpop.permute.xlu1 %1258  ;;  %v1257_v53 = vpop.permute.xlu0 %1256 }
 0x129   : > { %1344 = vst.msk [vmem:[#allocation2 + $0x58] sm:$0xff] %vm1332_vm7, %v1259_v45  ;;  %1343 = vst.msk [vmem:[#allocation2 + $0x50] sm:$0xff] %vm1332_vm7, %v1257_v53  ;;  %v5005_v45 = vld [vmem:[%s4303_s14 + $0x122] sm:$0xff] }
 0x12a   : > { %1077 = vrot.lane.b32.xlu1 %v4748_v16, %s4230_s18  ;;  %1075 = vrot.lane.b32.xlu0 %v4751_v17, %s4230_s18 }
 0x12c   : > { %v1449_v56 = vpop.permute.xlu1 %1448  ;;  %v1447_v57 = vpop.permute.xlu0 %1446 }
 0x12d   : > { %1536 = vst.msk [vmem:[#allocation2 + $0x48] sm:$0xff] %vm1526_vm8, %v1449_v56  ;;  %1535 = vst.msk [vmem:[#allocation2 + $0x40] sm:$0xff] %vm1526_vm8, %v1447_v57 }
 0x12e   : > { %1081 = vrot.lane.b32.xlu1 %v4824_v54, %s4230_s18  ;;  %1079 = vrot.lane.b32.xlu0 %v4827_v55, %s4230_s18 }
 0x130   : > { %v1453_v58 = vpop.permute.xlu1 %1452  ;;  %v1451_v59 = vpop.permute.xlu0 %1450 }
 0x131   : > { %1538 = vst.msk [vmem:[#allocation2 + $0x58] sm:$0xff] %vm1526_vm8, %v1453_v58  ;;  %1537 = vst.msk [vmem:[#allocation2 + $0x50] sm:$0xff] %vm1526_vm8, %v1451_v59 }
 0x132   : > { %1270 = vrot.lane.b32.xlu1 %v3818_v34, %s4231_s19  ;;  %1268 = vrot.lane.b32.xlu0 %v3817_v35, %s4231_s19 }
 0x134   : > { %v1642_v62 = vpop.permute.xlu1 %1641  ;;  %v1640_v63 = vpop.permute.xlu0 %1639 }
 0x135   : > { %1729 = vst.msk [vmem:[#allocation2 + $0x48] sm:$0xff] %vm1719_vm9, %v1642_v62  ;;  %1728 = vst.msk [vmem:[#allocation2 + $0x40] sm:$0xff] %vm1719_vm9, %v1640_v63 }
 0x136   : > { %1274 = vrot.lane.b32.xlu1 %v4840_v26, %s4231_s19  ;;  %1272 = vrot.lane.b32.xlu0 %v4843_v27, %s4231_s19 }
 0x138   : > { %v1646_v1 = vpop.permute.xlu1 %1645  ;;  %v1644_v2 = vpop.permute.xlu0 %1643 }
 0x139   : > { %1731 = vst.msk [vmem:[#allocation2 + $0x58] sm:$0xff] %vm1719_vm9, %v1646_v1  ;;  %1730 = vst.msk [vmem:[#allocation2 + $0x50] sm:$0xff] %vm1719_vm9, %v1644_v2 }
 0x13a   : > { %1464 = vrot.lane.b32.xlu1 %v4538_v4, %s4232_s20  ;;  %1462 = vrot.lane.b32.xlu0 %v4541_v5, %s4232_s20  ;;  %v4907_v4 = vld [vmem:[%s4303_s14 + $0x168] sm:$0xff] }
 0x13b   : > { %397 = vst.msk [vmem:[#allocation2 + $0xf0] sm:$0xff] %vm366_vm0, %v4907_v4  ;;  %vm3577_vm0 = vcmask 392192  }
 0x13c   : > { %v1835_v3 = vpop.permute.xlu1 %1834  ;;  %v1833_v6 = vpop.permute.xlu0 %1832 }
 0x13d   : > { %1922 = vst.msk [vmem:[#allocation2 + $0x48] sm:$0xff] %vm1912_vm10, %v1835_v3  ;;  %1921 = vst.msk [vmem:[#allocation2 + $0x40] sm:$0xff] %vm1912_vm10, %v1833_v6 }
 0x13e   : > { %1468 = vrot.lane.b32.xlu1 %v4596_v24, %s4232_s20  ;;  %1466 = vrot.lane.b32.xlu0 %v4599_v25, %s4232_s20 }
 0x140   : > { %v490_v5 = vpop.permute.xlu1 %489  ;;  %v488_v8 = vpop.permute.xlu0 %487 }
 0x141   : > { %573 = vst.msk [vmem:[#allocation2 + $0x68] sm:$0xff] %vm559_vm3, %v490_v5  ;;  %572 = vst.msk [vmem:[#allocation2 + $0x60] sm:$0xff] %vm559_vm3, %v488_v8 }
 0x142   : > { %1657 = vrot.lane.b32.xlu1 %v4824_v54, %s4233_s21  ;;  %1655 = vrot.lane.b32.xlu0 %v4827_v55, %s4233_s21 }
 0x144   : > { %v1839_v11 = vpop.permute.xlu1 %1838  ;;  %v1837_v12 = vpop.permute.xlu0 %1836  ;;  %v1953_v13 = vld [vmem:[#allocation2 + $0x40] sm:$0xff]  ;;  %v1954_v38 = vld [vmem:[#allocation2 + $0x48] sm:$0xff] }
 0x145   : > { %1924 = vst.msk [vmem:[#allocation2 + $0x58] sm:$0xff] %vm1912_vm10, %v1839_v11  ;;  %1923 = vst.msk [vmem:[#allocation2 + $0x50] sm:$0xff] %vm1912_vm10, %v1837_v12  ;;  %v1981_v39 = vpack.c.bf16 %v1954_v38, %v1953_v13  ;;  %v5058_v12 = vld [vmem:[%s4303_s14 + $0x142] sm:$0xff]  ;;  %v5061_v13 = vld [vmem:[%s4303_s14 + $0x13a] sm:$0xff] }
 0x146   : > { %1661 = vrot.lane.b32.xlu1 %v4920_v9, %s4233_s21  ;;  %1659 = vrot.lane.b32.xlu0 %v4923_v10, %s4233_s21 }
 0x147   : > { %4071 = vmatprep.mubr.msk.bf16.mxu0 %vm2015_vm11, %v1981_v39 }
 0x148   : > { %v494_v16 = vpop.permute.xlu1 %493  ;;  %v492_v17 = vpop.permute.xlu0 %491 }
 0x149   : > { %575 = vst.msk [vmem:[#allocation2 + $0x78] sm:$0xff] %vm559_vm3, %v494_v16  ;;  %574 = vst.msk [vmem:[#allocation2 + $0x70] sm:$0xff] %vm559_vm3, %v492_v17 }
 0x14a   : > { %1850 = vrot.lane.b32.xlu1 %v4840_v26, %s4235_s26  ;;  %1848 = vrot.lane.b32.xlu0 %v4843_v27, %s4235_s26 }
 0x14c   : > { %v683_v18 = vpop.permute.xlu1 %682  ;;  %v681_v19 = vpop.permute.xlu0 %680  ;;  %v1955_v22 = vld [vmem:[#allocation2 + $0x50] sm:$0xff]  ;;  %v1956_v23 = vld [vmem:[#allocation2 + $0x58] sm:$0xff] }
 0x14d   : > { %766 = vst.msk [vmem:[#allocation2 + $0x68] sm:$0xff] %vm752_vm4, %v683_v18  ;;  %765 = vst.msk [vmem:[#allocation2 + $0x60] sm:$0xff] %vm752_vm4, %v681_v19  ;;  %v1982_v20 = vpack.c.bf16 %v1956_v23, %v1955_v22 }
 0x14e   : > { %505 = vrot.lane.b32.xlu1 %v4824_v54, %s4227_s15  ;;  %503 = vrot.lane.b32.xlu0 %v4827_v55, %s4227_s15 }
 0x14f   : > { %4072 = vmatmul.mubr.msk.bf16.gmra.mrb[8].mxu0 %vm2015_vm11, %v1982_v20 }
 0x150   : > { %v687_v29 = vpop.permute.xlu1 %686  ;;  %v685_v30 = vpop.permute.xlu0 %684 }
 0x151   : > { %768 = vst.msk [vmem:[#allocation2 + $0x78] sm:$0xff] %vm752_vm4, %v687_v29  ;;  %767 = vst.msk [vmem:[#allocation2 + $0x70] sm:$0xff] %vm752_vm4, %v685_v30 }
 0x152   : > { %1854 = vrot.lane.b32.xlu1 %v3822_v21, %s4235_s26  ;;  %1852 = vrot.lane.b32.xlu0 %v3821_v28, %s4235_s26 }
 0x154   : > { %v877_v31 = vpop.permute.xlu1 %876  ;;  %v875_v32 = vpop.permute.xlu0 %874 }
 0x155   : > { %960 = vst.msk [vmem:[#allocation2 + $0x68] sm:$0xff] %vm946_vm5, %v877_v31  ;;  %959 = vst.msk [vmem:[#allocation2 + $0x60] sm:$0xff] %vm946_vm5, %v875_v32 }
 0x156   : > { %509 = vrot.lane.b32.xlu1 %v4920_v9, %s4227_s15  ;;  %507 = vrot.lane.b32.xlu0 %v4923_v10, %s4227_s15 }
 0x158   : > { %v881_v33 = vpop.permute.xlu1 %880  ;;  %v879_v34 = vpop.permute.xlu0 %878 }
 0x159   : > { %962 = vst.msk [vmem:[#allocation2 + $0x78] sm:$0xff] %vm946_vm5, %v881_v33  ;;  %961 = vst.msk [vmem:[#allocation2 + $0x70] sm:$0xff] %vm946_vm5, %v879_v34 }
 0x15a   : > { %698 = vrot.lane.b32.xlu1 %v4840_v26, %s4228_s16  ;;  %696 = vrot.lane.b32.xlu0 %v4843_v27, %s4228_s16 }
 0x15c   : > { %v1070_v35 = vpop.permute.xlu1 %1069  ;;  %v1068_v36 = vpop.permute.xlu0 %1067 }
 0x15d   : > { %1153 = vst.msk [vmem:[#allocation2 + $0x68] sm:$0xff] %vm1139_vm6, %v1070_v35  ;;  %1152 = vst.msk [vmem:[#allocation2 + $0x60] sm:$0xff] %vm1139_vm6, %v1068_v36 }
 0x15e   : > { %702 = vrot.lane.b32.xlu1 %v3822_v21, %s4228_s16  ;;  %700 = vrot.lane.b32.xlu0 %v3821_v28, %s4228_s16 }
 0x160   : > { %v1074_v37 = vpop.permute.xlu1 %1073  ;;  %v1072_v40 = vpop.permute.xlu0 %1071 }
 0x161   : > { %1155 = vst.msk [vmem:[#allocation2 + $0x78] sm:$0xff] %vm1139_vm6, %v1074_v37  ;;  %1154 = vst.msk [vmem:[#allocation2 + $0x70] sm:$0xff] %vm1139_vm6, %v1072_v40 }
 0x162   : > { %892 = vrot.lane.b32.xlu1 %v4596_v24, %s4229_s17  ;;  %890 = vrot.lane.b32.xlu0 %v4599_v25, %s4229_s17  ;;  %v4986_v24 = vld [vmem:[%s4303_s14 + $0x129] sm:$0xff]  ;;  %v4989_v25 = vld [vmem:[%s4303_s14 + $0x121] sm:$0xff] }
 0x164   : > { %v1263_v41 = vpop.permute.xlu1 %1262  ;;  %v1261_v42 = vpop.permute.xlu0 %1260 }
 0x165   : > { %1346 = vst.msk [vmem:[#allocation2 + $0x68] sm:$0xff] %vm1332_vm7, %v1263_v41  ;;  %1345 = vst.msk [vmem:[#allocation2 + $0x60] sm:$0xff] %vm1332_vm7, %v1261_v42 }
 0x166   : > { %896 = vrot.lane.b32.xlu1 %v4672_v60, %s4229_s17  ;;  %894 = vrot.lane.b32.xlu0 %v4675_v61, %s4229_s17 }
 0x168   : > { %v1267_v43 = vpop.permute.xlu1 %1266  ;;  %v1265_v46 = vpop.permute.xlu0 %1264 }
 0x169   : > { %1348 = vst.msk [vmem:[#allocation2 + $0x78] sm:$0xff] %vm1332_vm7, %v1267_v43  ;;  %1347 = vst.msk [vmem:[#allocation2 + $0x70] sm:$0xff] %vm1332_vm7, %v1265_v46 }
 0x16a   : > { %1085 = vrot.lane.b32.xlu1 %v4920_v9, %s4230_s18  ;;  %1083 = vrot.lane.b32.xlu0 %v4923_v10, %s4230_s18 }
 0x16c   : > { %v1457_v47 = vpop.permute.xlu1 %1456  ;;  %v1455_v48 = vpop.permute.xlu0 %1454 }
 0x16d   : > { %1540 = vst.msk [vmem:[#allocation2 + $0x68] sm:$0xff] %vm1526_vm8, %v1457_v47  ;;  %1539 = vst.msk [vmem:[#allocation2 + $0x60] sm:$0xff] %vm1526_vm8, %v1455_v48  ;;  %v5125_v47 = vld [vmem:[%s4303_s14 + $0x151] sm:$0xff] }
 0x16e   : > { %1089 = vrot.lane.b32.xlu1 %v4986_v24, %s4230_s18  ;;  %1087 = vrot.lane.b32.xlu0 %v4989_v25, %s4230_s18 }
 0x170   : > { %v1461_v49 = vpop.permute.xlu1 %1460  ;;  %v1459_v50 = vpop.permute.xlu0 %1458 }
 0x171   : > { %1542 = vst.msk [vmem:[#allocation2 + $0x78] sm:$0xff] %vm1526_vm8, %v1461_v49  ;;  %1541 = vst.msk [vmem:[#allocation2 + $0x70] sm:$0xff] %vm1526_vm8, %v1459_v50 }
 0x172   : > { %1278 = vrot.lane.b32.xlu1 %v3822_v21, %s4231_s19  ;;  %1276 = vrot.lane.b32.xlu0 %v3821_v28, %s4231_s19  ;;  %v5096_v21 = vld [vmem:[%s5873_s2] ss:$0 sm:$0xff] }
 0x174   : > { %v1650_v53 = vpop.permute.xlu1 %1649  ;;  %v1648_v54 = vpop.permute.xlu0 %1647 }
 0x175   : > { %1733 = vst.msk [vmem:[#allocation2 + $0x68] sm:$0xff] %vm1719_vm9, %v1650_v53  ;;  %1732 = vst.msk [vmem:[#allocation2 + $0x60] sm:$0xff] %vm1719_vm9, %v1648_v54  ;;  %v5144_v53 = vld [vmem:[%s4303_s14 + $0x152] sm:$0xff] }
 0x176   : > { %1282 = vrot.lane.b32.xlu1 %v5002_v51, %s4231_s19  ;;  %1280 = vrot.lane.b32.xlu0 %v5005_v45, %s4231_s19 }
 0x178   : > { %v1654_v55 = vpop.permute.xlu1 %1653  ;;  %v1652_v56 = vpop.permute.xlu0 %1651 }
 0x179   : > { %1735 = vst.msk [vmem:[#allocation2 + $0x78] sm:$0xff] %vm1719_vm9, %v1654_v55  ;;  %1734 = vst.msk [vmem:[#allocation2 + $0x70] sm:$0xff] %vm1719_vm9, %v1652_v56 }
 0x17a   : > { %1472 = vrot.lane.b32.xlu1 %v4672_v60, %s4232_s20  ;;  %1470 = vrot.lane.b32.xlu0 %v4675_v61, %s4232_s20  ;;  %v5032_v60 = vld [vmem:[%s4303_s14 + $0x141] sm:$0xff]  ;;  %v5035_v61 = vld [vmem:[%s4303_s14 + $0x139] sm:$0xff] }
 0x17c   : > { %v1843_v57 = vpop.permute.xlu1 %1842  ;;  %v1841_v58 = vpop.permute.xlu0 %1840 }
 0x17d   : > { %1926 = vst.msk [vmem:[#allocation2 + $0x68] sm:$0xff] %vm1912_vm10, %v1843_v57  ;;  %1925 = vst.msk [vmem:[#allocation2 + $0x60] sm:$0xff] %vm1912_vm10, %v1841_v58 }
 0x17e   : > { %1476 = vrot.lane.b32.xlu1 %v4728_v14, %s4232_s20  ;;  %1474 = vrot.lane.b32.xlu0 %v4731_v15, %s4232_s20 }
 0x180   : > { %v498_v59 = vpop.permute.xlu1 %497  ;;  %v496_v26 = vpop.permute.xlu0 %495 }
 0x181   : > { %577 = vst.msk [vmem:[#allocation2 + $0x88] sm:$0xff] %vm559_vm3, %v498_v59  ;;  %576 = vst.msk [vmem:[#allocation2 + $0x80] sm:$0xff] %vm559_vm3, %v496_v26 }
 0x182   : > { %1665 = vrot.lane.b32.xlu1 %v4986_v24, %s4233_s21  ;;  %1663 = vrot.lane.b32.xlu0 %v4989_v25, %s4233_s21 }
 0x184   : > { %v1847_v27 = vpop.permute.xlu1 %1846  ;;  %v1845_v62 = vpop.permute.xlu0 %1844  ;;  %v1957_v63 = vld [vmem:[#allocation2 + $0x60] sm:$0xff]  ;;  %v1958_v1 = vld [vmem:[#allocation2 + $0x68] sm:$0xff] }
 0x185   : > { %1928 = vst.msk [vmem:[#allocation2 + $0x78] sm:$0xff] %vm1912_vm10, %v1847_v27  ;;  %1927 = vst.msk [vmem:[#allocation2 + $0x70] sm:$0xff] %vm1912_vm10, %v1845_v62  ;;  %v1983_v2 = vpack.c.bf16 %v1958_v1, %v1957_v63  ;;  %v5181_v1 = vld [vmem:[%s4303_s14 + $0x171] sm:$0xff] }
 0x186   : > { %1669 = vrot.lane.b32.xlu1 %v5032_v60, %s4233_s21  ;;  %1667 = vrot.lane.b32.xlu0 %v5035_v61, %s4233_s21 }
 0x187   : > { %4075 = vmatprep.mubr.msk.bf16.mxu0 %vm2015_vm11, %v1983_v2  ;;  %v5184_v2 = vld [vmem:[%s4303_s14 + $0x169] sm:$0xff] }
 0x188   : > { %v502_v3 = vpop.permute.xlu1 %501  ;;  %v500_v6 = vpop.permute.xlu0 %499 }
 0x189   : > { %579 = vst.msk [vmem:[#allocation2 + $0x98] sm:$0xff] %vm559_vm3, %v502_v3  ;;  %578 = vst.msk [vmem:[#allocation2 + $0x90] sm:$0xff] %vm559_vm3, %v500_v6 }
 0x18a   : > { %1858 = vrot.lane.b32.xlu1 %v5002_v51, %s4235_s26  ;;  %1856 = vrot.lane.b32.xlu0 %v5005_v45, %s4235_s26 }
 0x18c   : > { %v691_v5 = vpop.permute.xlu1 %690  ;;  %v689_v8 = vpop.permute.xlu0 %688  ;;  %v1959_v9 = vld [vmem:[#allocation2 + $0x70] sm:$0xff]  ;;  %v1960_v10 = vld [vmem:[#allocation2 + $0x78] sm:$0xff] }
 0x18d   : > { %770 = vst.msk [vmem:[#allocation2 + $0x88] sm:$0xff] %vm752_vm4, %v691_v5  ;;  %769 = vst.msk [vmem:[#allocation2 + $0x80] sm:$0xff] %vm752_vm4, %v689_v8  ;;  %v1984_v11 = vpack.c.bf16 %v1960_v10, %v1959_v9 }
 0x18e   : > { %513 = vrot.lane.b32.xlu1 %v4986_v24, %s4227_s15  ;;  %511 = vrot.lane.b32.xlu0 %v4989_v25, %s4227_s15  ;;  %v5122_v25 = vld [vmem:[%s4303_s14 + $0x159] sm:$0xff] }
 0x18f   : > { %4076 = vmatmul.mubr.msk.bf16.gmra.mrb[12].mxu0 %vm2015_vm11, %v1984_v11 }
 0x190   : > { %v695_v38 = vpop.permute.xlu1 %694  ;;  %v693_v39 = vpop.permute.xlu0 %692 }
 0x191   : > { %772 = vst.msk [vmem:[#allocation2 + $0x98] sm:$0xff] %vm752_vm4, %v695_v38  ;;  %771 = vst.msk [vmem:[#allocation2 + $0x90] sm:$0xff] %vm752_vm4, %v693_v39 }
 0x192   : > { %1862 = vrot.lane.b32.xlu1 %v5058_v12, %s4235_s26  ;;  %1860 = vrot.lane.b32.xlu0 %v5061_v13, %s4235_s26 }
 0x194   : > { %v885_v16 = vpop.permute.xlu1 %884  ;;  %v883_v17 = vpop.permute.xlu0 %882 }
 0x195   : > { %964 = vst.msk [vmem:[#allocation2 + $0x88] sm:$0xff] %vm946_vm5, %v885_v16  ;;  %963 = vst.msk [vmem:[#allocation2 + $0x80] sm:$0xff] %vm946_vm5, %v883_v17  ;;  %v5207_v17 = vld [vmem:[%s4303_s14 + $0x172] sm:$0xff] }
 0x196   : > { %517 = vrot.lane.b32.xlu1 %v5032_v60, %s4227_s15  ;;  %515 = vrot.lane.b32.xlu0 %v5035_v61, %s4227_s15 }
 0x198   : > { %v889_v0 = vpop.permute.xlu1 %888  ;;  %v887_v18 = vpop.permute.xlu0 %886 }
 0x199   : > { %966 = vst.msk [vmem:[#allocation2 + $0x98] sm:$0xff] %vm946_vm5, %v889_v0  ;;  %965 = vst.msk [vmem:[#allocation2 + $0x90] sm:$0xff] %vm946_vm5, %v887_v18  ;;  %v5210_v0 = vld [vmem:[%s4303_s14 + $0x16a] sm:$0xff] }
 0x19a   : > { %706 = vrot.lane.b32.xlu1 %v5002_v51, %s4228_s16  ;;  %704 = vrot.lane.b32.xlu0 %v5005_v45, %s4228_s16  ;;  %v5141_v45 = vld [vmem:[%s4303_s14 + $0x15a] sm:$0xff] }
 0x19c   : > { %v1078_v19 = vpop.permute.xlu1 %1077  ;;  %v1076_v22 = vpop.permute.xlu0 %1075 }
 0x19d   : > { %1157 = vst.msk [vmem:[#allocation2 + $0x88] sm:$0xff] %vm1139_vm6, %v1078_v19  ;;  %1156 = vst.msk [vmem:[#allocation2 + $0x80] sm:$0xff] %vm1139_vm6, %v1076_v22 }
 0x19e   : > { %710 = vrot.lane.b32.xlu1 %v5058_v12, %s4228_s16  ;;  %708 = vrot.lane.b32.xlu0 %v5061_v13, %s4228_s16 }
 0x1a0   : > { %v1082_v23 = vpop.permute.xlu1 %1081  ;;  %v1080_v20 = vpop.permute.xlu0 %1079 }
 0x1a1   : > { %1159 = vst.msk [vmem:[#allocation2 + $0x98] sm:$0xff] %vm1139_vm6, %v1082_v23  ;;  %1158 = vst.msk [vmem:[#allocation2 + $0x90] sm:$0xff] %vm1139_vm6, %v1080_v20 }
 0x1a2   : > { %900 = vrot.lane.b32.xlu1 %v4728_v14, %s4229_s17  ;;  %898 = vrot.lane.b32.xlu0 %v4731_v15, %s4229_s17  ;;  %v4065_v28 = vpop.f32.mrb[0].mxu0 }
 0x1a3   : > { %v2114_v29 = vadd.f32 %v4065_v28, %v5096_v21  ;;  %v2105_v30 = vpop.f32.mrb[1].mxu0 }
 0x1a4   : > { %v2106_v31 = vadd.f32 %v5096_v21, %v2105_v30  ;;  %v1271_v32 = vpop.permute.xlu1 %1270  ;;  %v1269_v33 = vpop.permute.xlu0 %1268 }
 0x1a5   : > { %v2234_v34 = vmax.f32 %v2114_v29, 0.0  ;;  %1350 = vst.msk [vmem:[#allocation2 + $0x88] sm:$0xff] %vm1332_vm7, %v1271_v32  ;;  %1349 = vst.msk [vmem:[#allocation2 + $0x80] sm:$0xff] %vm1332_vm7, %v1269_v33  ;;  %v4066_v35 = vpop.f32.mrb[2].mxu0 }
 0x1a6   : > { %v2232_v36 = vmax.f32 %v2106_v31, 0.0  ;;  %v2117_v14 = vadd.f32 %v4066_v35, %v5096_v21  ;;  %v2108_v37 = vpop.f32.mrb[3].mxu0  ;;  %904 = vrot.lane.b32.xlu1 %v4808_v52, %s4229_s17  ;;  %902 = vrot.lane.b32.xlu0 %v4811_v44, %s4229_s17 }
 0x1a7   : > { %v2109_v15 = vadd.f32 %v5096_v21, %v2108_v37 }
 0x1a8   : > { %v2264_v40 = vmax.f32 %v2232_v36, %v2234_v34  ;;  %v2235_v41 = vmax.f32 %v2117_v14, 0.0  ;;  %v1275_v42 = vpop.permute.xlu1 %1274  ;;  %v1273_v43 = vpop.permute.xlu0 %1272  ;;  %v5244_v36 = vld [vmem:[%s4303_s14 + $0x188] sm:$0xff]  ;;  %v5247_v14 = vld [vmem:[%s4303_s14 + $0x180] sm:$0xff] }
 0x1a9   : > { %v2233_v46 = vmax.f32 %v2109_v15, 0.0  ;;  %1352 = vst.msk [vmem:[#allocation2 + $0x98] sm:$0xff] %vm1332_vm7, %v1275_v42  ;;  %1351 = vst.msk [vmem:[#allocation2 + $0x90] sm:$0xff] %vm1332_vm7, %v1273_v43 }
 0x1aa   : > { %2281 = vst.msk [vmem:[#allocation3] sm:$0xff] %vm2280_vm12, %v2264_v40  ;;  %1093 = vrot.lane.b32.xlu1 %v5032_v60, %s4230_s18  ;;  %1091 = vrot.lane.b32.xlu0 %v5035_v61, %s4230_s18 }
 0x1ab   : > { %v2265_v24 = vmax.f32 %v2233_v46, %v2235_v41 }
 0x1ac   : > { %v1465_v48 = vpop.permute.xlu1 %1464  ;;  %v1463_v49 = vpop.permute.xlu0 %1462 }
 0x1ad   : > { %2282 = vst.msk [vmem:[#allocation3 + $0x8] sm:$0xff] %vm2280_vm12, %v2265_v24 }
 0x1ae   : > { %1544 = vst.msk [vmem:[#allocation2 + $0x88] sm:$0xff] %vm1526_vm8, %v1465_v48  ;;  %1543 = vst.msk [vmem:[#allocation2 + $0x80] sm:$0xff] %vm1526_vm8, %v1463_v49  ;;  %1097 = vrot.lane.b32.xlu1 %v5122_v25, %s4230_s18  ;;  %1095 = vrot.lane.b32.xlu0 %v5125_v47, %s4230_s18 }
 0x1b0   : > { %v1469_v50 = vpop.permute.xlu1 %1468  ;;  %v1467_v51 = vpop.permute.xlu0 %1466 }
 0x1b1   : > { %1546 = vst.msk [vmem:[#allocation2 + $0x98] sm:$0xff] %vm1526_vm8, %v1469_v50  ;;  %1545 = vst.msk [vmem:[#allocation2 + $0x90] sm:$0xff] %vm1526_vm8, %v1467_v51  ;;  %v5266_v51 = vld [vmem:[%s4303_s14 + $0x189] sm:$0xff] }
 0x1b2   : > { %1286 = vrot.lane.b32.xlu1 %v5058_v12, %s4231_s19  ;;  %1284 = vrot.lane.b32.xlu0 %v5061_v13, %s4231_s19 }
 0x1b4   : > { %v2297_v54 = vld [vmem:[#allocation3] ss:$2 sm:$0xff]  ;;  %v2313_v55 = vld [vmem:[#allocation3 + $0x1] ss:$2 sm:$0xff]  ;;  %v1658_v56 = vpop.permute.xlu1 %1657  ;;  %v1656_v57 = vpop.permute.xlu0 %1655 }
 0x1b5   : > { %1737 = vst.msk [vmem:[#allocation2 + $0x88] sm:$0xff] %vm1719_vm9, %v1658_v56  ;;  %1736 = vst.msk [vmem:[#allocation2 + $0x80] sm:$0xff] %vm1719_vm9, %v1656_v57  ;;  %v2328_v58 = vmax.f32 %v2297_v54, %v2313_v55  ;;  %v4134_v57 = vld [vmem:[%s5874_s3 + $0x40] sm:$0xff]  }
 0x1b6   : > { %1290 = vrot.lane.b32.xlu1 %v5141_v45, %s4231_s19  ;;  %1288 = vrot.lane.b32.xlu0 %v5144_v53, %s4231_s19 }
 0x1b7   : > { %2364 = vst.msk [vmem:[#allocation4 + $0x11] sm:$0xff] %vm2280_vm12, %v2328_v58  ;;  %v5288_v58 = vld [vmem:[%s4303_s14 + $0x18a] sm:$0xff]  ;;  %3949 = vmatprep.subr.bf16.mxu1 %v4134_v57 }
 0x1b8   : > { %v1662_v59 = vpop.permute.xlu1 %1661  ;;  %v1660_v26 = vpop.permute.xlu0 %1659 }
 0x1b9   : > { %1739 = vst.msk [vmem:[#allocation2 + $0x98] sm:$0xff] %vm1719_vm9, %v1662_v59  ;;  %1738 = vst.msk [vmem:[#allocation2 + $0x90] sm:$0xff] %vm1719_vm9, %v1660_v26  ;;  %v5291_v59 = vld [vmem:[%s4303_s14 + $0x182] sm:$0xff] }
 0x1ba   : > { %1480 = vrot.lane.b32.xlu1 %v4808_v52, %s4232_s20  ;;  %1478 = vrot.lane.b32.xlu0 %v4811_v44, %s4232_s20  ;;  %v4135_v26 = vld [vmem:[%s5874_s3] sm:$0xff]  }
 0x1bb   : > { %3950 = vmatpush3.bf16.msra.mxu1 %v4135_v26 }
 0x1bc   : > { %v1851_v60 = vpop.permute.xlu1 %1850  ;;  %v1849_v61 = vpop.permute.xlu0 %1848 }
 0x1bd   : > { %1930 = vst.msk [vmem:[#allocation2 + $0x88] sm:$0xff] %vm1912_vm10, %v1851_v60  ;;  %1929 = vst.msk [vmem:[#allocation2 + $0x80] sm:$0xff] %vm1912_vm10, %v1849_v61 }
 0x1be   : > { %1484 = vrot.lane.b32.xlu1 %v4900_v7, %s4232_s20  ;;  %1482 = vrot.lane.b32.xlu0 %v4907_v4, %s4232_s20  ;;  %v5165_v27 = vld [vmem:[#allocation4 + $0x10] sm:$0xff] }
 0x1bf   : > { %v5167_v52 = vld [vmem:[#allocation4 + $0x12] sm:$0xff]  ;;  %2381 = vst.msk [vmem:[#allocation5 + $0x28] sm:$0xff] %vm2280_vm12, %v5165_v27 }
 0x1c0   : > { %2446 = vst.msk [vmem:[#allocation5 + $0x30] sm:$0xff] %vm2280_vm12, %v5167_v52  ;;  %v2501_v44 = vld [vmem:[#allocation4 + $0x11] sm:$0xff]  ;;  %v506_v62 = vpop.permute.xlu1 %505  ;;  %v504_v63 = vpop.permute.xlu0 %503 }
 0x1c1   : > { %2509 = vst.msk [vmem:[#allocation5 + $0x10] sm:$0xff] %vm2280_vm12, %v2501_v44 }
 0x1c2   : > { %581 = vst.msk [vmem:[#allocation2 + $0xa8] sm:$0xff] %vm559_vm3, %v506_v62  ;;  %580 = vst.msk [vmem:[#allocation2 + $0xa0] sm:$0xff] %vm559_vm3, %v504_v63  ;;  %1673 = vrot.lane.b32.xlu1 %v5122_v25, %s4233_s21  ;;  %1671 = vrot.lane.b32.xlu0 %v5125_v47, %s4233_s21 }
 0x1c4   : > { %v1855_v3 = vpop.permute.xlu1 %1854  ;;  %v1853_v6 = vpop.permute.xlu0 %1852  ;;  %v1961_v5 = vld [vmem:[#allocation2 + $0x80] sm:$0xff]  ;;  %v1962_v8 = vld [vmem:[#allocation2 + $0x88] sm:$0xff] }
 0x1c5   : > { %1932 = vst.msk [vmem:[#allocation2 + $0x98] sm:$0xff] %vm1912_vm10, %v1855_v3  ;;  %1931 = vst.msk [vmem:[#allocation2 + $0x90] sm:$0xff] %vm1912_vm10, %v1853_v6  ;;  %v1985_v9 = vpack.c.bf16 %v1962_v8, %v1961_v5  ;;  %v4138_v5 = vld [vmem:[%s5874_s3 + $0x50] sm:$0xff]  }
 0x1c6   : > { %1677 = vrot.lane.b32.xlu1 %v5181_v1, %s4233_s21  ;;  %1675 = vrot.lane.b32.xlu0 %v5184_v2, %s4233_s21  ;;  %v4139_v8 = vld [vmem:[%s5874_s3 + $0x10] sm:$0xff]  }
 0x1c7   : > { %4079 = vmatprep.mubr.msk.bf16.mxu0 %vm2015_vm11, %v1985_v9  ;;  %v3770_v9 = vld [vmem:[%s4303_s14 + $0x1a0] sm:$0xff] }
 0x1c8   : > { %v510_v10 = vpop.permute.xlu1 %509  ;;  %v508_v11 = vpop.permute.xlu0 %507 }
 0x1c9   : > { %583 = vst.msk [vmem:[#allocation2 + $0xb8] sm:$0xff] %vm559_vm3, %v510_v10  ;;  %582 = vst.msk [vmem:[#allocation2 + $0xb0] sm:$0xff] %vm559_vm3, %v508_v11  ;;  %v3769_v10 = vld [vmem:[%s4303_s14 + $0x198] sm:$0xff] }
 0x1ca   : > { %1866 = vrot.lane.b32.xlu1 %v5141_v45, %s4235_s26  ;;  %1864 = vrot.lane.b32.xlu0 %v5144_v53, %s4235_s26 }
 0x1cc   : > { %v699_v12 = vpop.permute.xlu1 %698  ;;  %v697_v13 = vpop.permute.xlu0 %696  ;;  %v1963_v38 = vld [vmem:[#allocation2 + $0x90] sm:$0xff]  ;;  %v1964_v39 = vld [vmem:[#allocation2 + $0x98] sm:$0xff] }
 0x1cd   : > { %774 = vst.msk [vmem:[#allocation2 + $0xa8] sm:$0xff] %vm752_vm4, %v699_v12  ;;  %773 = vst.msk [vmem:[#allocation2 + $0xa0] sm:$0xff] %vm752_vm4, %v697_v13  ;;  %v1986_v16 = vpack.c.bf16 %v1964_v39, %v1963_v38  ;;  %v4140_v38 = vld [vmem:[%s5874_s3 + $0x58] sm:$0xff]  }
 0x1ce   : > { %521 = vrot.lane.b32.xlu1 %v5122_v25, %s4227_s15  ;;  %519 = vrot.lane.b32.xlu0 %v5125_v47, %s4227_s15  ;;  %v4141_v39 = vld [vmem:[%s5874_s3 + $0x18] sm:$0xff]  }
 0x1cf   : > { %4080 = vmatmul.mubr.msk.bf16.gmra.mrb[16].mxu0 %vm2015_vm11, %v1986_v16 }
 0x1d0   : > { %v703_v18 = vpop.permute.xlu1 %702  ;;  %v701_v19 = vpop.permute.xlu0 %700 }
 0x1d1   : > { %776 = vst.msk [vmem:[#allocation2 + $0xb8] sm:$0xff] %vm752_vm4, %v703_v18  ;;  %775 = vst.msk [vmem:[#allocation2 + $0xb0] sm:$0xff] %vm752_vm4, %v701_v19 }
 0x1d2   : > { %1870 = vrot.lane.b32.xlu1 %v5207_v17, %s4235_s26  ;;  %1868 = vrot.lane.b32.xlu0 %v5210_v0, %s4235_s26 }
 0x1d4   : > { %v893_v22 = vpop.permute.xlu1 %892  ;;  %v891_v23 = vpop.permute.xlu0 %890 }
 0x1d5   : > { %968 = vst.msk [vmem:[#allocation2 + $0xa8] sm:$0xff] %vm946_vm5, %v893_v22  ;;  %967 = vst.msk [vmem:[#allocation2 + $0xa0] sm:$0xff] %vm946_vm5, %v891_v23  ;;  %v4142_v22 = vld [vmem:[%s5874_s3 + $0x60] sm:$0xff]  }
 0x1d6   : > { %525 = vrot.lane.b32.xlu1 %v5181_v1, %s4227_s15  ;;  %523 = vrot.lane.b32.xlu0 %v5184_v2, %s4227_s15  ;;  %v3802_v23 = vld [vmem:[%s4303_s14 + $0x1a1] sm:$0xff] }
 0x1d8   : > { %v897_v20 = vpop.permute.xlu1 %896  ;;  %v895_v28 = vpop.permute.xlu0 %894 }
 0x1d9   : > { %970 = vst.msk [vmem:[#allocation2 + $0xb8] sm:$0xff] %vm946_vm5, %v897_v20  ;;  %969 = vst.msk [vmem:[#allocation2 + $0xb0] sm:$0xff] %vm946_vm5, %v895_v28  ;;  %v3801_v20 = vld [vmem:[%s4303_s14 + $0x199] sm:$0xff] }
 0x1da   : > { %714 = vrot.lane.b32.xlu1 %v5141_v45, %s4228_s16  ;;  %712 = vrot.lane.b32.xlu0 %v5144_v53, %s4228_s16  ;;  %v5269_v45 = vld [vmem:[%s4303_s14 + $0x181] sm:$0xff] }
 0x1db   : > { %v4143_v28 = vld [vmem:[%s5874_s3 + $0x20] sm:$0xff]  }
 0x1dc   : > { %v1086_v29 = vpop.permute.xlu1 %1085  ;;  %v1084_v30 = vpop.permute.xlu0 %1083 }
 0x1dd   : > { %1161 = vst.msk [vmem:[#allocation2 + $0xa8] sm:$0xff] %vm1139_vm6, %v1086_v29  ;;  %1160 = vst.msk [vmem:[#allocation2 + $0xa0] sm:$0xff] %vm1139_vm6, %v1084_v30 }
 0x1de   : > { %718 = vrot.lane.b32.xlu1 %v5207_v17, %s4228_s16  ;;  %716 = vrot.lane.b32.xlu0 %v5210_v0, %s4228_s16 }
 0x1e0   : > { %v1090_v31 = vpop.permute.xlu1 %1089  ;;  %v1088_v32 = vpop.permute.xlu0 %1087 }
 0x1e1   : > { %1163 = vst.msk [vmem:[#allocation2 + $0xb8] sm:$0xff] %vm1139_vm6, %v1090_v31  ;;  %1162 = vst.msk [vmem:[#allocation2 + $0xb0] sm:$0xff] %vm1139_vm6, %v1088_v32 }
 0x1e2   : > { %908 = vrot.lane.b32.xlu1 %v4900_v7, %s4229_s17  ;;  %906 = vrot.lane.b32.xlu0 %v4907_v4, %s4229_s17  ;;  %v4069_v33 = vpop.f32.mrb[4].mxu0 }
 0x1e3   : > { %v2130_v34 = vadd.f32 %v4069_v33, %v5096_v21  ;;  %v2121_v35 = vpop.f32.mrb[5].mxu0  ;;  %v2437_v33 = vld [vmem:[#allocation4 + $0x2] sm:$0xff] }
 0x1e4   : > { %v2122_v37 = vadd.f32 %v5096_v21, %v2121_v35  ;;  %v1279_v15 = vpop.permute.xlu1 %1278  ;;  %v1277_v40 = vpop.permute.xlu0 %1276  ;;  %2445 = vst.msk [vmem:[#allocation5 + $0x8] sm:$0xff] %vm2280_vm12, %v2437_v33  ;;  %v4144_v35 = vld [vmem:[%s5874_s3 + $0x68] sm:$0xff]  }
 0x1e5   : > { %v2238_v41 = vmax.f32 %v2130_v34, 0.0  ;;  %1354 = vst.msk [vmem:[#allocation2 + $0xa8] sm:$0xff] %vm1332_vm7, %v1279_v15  ;;  %1353 = vst.msk [vmem:[#allocation2 + $0xa0] sm:$0xff] %vm1332_vm7, %v1277_v40  ;;  %v4070_v7 = vpop.f32.mrb[6].mxu0  ;;  %v4146_v40 = vld [vmem:[%s5874_s3 + $0x70] sm:$0xff]  }
 0x1e6   : > { %v2236_v42 = vmax.f32 %v2122_v37, 0.0  ;;  %v2133_v4 = vadd.f32 %v4070_v7, %v5096_v21  ;;  %v2124_v43 = vpop.f32.mrb[7].mxu0  ;;  %912 = vrot.lane.b32.xlu1 %v5244_v36, %s4229_s17  ;;  %910 = vrot.lane.b32.xlu0 %v5247_v14, %s4229_s17  ;;  %v3833_v7 = vld [vmem:[%s4303_s14 + $0x19a] sm:$0xff] }
 0x1e7   : > { %v2125_v46 = vadd.f32 %v5096_v21, %v2124_v43 }
 0x1e8   : > { %v2266_v24 = vmax.f32 %v2236_v42, %v2238_v41  ;;  %v2239_v25 = vmax.f32 %v2133_v4, 0.0  ;;  %v1283_v47 = vpop.permute.xlu1 %1282  ;;  %v1281_v48 = vpop.permute.xlu0 %1280  ;;  %v3834_v41 = vld [vmem:[%s4303_s14 + $0x1a2] sm:$0xff]  ;;  %v4147_v42 = vld [vmem:[%s5874_s3 + $0x30] sm:$0xff]  }
 0x1e9   : > { %v2237_v49 = vmax.f32 %v2125_v46, 0.0  ;;  %1356 = vst.msk [vmem:[#allocation2 + $0xb8] sm:$0xff] %vm1332_vm7, %v1283_v47  ;;  %1355 = vst.msk [vmem:[#allocation2 + $0xb0] sm:$0xff] %vm1332_vm7, %v1281_v48  ;;  %v4149_v48 = vld [vmem:[%s5874_s3 + $0x38] sm:$0xff]  }
 0x1ea   : > { %2283 = vst.msk [vmem:[#allocation3 + $0x10] sm:$0xff] %vm2280_vm12, %v2266_v24  ;;  %1101 = vrot.lane.b32.xlu1 %v5181_v1, %s4230_s18  ;;  %1099 = vrot.lane.b32.xlu0 %v5184_v2, %s4230_s18  ;;  %v4136_v1 = vld [vmem:[%s5874_s3 + $0x48] sm:$0xff]  }
 0x1eb   : > { %v2267_v50 = vmax.f32 %v2237_v49, %v2239_v25  ;;  %v4137_v2 = vld [vmem:[%s5874_s3 + $0x8] sm:$0xff]   ;;  %3951 = vmatprep.subr.bf16.mxu1 %v4136_v1  ;;  %v4148_v25 = vld [vmem:[%s5874_s3 + $0x78] sm:$0xff]  }
 0x1ec   : > { %v1473_v53 = vpop.permute.xlu1 %1472  ;;  %v1471_v54 = vpop.permute.xlu0 %1470  ;;  %3952 = vmatpush3.bf16.msra.mxu1 %v4137_v2 }
 0x1ed   : > { %2284 = vst.msk [vmem:[#allocation3 + $0x18] sm:$0xff] %vm2280_vm12, %v2267_v50  ;;  %3953 = vmatprep.subr.bf16.mxu1 %v4138_v5 }
 0x1ee   : > { %1548 = vst.msk [vmem:[#allocation2 + $0xa8] sm:$0xff] %vm1526_vm8, %v1473_v53  ;;  %1547 = vst.msk [vmem:[#allocation2 + $0xa0] sm:$0xff] %vm1526_vm8, %v1471_v54  ;;  %1105 = vrot.lane.b32.xlu1 %v5266_v51, %s4230_s18  ;;  %1103 = vrot.lane.b32.xlu0 %v5269_v45, %s4230_s18  ;;  %v2389_v54 = vld [vmem:[#allocation4 + $0x11] sm:$0xff] }
 0x1f0   : > { %v1477_v55 = vpop.permute.xlu1 %1476  ;;  %v1475_v56 = vpop.permute.xlu0 %1474  ;;  %3954 = vmatpush3.bf16.msra.mxu1 %v4139_v8 }
 0x1f1   : > { %1550 = vst.msk [vmem:[#allocation2 + $0xb8] sm:$0xff] %vm1526_vm8, %v1477_v55  ;;  %1549 = vst.msk [vmem:[#allocation2 + $0xb0] sm:$0xff] %vm1526_vm8, %v1475_v56  ;;  %3955 = vmatprep.subr.bf16.mxu1 %v4140_v38 }
 0x1f2   : > { %1294 = vrot.lane.b32.xlu1 %v5207_v17, %s4231_s19  ;;  %1292 = vrot.lane.b32.xlu0 %v5210_v0, %s4231_s19 }
 0x1f4   : > { %v2299_v60 = vld [vmem:[#allocation3 + $0x10] ss:$2 sm:$0xff]  ;;  %v2315_v61 = vld [vmem:[#allocation3 + $0x11] ss:$2 sm:$0xff]  ;;  %v1666_v44 = vpop.permute.xlu1 %1665  ;;  %v1664_v62 = vpop.permute.xlu0 %1663  ;;  %3956 = vmatpush3.bf16.msra.mxu1 %v4141_v39 }
 0x1f5   : > { %1741 = vst.msk [vmem:[#allocation2 + $0xa8] sm:$0xff] %vm1719_vm9, %v1666_v44  ;;  %1740 = vst.msk [vmem:[#allocation2 + $0xa0] sm:$0xff] %vm1719_vm9, %v1664_v62  ;;  %v2329_v63 = vmax.f32 %v2299_v60, %v2315_v61  ;;  %3957 = vmatprep.subr.bf16.mxu1 %v4142_v22 }
 0x1f6   : > { %1298 = vrot.lane.b32.xlu1 %v5288_v58, %s4231_s19  ;;  %1296 = vrot.lane.b32.xlu0 %v5291_v59, %s4231_s19 }
 0x1f7   : > { %2365 = vst.msk [vmem:[#allocation4 + $0x21] sm:$0xff] %vm2280_vm12, %v2329_v63 }
 0x1f8   : > { %v1670_v3 = vpop.permute.xlu1 %1669  ;;  %v1668_v6 = vpop.permute.xlu0 %1667  ;;  %3958 = vmatpush3.bf16.msra.mxu1 %v4143_v28 }
 0x1f9   : > { %1743 = vst.msk [vmem:[#allocation2 + $0xb8] sm:$0xff] %vm1719_vm9, %v1670_v3  ;;  %1742 = vst.msk [vmem:[#allocation2 + $0xb0] sm:$0xff] %vm1719_vm9, %v1668_v6  ;;  %3959 = vmatprep.subr.bf16.mxu1 %v4144_v35 }
 0x1fa   : > { %1488 = vrot.lane.b32.xlu1 %v5244_v36, %s4232_s20  ;;  %1486 = vrot.lane.b32.xlu0 %v5247_v14, %s4232_s20  ;;  %v4145_v36 = vld [vmem:[%s5874_s3 + $0x28] sm:$0xff]   ;;  %v2372_v14 = vld [vmem:[#allocation4] sm:$0xff] }
 0x1fb   : > { %2380 = vst.msk [vmem:[#allocation5] sm:$0xff] %vm2280_vm12, %v2372_v14 }
 0x1fc   : > { %v1859_v11 = vpop.permute.xlu1 %1858  ;;  %v1857_v12 = vpop.permute.xlu0 %1856  ;;  %3960 = vmatpush3.bf16.msra.mxu1 %v4145_v36 }
 0x1fd   : > { %1934 = vst.msk [vmem:[#allocation2 + $0xa8] sm:$0xff] %vm1912_vm10, %v1859_v11  ;;  %1933 = vst.msk [vmem:[#allocation2 + $0xa0] sm:$0xff] %vm1912_vm10, %v1857_v12  ;;  %3961 = vmatprep.subr.bf16.mxu1 %v4146_v40 }
 0x1fe   : > { %1492 = vrot.lane.b32.xlu1 %v3770_v9, %s4232_s20  ;;  %1490 = vrot.lane.b32.xlu0 %v3769_v10, %s4232_s20  ;;  %v5327_v13 = vld [vmem:[#allocation4 + $0x20] sm:$0xff] }
 0x1ff   : > { %v5335_v16 = vld [vmem:[#allocation4 + $0x22] sm:$0xff]  ;;  %2382 = vst.msk [vmem:[#allocation5 + $0x50] sm:$0xff] %vm2280_vm12, %v5327_v13 }
 0x200   : > { %v2566_v17 = vld [vmem:[#allocation4 + $0x20] sm:$0xff]  ;;  %v514_v0 = vpop.permute.xlu1 %513  ;;  %v512_v18 = vpop.permute.xlu0 %511  ;;  %2638 = vst.msk [vmem:[#allocation5 + $0x20] sm:$0xff] %vm2280_vm12, %v5335_v16  ;;  %2447 = vst.msk [vmem:[#allocation5 + $0x58] sm:$0xff] %vm2280_vm12, %v5335_v16  ;;  %3962 = vmatpush3.bf16.msra.mxu1 %v4147_v42  ;;  %v4153_v42 = vld [vmem:[%s5874_s3 + $0x118] sm:$0xff]  }
 0x201   : > { %2574 = vst.msk [vmem:[#allocation5 + $0x18] sm:$0xff] %vm2280_vm12, %v2566_v17  ;;  %v2502_v19 = vld [vmem:[#allocation4 + $0x21] sm:$0xff]  ;;  %3963 = vmatprep.subr.bf16.mxu1 %v4148_v25 }
 0x202   : > { %585 = vst.msk [vmem:[#allocation2 + $0xc8] sm:$0xff] %vm559_vm3, %v514_v0  ;;  %584 = vst.msk [vmem:[#allocation2 + $0xc0] sm:$0xff] %vm559_vm3, %v512_v18  ;;  %1681 = vrot.lane.b32.xlu1 %v5266_v51, %s4233_s21  ;;  %1679 = vrot.lane.b32.xlu0 %v5269_v45, %s4233_s21  ;;  %v2388_v51 = vld [vmem:[#allocation4 + $0x1] sm:$0xff] }
 0x203   : > { %2510 = vst.msk [vmem:[#allocation5 + $0x38] sm:$0xff] %vm2280_vm12, %v2502_v19 }
 0x204   : > { %v1863_v29 = vpop.permute.xlu1 %1862  ;;  %v1861_v30 = vpop.permute.xlu0 %1860  ;;  %v1965_v31 = vld [vmem:[#allocation2 + $0xa0] sm:$0xff]  ;;  %v1966_v32 = vld [vmem:[#allocation2 + $0xa8] sm:$0xff]  ;;  %3964 = vmatpush3.bf16.msra.mxu1 %v4149_v48 }
 0x205   : > { %1936 = vst.msk [vmem:[#allocation2 + $0xb8] sm:$0xff] %vm1912_vm10, %v1863_v29  ;;  %1935 = vst.msk [vmem:[#allocation2 + $0xb0] sm:$0xff] %vm1912_vm10, %v1861_v30  ;;  %v1987_v34 = vpack.c.bf16 %v1966_v32, %v1965_v31  ;;  %v4150_v29 = vld [vmem:[%s5874_s3 + $0x100] sm:$0xff]   ;;  %v4151_v30 = vld [vmem:[%s5874_s3 + $0x108] sm:$0xff]  }
 0x206   : > { %1685 = vrot.lane.b32.xlu1 %v3802_v23, %s4233_s21  ;;  %1683 = vrot.lane.b32.xlu0 %v3801_v20, %s4233_s21 }
 0x207   : > { %4083 = vmatprep.mubr.msk.bf16.mxu0 %vm2015_vm11, %v1987_v34  ;;  %4095 = vmatprep.subr.bf16.mxu0 %v4150_v29 }
 0x208   : > { %v518_v37 = vpop.permute.xlu1 %517  ;;  %v516_v15 = vpop.permute.xlu0 %515  ;;  %4096 = vmatpush3.bf16.msra.mxu0 %v4150_v29 }
 0x209   : > { %587 = vst.msk [vmem:[#allocation2 + $0xd8] sm:$0xff] %vm559_vm3, %v518_v37  ;;  %586 = vst.msk [vmem:[#allocation2 + $0xd0] sm:$0xff] %vm559_vm3, %v516_v15  ;;  %4097 = vmatprep.subr.bf16.mxu0 %v4151_v30  ;;  %v4152_v37 = vld [vmem:[%s5874_s3 + $0x110] sm:$0xff]  }
 0x20a   : > { %1874 = vrot.lane.b32.xlu1 %v5288_v58, %s4235_s26  ;;  %1872 = vrot.lane.b32.xlu0 %v5291_v59, %s4235_s26 }
 0x20c   : > { %v707_v4 = vpop.permute.xlu1 %706  ;;  %v705_v43 = vpop.permute.xlu0 %704  ;;  %v1967_v46 = vld [vmem:[#allocation2 + $0xb0] sm:$0xff]  ;;  %v1968_v24 = vld [vmem:[#allocation2 + $0xb8] sm:$0xff]  ;;  %4098 = vmatpush3.bf16.msra.mxu0 %v4151_v30 }
 0x20d   : > { %778 = vst.msk [vmem:[#allocation2 + $0xc8] sm:$0xff] %vm752_vm4, %v707_v4  ;;  %777 = vst.msk [vmem:[#allocation2 + $0xc0] sm:$0xff] %vm752_vm4, %v705_v43  ;;  %v1988_v47 = vpack.c.bf16 %v1968_v24, %v1967_v46  ;;  %4099 = vmatprep.subr.bf16.mxu0 %v4152_v37 }
 0x20e   : > { %1878 = vrot.lane.b32.xlu1 %v3834_v41, %s4235_s26  ;;  %1876 = vrot.lane.b32.xlu0 %v3833_v7, %s4235_s26  ;;  %v5458_v7 = vld [vmem:[#allocation4 + $0x21] sm:$0xff]  ;;  %s3930_s26 = sshll.u32 %s5882_s10, 4 }
 0x20f   : > { %4084 = vmatmul.mubr.msk.bf16.gmra.mrb[20].mxu0 %vm2015_vm11, %v1988_v47  ;;  %s332_s11 = scalar_lea.vmem %s5880_s9, %s3930_s26 }
 0x210   : > { %v711_v49 = vpop.permute.xlu1 %710  ;;  %v709_v50 = vpop.permute.xlu0 %708  ;;  %4100 = vmatpush3.bf16.msra.mxu0 %v4152_v37 }
 0x211   : > { %780 = vst.msk [vmem:[#allocation2 + $0xd8] sm:$0xff] %vm752_vm4, %v711_v49  ;;  %779 = vst.msk [vmem:[#allocation2 + $0xd0] sm:$0xff] %vm752_vm4, %v709_v50  ;;  %4101 = vmatprep.subr.bf16.mxu0 %v4153_v42 }
 0x212   : > { %2471 = vrot.lane.b32.xlu1 %v5327_v13, %s4237_s28  ;;  %2469 = vrot.lane.b32.xlu0 %v5165_v27, %s4237_s28 }
 0x214   : > { %v901_v45 = vpop.permute.xlu1 %900  ;;  %v899_v53 = vpop.permute.xlu0 %898  ;;  %4102 = vmatpush3.bf16.msra.mxu0 %v4153_v42 }
 0x215   : > { %972 = vst.msk [vmem:[#allocation2 + $0xc8] sm:$0xff] %vm946_vm5, %v901_v45  ;;  %971 = vst.msk [vmem:[#allocation2 + $0xc0] sm:$0xff] %vm946_vm5, %v899_v53 }
 0x216   : > { %2404 = vrot.lane.b32.xlu0 %v2388_v51, %s4237_s28  ;;  %2406 = vrot.lane.b32.xlu1 %v2389_v54, %s4237_s28 }
 0x218   : > { %v905_v55 = vpop.permute.xlu1 %904  ;;  %v903_v56 = vpop.permute.xlu0 %902 }
 0x219   : > { %974 = vst.msk [vmem:[#allocation2 + $0xd8] sm:$0xff] %vm946_vm5, %v905_v55  ;;  %973 = vst.msk [vmem:[#allocation2 + $0xd0] sm:$0xff] %vm946_vm5, %v903_v56 }
 0x21c   : > { %v1094_v57 = vpop.permute.xlu1 %1093  ;;  %v1092_v27 = vpop.permute.xlu0 %1091 }
 0x21d   : > { %1165 = vst.msk [vmem:[#allocation2 + $0xc8] sm:$0xff] %vm1139_vm6, %v1094_v57  ;;  %1164 = vst.msk [vmem:[#allocation2 + $0xc0] sm:$0xff] %vm1139_vm6, %v1092_v27 }
 0x220   : > { %v1098_v58 = vpop.permute.xlu1 %1097  ;;  %v1096_v59 = vpop.permute.xlu0 %1095 }
 0x221   : > { %1167 = vst.msk [vmem:[#allocation2 + $0xd8] sm:$0xff] %vm1139_vm6, %v1098_v58  ;;  %1166 = vst.msk [vmem:[#allocation2 + $0xd0] sm:$0xff] %vm1139_vm6, %v1096_v59 }
 0x222   : > { %v4073_v26 = vpop.f32.mrb[8].mxu0 }
 0x223   : > { %v2146_v60 = vadd.f32 %v4073_v26, %v5096_v21  ;;  %v2137_v61 = vpop.f32.mrb[9].mxu0 }
 0x224   : > { %v2138_v44 = vadd.f32 %v5096_v21, %v2137_v61  ;;  %v1287_v62 = vpop.permute.xlu1 %1286  ;;  %v1285_v63 = vpop.permute.xlu0 %1284 }
 0x225   : > { %v2242_v1 = vmax.f32 %v2146_v60, 0.0  ;;  %1358 = vst.msk [vmem:[#allocation2 + $0xc8] sm:$0xff] %vm1332_vm7, %v1287_v62  ;;  %1357 = vst.msk [vmem:[#allocation2 + $0xc0] sm:$0xff] %vm1332_vm7, %v1285_v63  ;;  %v4074_v2 = vpop.f32.mrb[10].mxu0 }
 0x226   : > { %v2240_v3 = vmax.f32 %v2138_v44, 0.0  ;;  %v2149_v6 = vadd.f32 %v4074_v2, %v5096_v21  ;;  %v2140_v5 = vpop.f32.mrb[11].mxu0 }
 0x227   : > { %v2141_v8 = vadd.f32 %v5096_v21, %v2140_v5 }
 0x228   : > { %v2268_v9 = vmax.f32 %v2240_v3, %v2242_v1  ;;  %v2243_v10 = vmax.f32 %v2149_v6, 0.0  ;;  %v1291_v11 = vpop.permute.xlu1 %1290  ;;  %v1289_v12 = vpop.permute.xlu0 %1288 }
 0x229   : > { %v2241_v13 = vmax.f32 %v2141_v8, 0.0  ;;  %1360 = vst.msk [vmem:[#allocation2 + $0xd8] sm:$0xff] %vm1332_vm7, %v1291_v11  ;;  %1359 = vst.msk [vmem:[#allocation2 + $0xd0] sm:$0xff] %vm1332_vm7, %v1289_v12 }
 0x22a   : > { %2285 = vst.msk [vmem:[#allocation3 + $0x20] sm:$0xff] %vm2280_vm12, %v2268_v9 }
 0x22b   : > { %v2269_v38 = vmax.f32 %v2241_v13, %v2243_v10 }
 0x22c   : > { %v1481_v39 = vpop.permute.xlu1 %1480  ;;  %v1479_v17 = vpop.permute.xlu0 %1478 }
 0x22d   : > { %2286 = vst.msk [vmem:[#allocation3 + $0x28] sm:$0xff] %vm2280_vm12, %v2269_v38 }
 0x22e   : > { %1552 = vst.msk [vmem:[#allocation2 + $0xc8] sm:$0xff] %vm1526_vm8, %v1481_v39  ;;  %1551 = vst.msk [vmem:[#allocation2 + $0xc0] sm:$0xff] %vm1526_vm8, %v1479_v17 }
 0x230   : > { %v1485_v0 = vpop.permute.xlu1 %1484  ;;  %v1483_v18 = vpop.permute.xlu0 %1482 }
 0x231   : > { %1554 = vst.msk [vmem:[#allocation2 + $0xd8] sm:$0xff] %vm1526_vm8, %v1485_v0  ;;  %1553 = vst.msk [vmem:[#allocation2 + $0xd0] sm:$0xff] %vm1526_vm8, %v1483_v18 }
 0x234   : > { %v2301_v19 = vld [vmem:[#allocation3 + $0x20] ss:$2 sm:$0xff]  ;;  %v2317_v22 = vld [vmem:[#allocation3 + $0x21] ss:$2 sm:$0xff]  ;;  %v1674_v23 = vpop.permute.xlu1 %1673  ;;  %v1672_v20 = vpop.permute.xlu0 %1671 }
 0x235   : > { %1745 = vst.msk [vmem:[#allocation2 + $0xc8] sm:$0xff] %vm1719_vm9, %v1674_v23  ;;  %1744 = vst.msk [vmem:[#allocation2 + $0xc0] sm:$0xff] %vm1719_vm9, %v1672_v20  ;;  %v2330_v28 = vmax.f32 %v2301_v19, %v2317_v22 }
 0x237   : > { %2366 = vst.msk [vmem:[#allocation4 + $0x31] sm:$0xff] %vm2280_vm12, %v2330_v28 }
 0x238   : > { %v1678_v31 = vpop.permute.xlu1 %1677  ;;  %v1676_v32 = vpop.permute.xlu0 %1675 }
 0x239   : > { %1747 = vst.msk [vmem:[#allocation2 + $0xd8] sm:$0xff] %vm1719_vm9, %v1678_v31  ;;  %1746 = vst.msk [vmem:[#allocation2 + $0xd0] sm:$0xff] %vm1719_vm9, %v1676_v32 }
 0x23c   : > { %v1867_v33 = vpop.permute.xlu1 %1866  ;;  %v1865_v34 = vpop.permute.xlu0 %1864 }
 0x23d   : > { %1938 = vst.msk [vmem:[#allocation2 + $0xc8] sm:$0xff] %vm1912_vm10, %v1867_v33  ;;  %1937 = vst.msk [vmem:[#allocation2 + $0xc0] sm:$0xff] %vm1912_vm10, %v1865_v34 }
 0x23e   : > { %v2455_v35 = vld [vmem:[#allocation4 + $0x30] sm:$0xff] }
 0x23f   : > { %v5440_v36 = vld [vmem:[#allocation4 + $0x31] sm:$0xff]  ;;  %2473 = vrot.lane.b32.xlu0 %v2455_v35, %s4237_s28  ;;  %2383 = vst.msk [vmem:[#allocation5 + $0x78] sm:$0xff] %vm2280_vm12, %v2455_v35 }
 0x240   : > { %v5442_v14 = vld [vmem:[#allocation4 + $0x32] sm:$0xff]  ;;  %2511 = vst.msk [vmem:[#allocation5 + $0x60] sm:$0xff] %vm2280_vm12, %v5440_v36  ;;  %v522_v40 = vpop.permute.xlu1 %521  ;;  %v520_v41 = vpop.permute.xlu0 %519 }
 0x241   : > { %2639 = vst.msk [vmem:[#allocation5 + $0x48] sm:$0xff] %vm2280_vm12, %v5442_v14  ;;  %2448 = vst.msk [vmem:[#allocation5 + $0x80] sm:$0xff] %vm2280_vm12, %v5442_v14  ;;  %v2567_v15 = vld [vmem:[#allocation4 + $0x30] sm:$0xff] }
 0x242   : > { %2575 = vst.msk [vmem:[#allocation5 + $0x40] sm:$0xff] %vm2280_vm12, %v2567_v15 }
 0x243   : > { %589 = vst.msk [vmem:[#allocation2 + $0xe8] sm:$0xff] %vm559_vm3, %v522_v40  ;;  %588 = vst.msk [vmem:[#allocation2 + $0xe0] sm:$0xff] %vm559_vm3, %v520_v41  ;;  %2408 = vrot.lane.b32.xlu0 %v5458_v7, %s4237_s28 }
 0x244   : > { %v1871_v4 = vpop.permute.xlu1 %1870  ;;  %v1869_v43 = vpop.permute.xlu0 %1868  ;;  %v1969_v46 = vld [vmem:[#allocation2 + $0xc0] sm:$0xff]  ;;  %v1970_v24 = vld [vmem:[#allocation2 + $0xc8] sm:$0xff] }
 0x245   : > { %1940 = vst.msk [vmem:[#allocation2 + $0xd8] sm:$0xff] %vm1912_vm10, %v1871_v4  ;;  %1939 = vst.msk [vmem:[#allocation2 + $0xd0] sm:$0xff] %vm1912_vm10, %v1869_v43  ;;  %v1989_v25 = vpack.c.bf16 %v1970_v24, %v1969_v46 }
 0x247   : > { %4087 = vmatprep.mubr.msk.bf16.mxu0 %vm2015_vm11, %v1989_v25 }
 0x248   : > { %v526_v47 = vpop.permute.xlu1 %525  ;;  %v524_v48 = vpop.permute.xlu0 %523  ;;  %v2655_v25 = vld [vmem:[#allocation5 + $0x48] sm:$0xff] }
 0x249   : > { %591 = vst.msk [vmem:[#allocation2 + $0xf8] sm:$0xff] %vm559_vm3, %v526_v47  ;;  %590 = vst.msk [vmem:[#allocation2 + $0xf0] sm:$0xff] %vm559_vm3, %v524_v48 }
 0x24c   : > { %v715_v49 = vpop.permute.xlu1 %714  ;;  %v713_v50 = vpop.permute.xlu0 %712  ;;  %v1971_v51 = vld [vmem:[#allocation2 + $0xd0] sm:$0xff]  ;;  %v1972_v45 = vld [vmem:[#allocation2 + $0xd8] sm:$0xff] }
 0x24d   : > { %782 = vst.msk [vmem:[#allocation2 + $0xe8] sm:$0xff] %vm752_vm4, %v715_v49  ;;  %781 = vst.msk [vmem:[#allocation2 + $0xe0] sm:$0xff] %vm752_vm4, %v713_v50  ;;  %v1990_v53 = vpack.c.bf16 %v1972_v45, %v1971_v51  ;;  %v2650_v45 = vld [vmem:[#allocation5 + $0x20] sm:$0xff] }
 0x24f   : > { %4088 = vmatmul.mubr.msk.bf16.gmra.mrb[24].mxu0 %vm2015_vm11, %v1990_v53  ;;  %v2690_v53 = vpack.c.bf16 %v2655_v25, %v2650_v45 }
 0x250   : > { %v719_v54 = vpop.permute.xlu1 %718  ;;  %v717_v55 = vpop.permute.xlu0 %716 }
 0x251   : > { %784 = vst.msk [vmem:[#allocation2 + $0xf8] sm:$0xff] %vm752_vm4, %v719_v54  ;;  %783 = vst.msk [vmem:[#allocation2 + $0xf0] sm:$0xff] %vm752_vm4, %v717_v55 }
 0x254   : > { %v909_v56 = vpop.permute.xlu1 %908  ;;  %v907_v57 = vpop.permute.xlu0 %906 }
 0x255   : > { %976 = vst.msk [vmem:[#allocation2 + $0xe8] sm:$0xff] %vm946_vm5, %v909_v56  ;;  %975 = vst.msk [vmem:[#allocation2 + $0xe0] sm:$0xff] %vm946_vm5, %v907_v57 }
 0x258   : > { %v913_v27 = vpop.permute.xlu1 %912  ;;  %v911_v58 = vpop.permute.xlu0 %910 }
 0x259   : > { %978 = vst.msk [vmem:[#allocation2 + $0xf8] sm:$0xff] %vm946_vm5, %v913_v27  ;;  %977 = vst.msk [vmem:[#allocation2 + $0xf0] sm:$0xff] %vm946_vm5, %v911_v58 }
 0x25c   : > { %v1102_v59 = vpop.permute.xlu1 %1101  ;;  %v1100_v26 = vpop.permute.xlu0 %1099 }
 0x25d   : > { %1169 = vst.msk [vmem:[#allocation2 + $0xe8] sm:$0xff] %vm1139_vm6, %v1102_v59  ;;  %1168 = vst.msk [vmem:[#allocation2 + $0xe0] sm:$0xff] %vm1139_vm6, %v1100_v26  ;;  %v5531_v26 = vld [vmem:[%s5873_s2] ss:$0 sm:$0xff] }
 0x260   : > { %v1106_v60 = vpop.permute.xlu1 %1105  ;;  %v1104_v61 = vpop.permute.xlu0 %1103 }
 0x261   : > { %1171 = vst.msk [vmem:[#allocation2 + $0xf8] sm:$0xff] %vm1139_vm6, %v1106_v60  ;;  %1170 = vst.msk [vmem:[#allocation2 + $0xf0] sm:$0xff] %vm1139_vm6, %v1104_v61 }
 0x262   : > { %v4077_v44 = vpop.f32.mrb[12].mxu0 }
 0x263   : > { %v2162_v62 = vadd.f32 %v4077_v44, %v5096_v21  ;;  %v2153_v63 = vpop.f32.mrb[13].mxu0 }
 0x264   : > { %v2154_v1 = vadd.f32 %v5096_v21, %v2153_v63  ;;  %v1295_v2 = vpop.permute.xlu1 %1294  ;;  %v1293_v3 = vpop.permute.xlu0 %1292 }
 0x265   : > { %v2246_v6 = vmax.f32 %v2162_v62, 0.0  ;;  %1362 = vst.msk [vmem:[#allocation2 + $0xe8] sm:$0xff] %vm1332_vm7, %v1295_v2  ;;  %1361 = vst.msk [vmem:[#allocation2 + $0xe0] sm:$0xff] %vm1332_vm7, %v1293_v3  ;;  %v4078_v5 = vpop.f32.mrb[14].mxu0 }
 0x266   : > { %v2244_v8 = vmax.f32 %v2154_v1, 0.0  ;;  %v2165_v9 = vadd.f32 %v4078_v5, %v5096_v21  ;;  %v2156_v10 = vpop.f32.mrb[15].mxu0 }
 0x267   : > { %v2157_v11 = vadd.f32 %v5096_v21, %v2156_v10 }
 0x268   : > { %v2270_v12 = vmax.f32 %v2244_v8, %v2246_v6  ;;  %v2247_v13 = vmax.f32 %v2165_v9, 0.0  ;;  %v1299_v38 = vpop.permute.xlu1 %1298  ;;  %v1297_v39 = vpop.permute.xlu0 %1296 }
 0x269   : > { %v2245_v17 = vmax.f32 %v2157_v11, 0.0  ;;  %1364 = vst.msk [vmem:[#allocation2 + $0xf8] sm:$0xff] %vm1332_vm7, %v1299_v38  ;;  %1363 = vst.msk [vmem:[#allocation2 + $0xf0] sm:$0xff] %vm1332_vm7, %v1297_v39 }
 0x26a   : > { %2287 = vst.msk [vmem:[#allocation3 + $0x30] sm:$0xff] %vm2280_vm12, %v2270_v12 }
 0x26b   : > { %v2271_v0 = vmax.f32 %v2245_v17, %v2247_v13 }
 0x26c   : > { %v1489_v18 = vpop.permute.xlu1 %1488  ;;  %v1487_v19 = vpop.permute.xlu0 %1486 }
 0x26d   : > { %2288 = vst.msk [vmem:[#allocation3 + $0x38] sm:$0xff] %vm2280_vm12, %v2271_v0 }
 0x26e   : > { %1556 = vst.msk [vmem:[#allocation2 + $0xe8] sm:$0xff] %vm1526_vm8, %v1489_v18  ;;  %1555 = vst.msk [vmem:[#allocation2 + $0xe0] sm:$0xff] %vm1526_vm8, %v1487_v19 }
 0x270   : > { %v1493_v21 = vpop.permute.xlu1 %1492  ;;  %v1491_v22 = vpop.permute.xlu0 %1490 }
 0x271   : > { %1558 = vst.msk [vmem:[#allocation2 + $0xf8] sm:$0xff] %vm1526_vm8, %v1493_v21  ;;  %1557 = vst.msk [vmem:[#allocation2 + $0xf0] sm:$0xff] %vm1526_vm8, %v1491_v22 }
 0x274   : > { %v2303_v23 = vld [vmem:[#allocation3 + $0x30] ss:$2 sm:$0xff]  ;;  %v2319_v20 = vld [vmem:[#allocation3 + $0x31] ss:$2 sm:$0xff]  ;;  %v1682_v28 = vpop.permute.xlu1 %1681  ;;  %v1680_v29 = vpop.permute.xlu0 %1679 }
 0x275   : > { %1749 = vst.msk [vmem:[#allocation2 + $0xe8] sm:$0xff] %vm1719_vm9, %v1682_v28  ;;  %1748 = vst.msk [vmem:[#allocation2 + $0xe0] sm:$0xff] %vm1719_vm9, %v1680_v29  ;;  %v2331_v30 = vmax.f32 %v2303_v23, %v2319_v20 }
 0x277   : > { %2367 = vst.msk [vmem:[#allocation4 + $0x41] sm:$0xff] %vm2280_vm12, %v2331_v30 }
 0x278   : > { %v1686_v31 = vpop.permute.xlu1 %1685  ;;  %v1684_v32 = vpop.permute.xlu0 %1683 }
 0x279   : > { %1751 = vst.msk [vmem:[#allocation2 + $0xf8] sm:$0xff] %vm1719_vm9, %v1686_v31  ;;  %1750 = vst.msk [vmem:[#allocation2 + $0xf0] sm:$0xff] %vm1719_vm9, %v1684_v32 }
 0x27c   : > { %v1875_v33 = vpop.permute.xlu1 %1874  ;;  %v1873_v34 = vpop.permute.xlu0 %1872 }
 0x27d   : > { %1942 = vst.msk [vmem:[#allocation2 + $0xe8] sm:$0xff] %vm1912_vm10, %v1875_v33  ;;  %1941 = vst.msk [vmem:[#allocation2 + $0xe0] sm:$0xff] %vm1912_vm10, %v1873_v34 }
 0x27e   : > { %v2456_v35 = vld [vmem:[#allocation4 + $0x40] sm:$0xff] }
 0x27f   : > { %v5504_v37 = vld [vmem:[#allocation4 + $0x41] sm:$0xff]  ;;  %2475 = vrot.lane.b32.xlu1 %v2456_v35, %s4237_s28  ;;  %2384 = vst.msk [vmem:[#allocation5 + $0xa0] sm:$0xff] %vm2280_vm12, %v2456_v35  ;;  %2576 = vst.msk [vmem:[#allocation5 + $0x68] sm:$0xff] %vm2280_vm12, %v2456_v35 }
 0x280   : > { %v5506_v15 = vld [vmem:[#allocation4 + $0x42] sm:$0xff]  ;;  %2512 = vst.msk [vmem:[#allocation5 + $0x88] sm:$0xff] %vm2280_vm12, %v5504_v37  ;;  %v1879_v40 = vpop.permute.xlu1 %1878  ;;  %v1877_v41 = vpop.permute.xlu0 %1876 }
 0x281   : > { %2640 = vst.msk [vmem:[#allocation5 + $0x70] sm:$0xff] %vm2280_vm12, %v5506_v15  ;;  %2449 = vst.msk [vmem:[#allocation5 + $0xa8] sm:$0xff] %vm2280_vm12, %v5506_v15 }
 0x282   : > { %1944 = vst.msk [vmem:[#allocation2 + $0xf8] sm:$0xff] %vm1912_vm10, %v1879_v40  ;;  %1943 = vst.msk [vmem:[#allocation2 + $0xf0] sm:$0xff] %vm1912_vm10, %v1877_v41 }
 0x283   : > { %2410 = vrot.lane.b32.xlu1 %v5440_v36, %s4237_s28 }
 0x284   : > { %v2472_v42 = vpop.permute.xlu1 %2471  ;;  %v2470_v4 = vpop.permute.xlu0 %2469  ;;  %v1973_v43 = vld [vmem:[#allocation2 + $0xe0] sm:$0xff]  ;;  %v1974_v46 = vld [vmem:[#allocation2 + $0xe8] sm:$0xff] }
 0x285   : > { %2494 = vst.msk [vmem:[#allocation5 + $0x30] sm:$0xff] %vm2428_vm15, %v2472_v42  ;;  %2493 = vst.msk [vmem:[#allocation5 + $0x8] sm:$0xff] %vm2428_vm15, %v2470_v4  ;;  %v1991_v24 = vpack.c.bf16 %v1974_v46, %v1973_v43 }
 0x287   : > { %4091 = vmatprep.mubr.msk.bf16.mxu0 %vm2015_vm11, %v1991_v24 }
 0x288   : > { %v2405_v47 = vpop.permute.xlu0 %2404  ;;  %v2407_v48 = vpop.permute.xlu1 %2406  ;;  %v2660_v19 = vld [vmem:[#allocation5 + $0x70] sm:$0xff] }
 0x289   : > { %v1975_v49 = vld [vmem:[#allocation2 + $0xf0] sm:$0xff]  ;;  %v1976_v50 = vld [vmem:[#allocation2 + $0xf8] sm:$0xff]  ;;  %2429 = vst.msk [vmem:[#allocation5] sm:$0xff] %vm2428_vm15, %v2405_v47  ;;  %2430 = vst.msk [vmem:[#allocation5 + $0x28] sm:$0xff] %vm2428_vm15, %v2407_v48 }
 0x28a   : > { %v1992_v51 = vpack.c.bf16 %v1976_v50, %v1975_v49 }
 0x28c   : > { %4092 = vmatmul.mubr.msk.bf16.gmra.mrb[28].mxu0 %vm2015_vm11, %v1992_v51  ;;  %v2647_v54 = vld [vmem:[#allocation5 + $0x8] sm:$0xff]  ;;  %v2652_v55 = vld [vmem:[#allocation5 + $0x30] sm:$0xff] }
 0x28d   : > { %4103 = vmatprep.mubr.msk.bf16.mxu0 %vm2280_vm12, %v2690_v53  ;;  %v2687_v56 = vpack.c.bf16 %v2652_v55, %v2647_v54  ;;  %v2637_v51 = vld [vmem:[#allocation4 + $0x92] sm:$0xff] }
 0x28e   : > { %2645 = vst.msk [vmem:[#allocation5 + $0x138] sm:$0xff] %vm2280_vm12, %v2637_v51 }
 0x28f   : > { %3045 = vmatprep.mubr.bf16.mxu1 %v2687_v56 }
 0x290   : > { %v2646_v57 = vld [vmem:[#allocation5] sm:$0xff]  ;;  %v2651_v27 = vld [vmem:[#allocation5 + $0x28] sm:$0xff] }
 0x291   : > { %v2686_v58 = vpack.c.bf16 %v2651_v27, %v2646_v57 }
 0x293   : > { %3046 = vmatmul.mubr.bf16.vlgmr.msra.gmra.mrb[0].mxu1 %v2686_v58 }
 0x2a2   : > { %v4081_v59 = vpop.f32.mrb[16].mxu0 }
 0x2a3   : > { %v2178_v60 = vadd.f32 %v5531_v26, %v4081_v59  ;;  %v2169_v61 = vpop.f32.mrb[17].mxu0 }
 0x2a4   : > { %v2170_v44 = vadd.f32 %v5531_v26, %v2169_v61  ;;  %v4082_v62 = vpop.f32.mrb[18].mxu0 }
 0x2a5   : > { %v2250_v63 = vmax.f32 %v2178_v60, 0.0  ;;  %v2181_v1 = vadd.f32 %v5531_v26, %v4082_v62  ;;  %v2172_v2 = vpop.f32.mrb[19].mxu0 }
 0x2a6   : > { %v2248_v3 = vmax.f32 %v2170_v44, 0.0  ;;  %v2173_v6 = vadd.f32 %v5531_v26, %v2172_v2 }
 0x2a7   : > { %v2251_v5 = vmax.f32 %v2181_v1, 0.0 }
 0x2a8   : > { %v2272_v8 = vmax.f32 %v2248_v3, %v2250_v63  ;;  %v2249_v9 = vmax.f32 %v2173_v6, 0.0 }
 0x2aa   : > { %2289 = vst.msk [vmem:[#allocation3 + $0x40] sm:$0xff] %vm2280_vm12, %v2272_v8  ;;  %v2273_v10 = vmax.f32 %v2249_v9, %v2251_v5 }
 0x2ac   : > { %2290 = vst.msk [vmem:[#allocation3 + $0x48] sm:$0xff] %vm2280_vm12, %v2273_v10 }
 0x2b1   : > { %v2474_v11 = vpop.permute.xlu0 %2473 }
 0x2b2   : > { %2495 = vst.msk [vmem:[#allocation5 + $0x58] sm:$0xff] %vm2428_vm15, %v2474_v11 }
 0x2b3   : > { %v2305_v12 = vld [vmem:[#allocation3 + $0x40] ss:$2 sm:$0xff]  ;;  %v2321_v13 = vld [vmem:[#allocation3 + $0x41] ss:$2 sm:$0xff] }
 0x2b4   : > { %v2332_v38 = vmax.f32 %v2305_v12, %v2321_v13 }
 0x2b5   : > { %v2409_v39 = vpop.permute.xlu0 %2408 }
 0x2b6   : > { %2431 = vst.msk [vmem:[#allocation5 + $0x50] sm:$0xff] %vm2428_vm15, %v2409_v39 }
 0x2b7   : > { %2368 = vst.msk [vmem:[#allocation4 + $0x51] sm:$0xff] %vm2280_vm12, %v2332_v38 }
 0x2b9   : > { %v2657_v48 = vld [vmem:[#allocation5 + $0x58] sm:$0xff] }
 0x2bd   : > { %v2656_v45 = vld [vmem:[#allocation5 + $0x50] sm:$0xff] }
 0x2be   : > { %v2457_v17 = vld [vmem:[#allocation4 + $0x50] sm:$0xff] }
 0x2bf   : > { %v5542_v0 = vld [vmem:[#allocation4 + $0x52] sm:$0xff]  ;;  %2477 = vrot.lane.b32.xlu0 %v2457_v17, %s4237_s28  ;;  %2385 = vst.msk [vmem:[#allocation5 + $0xc8] sm:$0xff] %vm2280_vm12, %v2457_v17  ;;  %2577 = vst.msk [vmem:[#allocation5 + $0x90] sm:$0xff] %vm2280_vm12, %v2457_v17 }
 0x2c0   : > { %2641 = vst.msk [vmem:[#allocation5 + $0x98] sm:$0xff] %vm2280_vm12, %v5542_v0  ;;  %v5547_v18 = vld [vmem:[#allocation4 + $0x51] sm:$0xff]  ;;  %2450 = vst.msk [vmem:[#allocation5 + $0xd0] sm:$0xff] %vm2280_vm12, %v5542_v0 }
 0x2c1   : > { %2513 = vst.msk [vmem:[#allocation5 + $0xb0] sm:$0xff] %vm2280_vm12, %v5547_v18 }
 0x2c3   : > { %2412 = vrot.lane.b32.xlu0 %v5504_v37, %s4237_s28 }
 0x2c7   : > { %v2665_v21 = vld [vmem:[#allocation5 + $0x98] sm:$0xff] }
 0x2c8   : > { %v2695_v22 = vpack.c.bf16 %v2665_v21, %v2660_v19 }
 0x2ca   : > { %4104 = vmatmul.mubr.msk.bf16.vlgmr.msra.gmra.mrb[32].mxu0 %vm2280_vm12, %v2695_v22 }
 0x2e2   : > { %v4085_v23 = vpop.f32.mrb[20].mxu0 }
 0x2e3   : > { %v2194_v20 = vadd.f32 %v5531_v26, %v4085_v23  ;;  %v2185_v28 = vpop.f32.mrb[21].mxu0  ;;  %v4154_v23 = vld [vmem:[%s5874_s3 + $0xc0] sm:$0xff]  }
 0x2e4   : > { %v2186_v29 = vadd.f32 %v5531_v26, %v2185_v28  ;;  %v4086_v30 = vpop.f32.mrb[22].mxu0  ;;  %3989 = vmatprep.subr.bf16.mxu1 %v4154_v23 }
 0x2e5   : > { %v2254_v31 = vmax.f32 %v2194_v20, 0.0  ;;  %v2197_v32 = vadd.f32 %v5531_v26, %v4086_v30  ;;  %v2188_v33 = vpop.f32.mrb[23].mxu0 }
 0x2e6   : > { %v2252_v34 = vmax.f32 %v2186_v29, 0.0  ;;  %v2189_v35 = vadd.f32 %v5531_v26, %v2188_v33 }
 0x2e7   : > { %v2255_v40 = vmax.f32 %v2197_v32, 0.0 }
 0x2e8   : > { %v2274_v41 = vmax.f32 %v2252_v34, %v2254_v31  ;;  %v2253_v42 = vmax.f32 %v2189_v35, 0.0 }
 0x2ea   : > { %2291 = vst.msk [vmem:[#allocation3 + $0x50] sm:$0xff] %vm2280_vm12, %v2274_v41  ;;  %v2275_v4 = vmax.f32 %v2253_v42, %v2255_v40 }
 0x2ec   : > { %2292 = vst.msk [vmem:[#allocation3 + $0x58] sm:$0xff] %vm2280_vm12, %v2275_v4 }
 0x2f1   : > { %v2476_v43 = vpop.permute.xlu1 %2475 }
 0x2f2   : > { %2496 = vst.msk [vmem:[#allocation5 + $0x80] sm:$0xff] %vm2428_vm15, %v2476_v43 }
 0x2f3   : > { %v2307_v46 = vld [vmem:[#allocation3 + $0x50] ss:$2 sm:$0xff]  ;;  %v2323_v24 = vld [vmem:[#allocation3 + $0x51] ss:$2 sm:$0xff] }
 0x2f4   : > { %v2333_v25 = vmax.f32 %v2307_v46, %v2323_v24 }
 0x2f5   : > { %v2411_v47 = vpop.permute.xlu1 %2410 }
 0x2f6   : > { %2432 = vst.msk [vmem:[#allocation5 + $0x78] sm:$0xff] %vm2428_vm15, %v2411_v47 }
 0x2f7   : > { %2369 = vst.msk [vmem:[#allocation4 + $0x61] sm:$0xff] %vm2280_vm12, %v2333_v25 }
 0x2f9   : > { %v2662_v49 = vld [vmem:[#allocation5 + $0x80] sm:$0xff] }
 0x2fa   : > { %v2692_v50 = vpack.c.bf16 %v2662_v49, %v2657_v48 }
 0x2fc   : > { %3053 = vmatprep.mubr.bf16.mxu1 %v2692_v50  ;;  %v4161_v50 = vld [vmem:[%s5874_s3 + $0x98] sm:$0xff]  }
 0x2fd   : > { %v2661_v54 = vld [vmem:[#allocation5 + $0x78] sm:$0xff] }
 0x2fe   : > { %v2458_v53 = vld [vmem:[#allocation4 + $0x60] sm:$0xff]  ;;  %v2691_v56 = vpack.c.bf16 %v2661_v54, %v2656_v45 }
 0x2ff   : > { %v2394_v55 = vld [vmem:[#allocation4 + $0x61] sm:$0xff]  ;;  %2479 = vrot.lane.b32.xlu1 %v2458_v53, %s4237_s28  ;;  %2386 = vst.msk [vmem:[#allocation5 + $0xf0] sm:$0xff] %vm2280_vm12, %v2458_v53  ;;  %2578 = vst.msk [vmem:[#allocation5 + $0xb8] sm:$0xff] %vm2280_vm12, %v2458_v53 }
 0x300   : > { %v5569_v57 = vld [vmem:[#allocation4 + $0x62] sm:$0xff]  ;;  %2514 = vst.msk [vmem:[#allocation5 + $0xd8] sm:$0xff] %vm2280_vm12, %v2394_v55  ;;  %3054 = vmatmul.mubr.bf16.gmra.mrb[4].mxu1 %v2691_v56 }
 0x301   : > { %2642 = vst.msk [vmem:[#allocation5 + $0xc0] sm:$0xff] %vm2280_vm12, %v5569_v57  ;;  %2451 = vst.msk [vmem:[#allocation5 + $0xf8] sm:$0xff] %vm2280_vm12, %v5569_v57  ;;  %v4163_v56 = vld [vmem:[%s5874_s3 + $0xa0] sm:$0xff]  }
 0x303   : > { %2414 = vrot.lane.b32.xlu1 %v5547_v18, %s4237_s28 }
 0x308   : > { %v2670_v19 = vld [vmem:[#allocation5 + $0xc0] sm:$0xff] }
 0x322   : > { %v4089_v27 = vpop.f32.mrb[24].mxu0 }
 0x323   : > { %v2210_v58 = vadd.f32 %v5531_v26, %v4089_v27  ;;  %v2201_v59 = vpop.f32.mrb[25].mxu0 }
 0x324   : > { %v2202_v60 = vadd.f32 %v5531_v26, %v2201_v59  ;;  %v4090_v61 = vpop.f32.mrb[26].mxu0  ;;  %v4165_v59 = vld [vmem:[%s5874_s3 + $0xa8] sm:$0xff]  }
 0x325   : > { %v2258_v44 = vmax.f32 %v2210_v58, 0.0  ;;  %v2213_v62 = vadd.f32 %v5531_v26, %v4090_v61  ;;  %v2204_v63 = vpop.f32.mrb[27].mxu0  ;;  %v4164_v58 = vld [vmem:[%s5874_s3 + $0xe8] sm:$0xff]  }
 0x326   : > { %v2256_v1 = vmax.f32 %v2202_v60, 0.0  ;;  %v2205_v2 = vadd.f32 %v5531_v26, %v2204_v63 }
 0x327   : > { %v2259_v3 = vmax.f32 %v2213_v62, 0.0 }
 0x328   : > { %v2276_v6 = vmax.f32 %v2256_v1, %v2258_v44  ;;  %v2257_v5 = vmax.f32 %v2205_v2, 0.0  ;;  %v4166_v2 = vld [vmem:[%s5874_s3 + $0xf0] sm:$0xff]  }
 0x32a   : > { %2293 = vst.msk [vmem:[#allocation3 + $0x60] sm:$0xff] %vm2280_vm12, %v2276_v6  ;;  %v2277_v8 = vmax.f32 %v2257_v5, %v2259_v3  ;;  %v4167_v3 = vld [vmem:[%s5874_s3 + $0xb0] sm:$0xff]  }
 0x32c   : > { %2294 = vst.msk [vmem:[#allocation3 + $0x68] sm:$0xff] %vm2280_vm12, %v2277_v8 }
 0x331   : > { %v2478_v9 = vpop.permute.xlu0 %2477 }
 0x332   : > { %2497 = vst.msk [vmem:[#allocation5 + $0xa8] sm:$0xff] %vm2428_vm15, %v2478_v9  ;;  %v4168_v9 = vld [vmem:[%s5874_s3 + $0xf8] sm:$0xff]  }
 0x333   : > { %v2309_v10 = vld [vmem:[#allocation3 + $0x60] ss:$2 sm:$0xff]  ;;  %v2325_v11 = vld [vmem:[#allocation3 + $0x61] ss:$2 sm:$0xff] }
 0x334   : > { %v2334_v13 = vmax.f32 %v2309_v10, %v2325_v11  ;;  %v4169_v10 = vld [vmem:[%s5874_s3 + $0xb8] sm:$0xff]  }
 0x335   : > { %v2413_v12 = vpop.permute.xlu0 %2412  ;;  %v2685_v11 = vld [vmem:[#allocation5 + $0x138] sm:$0xff] }
 0x336   : > { %2433 = vst.msk [vmem:[#allocation5 + $0xa0] sm:$0xff] %vm2428_vm15, %v2413_v12 }
 0x337   : > { %2370 = vst.msk [vmem:[#allocation4 + $0x71] sm:$0xff] %vm2280_vm12, %v2334_v13 }
 0x339   : > { %v2667_v60 = vld [vmem:[#allocation5 + $0xa8] sm:$0xff] }
 0x33d   : > { %v2666_v6 = vld [vmem:[#allocation5 + $0xa0] sm:$0xff] }
 0x33e   : > { %v2459_v38 = vld [vmem:[#allocation4 + $0x70] sm:$0xff] }
 0x33f   : > { %v5589_v39 = vld [vmem:[#allocation4 + $0x72] sm:$0xff]  ;;  %2481 = vrot.lane.b32.xlu0 %v2459_v38, %s4237_s28  ;;  %2387 = vst.msk [vmem:[#allocation5 + $0x118] sm:$0xff] %vm2280_vm12, %v2459_v38  ;;  %2579 = vst.msk [vmem:[#allocation5 + $0xe0] sm:$0xff] %vm2280_vm12, %v2459_v38 }
 0x340   : > { %v5591_v17 = vld [vmem:[#allocation4 + $0x71] sm:$0xff]  ;;  %2643 = vst.msk [vmem:[#allocation5 + $0xe8] sm:$0xff] %vm2280_vm12, %v5589_v39  ;;  %2452 = vst.msk [vmem:[#allocation5 + $0x120] sm:$0xff] %vm2280_vm12, %v5589_v39 }
 0x341   : > { %2515 = vst.msk [vmem:[#allocation5 + $0x100] sm:$0xff] %vm2280_vm12, %v5591_v17  ;;  %v2573_v38 = vld [vmem:[#allocation4 + $0x90] sm:$0xff] }
 0x342   : > { %2581 = vst.msk [vmem:[#allocation5 + $0x130] sm:$0xff] %vm2280_vm12, %v2573_v38 }
 0x343   : > { %2416 = vrot.lane.b32.xlu0 %v2394_v55, %s4237_s28 }
 0x347   : > { %v2675_v21 = vld [vmem:[#allocation5 + $0xe8] sm:$0xff]  ;;  %2598 = vrot.lane.b32.xlu0 %v5458_v7, %s4237_s28  ;;  %v4155_v7 = vld [vmem:[%s5874_s3 + $0x80] sm:$0xff]  }
 0x348   : > { %v2700_v22 = vpack.c.bf16 %v2675_v21, %v2670_v19  ;;  %3990 = vmatpush3.bf16.msra.mxu1 %v4155_v7 }
 0x34a   : > { %4107 = vmatprep.mubr.msk.bf16.mxu0 %vm2280_vm12, %v2700_v22 }
 0x34b   : > { %2533 = vrot.lane.b32.xlu0 %v5167_v52, %s4237_s28  ;;  %v4156_v52 = vld [vmem:[%s5874_s3 + $0xc8] sm:$0xff]  }
 0x34c   : > { %3991 = vmatprep.subr.bf16.mxu1 %v4156_v52 }
 0x34f   : > { %2602 = vrot.lane.b32.xlu0 %v5504_v37, %s4237_s28  ;;  %v4158_v37 = vld [vmem:[%s5874_s3 + $0xd0] sm:$0xff]  }
 0x353   : > { %2537 = vrot.lane.b32.xlu0 %v5442_v14, %s4237_s28  ;;  %v4157_v14 = vld [vmem:[%s5874_s3 + $0x88] sm:$0xff]  }
 0x354   : > { %3992 = vmatpush3.bf16.msra.mxu1 %v4157_v14 }
 0x355   : > { %3993 = vmatprep.subr.bf16.mxu1 %v4158_v37 }
 0x357   : > { %2606 = vrot.lane.b32.xlu0 %v2394_v55, %s4237_s28  ;;  %v4162_v55 = vld [vmem:[%s5874_s3 + $0xe0] sm:$0xff]  }
 0x35b   : > { %2541 = vrot.lane.b32.xlu0 %v5542_v0, %s4237_s28  ;;  %v4159_v0 = vld [vmem:[%s5874_s3 + $0x90] sm:$0xff]  }
 0x35c   : > { %3994 = vmatpush3.bf16.msra.mxu1 %v4159_v0 }
 0x35f   : > { %v4093_v20 = vpop.f32.mrb[28].mxu0 }
 0x360   : > { %v2226_v28 = vadd.f32 %v5531_v26, %v4093_v20  ;;  %v2217_v29 = vpop.f32.mrb[29].mxu0 }
 0x361   : > { %v2218_v30 = vadd.f32 %v5531_v26, %v2217_v29  ;;  %v4094_v31 = vpop.f32.mrb[30].mxu0 }
 0x362   : > { %v2262_v32 = vmax.f32 %v2226_v28, 0.0  ;;  %v2229_v33 = vadd.f32 %v5531_v26, %v4094_v31  ;;  %v2220_v34 = vpop.f32.mrb[31].mxu0 }
 0x363   : > { %v2260_v35 = vmax.f32 %v2218_v30, 0.0  ;;  %v2221_v40 = vadd.f32 %v5531_v26, %v2220_v34  ;;  %v4160_v26 = vld [vmem:[%s5874_s3 + $0xd8] sm:$0xff]  }
 0x364   : > { %v2263_v41 = vmax.f32 %v2229_v33, 0.0  ;;  %3995 = vmatprep.subr.bf16.mxu1 %v4160_v26 }
 0x365   : > { %v2278_v42 = vmax.f32 %v2260_v35, %v2262_v32  ;;  %v2261_v4 = vmax.f32 %v2221_v40, 0.0  ;;  %3996 = vmatpush3.bf16.msra.mxu1 %v4161_v50 }
 0x366   : > { %v3965_v46 = vpop.f32.mrb[0].mxu1  ;;  %3997 = vmatprep.subr.bf16.mxu1 %v4162_v55 }
 0x367   : > { %2295 = vst.msk [vmem:[#allocation3 + $0x70] sm:$0xff] %vm2280_vm12, %v2278_v42  ;;  %v2279_v43 = vmax.f32 %v2261_v4, %v2263_v41  ;;  %v3966_v24 = vpop.f32.mrb[1].mxu1 }
 0x368   : > { %v5639_v25 = vadd.f32 %v3966_v24, %v3965_v46  ;;  %v3968_v47 = vpop.f32.mrb[2].mxu1 }
 0x369   : > { %2296 = vst.msk [vmem:[#allocation3 + $0x78] sm:$0xff] %vm2280_vm12, %v2279_v43  ;;  %v3969_v48 = vpop.f32.mrb[3].mxu1  ;;  %3998 = vmatpush3.bf16.msra.mxu1 %v4163_v56 }
 0x36a   : > { %v5641_v49 = vadd.f32 %v3969_v48, %v3968_v47  ;;  %3999 = vmatprep.subr.bf16.mxu1 %v4164_v58 }
 0x36d   : > { %4000 = vmatpush3.bf16.msra.mxu1 %v4165_v59 }
 0x36e   : > { %4001 = vmatprep.subr.bf16.mxu1 %v4166_v2 }
 0x370   : > { %v2311_v51 = vld [vmem:[#allocation3 + $0x70] ss:$2 sm:$0xff]  ;;  %v2327_v45 = vld [vmem:[#allocation3 + $0x71] ss:$2 sm:$0xff] }
 0x371   : > { %v2480_v53 = vpop.permute.xlu1 %2479  ;;  %v2335_v54 = vmax.f32 %v2311_v51, %v2327_v45  ;;  %4002 = vmatpush3.bf16.msra.mxu1 %v4167_v3 }
 0x372   : > { %2498 = vst.msk [vmem:[#allocation5 + $0xd0] sm:$0xff] %vm2428_vm15, %v2480_v53  ;;  %4003 = vmatprep.subr.bf16.mxu1 %v4168_v9 }
 0x373   : > { %2371 = vst.msk [vmem:[#allocation4 + $0x81] sm:$0xff] %vm2280_vm12, %v2335_v54 }
 0x375   : > { %v2415_v27 = vpop.permute.xlu1 %2414  ;;  %4004 = vmatpush3.bf16.msra.mxu1 %v4169_v10 }
 0x376   : > { %2434 = vst.msk [vmem:[#allocation5 + $0xc8] sm:$0xff] %vm2428_vm15, %v2415_v27 }
 0x379   : > { %v2672_v61 = vld [vmem:[#allocation5 + $0xd0] sm:$0xff] }
 0x37a   : > { %v2588_v44 = vld [vmem:[#allocation4 + $0x81] sm:$0xff]  ;;  %v2697_v63 = vpack.c.bf16 %v2672_v61, %v2667_v60 }
 0x37b   : > { %v2460_v62 = vld [vmem:[#allocation4 + $0x80] sm:$0xff]  ;;  %2610 = vrot.lane.b32.xlu0 %v2588_v44, %s4237_s28  ;;  %2516 = vst.msk [vmem:[#allocation5 + $0x128] sm:$0xff] %vm2280_vm12, %v2588_v44 }
 0x37c   : > { %v2636_v1 = vld [vmem:[#allocation4 + $0x82] sm:$0xff]  ;;  %2483 = vrot.lane.b32.xlu1 %v2460_v62, %s4237_s28  ;;  %2580 = vst.msk [vmem:[#allocation5 + $0x108] sm:$0xff] %vm2280_vm12, %v2460_v62  ;;  %3061 = vmatprep.mubr.bf16.mxu1 %v2697_v63 }
 0x37d   : > { %2644 = vst.msk [vmem:[#allocation5 + $0x110] sm:$0xff] %vm2280_vm12, %v2636_v1  ;;  %v2671_v5 = vld [vmem:[#allocation5 + $0xc8] sm:$0xff] }
 0x37e   : > { %v2696_v8 = vpack.c.bf16 %v2671_v5, %v2666_v6 }
 0x37f   : > { %2545 = vrot.lane.b32.xlu0 %v5589_v39, %s4237_s28 }
 0x380   : > { %2418 = vrot.lane.b32.xlu1 %v5591_v17, %s4237_s28  ;;  %3062 = vmatmul.mubr.bf16.gmra.mrb[8].mxu1 %v2696_v8 }
 0x384   : > { %v2680_v12 = vld [vmem:[#allocation5 + $0x110] sm:$0xff]  ;;  %2600 = vrot.lane.b32.xlu1 %v5440_v36, %s4237_s28 }
 0x385   : > { %v2705_v13 = vpack.c.bf16 %v2685_v11, %v2680_v12  ;;  %v2589_v36 = vld [vmem:[#allocation4 + $0x91] sm:$0xff] }
 0x387   : > { %4108 = vmatmul.mubr.msk.bf16.gmra.mrb[36].mxu0 %vm2280_vm12, %v2705_v13 }
 0x388   : > { %2535 = vrot.lane.b32.xlu1 %v5335_v16, %s4237_s28 }
 0x38c   : > { %2604 = vrot.lane.b32.xlu1 %v5547_v18, %s4237_s28 }
 0x390   : > { %2539 = vrot.lane.b32.xlu1 %v5506_v15, %s4237_s28 }
 0x394   : > { %2608 = vrot.lane.b32.xlu1 %v5591_v17, %s4237_s28 }
 0x398   : > { %2543 = vrot.lane.b32.xlu1 %v5569_v57, %s4237_s28 }
 0x39c   : > { %2612 = vrot.lane.b32.xlu1 %v2589_v36, %s4237_s28 }
 0x39d   : > { %v5700_v39 = vpop.f32.mrb[32].mxu0 }
 0x39e   : > { %v5702_v16 = vpop.f32.mrb[33].mxu0 }
 0x39f   : > { %v5704_v18 = vpop.f32.mrb[34].mxu0 }
 0x3a0   : > { %v5706_v19 = vpop.f32.mrb[35].mxu0  ;;  %2547 = vrot.lane.b32.xlu1 %v2636_v1, %s4237_s28 }
 0x3b1   : > { %v2482_v15 = vpop.permute.xlu0 %2481 }
 0x3b2   : > { %2499 = vst.msk [vmem:[#allocation5 + $0xf8] sm:$0xff] %vm2428_vm15, %v2482_v15 }
 0x3b5   : > { %v2417_v17 = vpop.permute.xlu0 %2416 }
 0x3b6   : > { %2435 = vst.msk [vmem:[#allocation5 + $0xf0] sm:$0xff] %vm2428_vm15, %v2417_v17 }
 0x3b9   : > { %v2599_v57 = vpop.permute.xlu0 %2598  ;;  %v2677_v35 = vld [vmem:[#allocation5 + $0xf8] sm:$0xff] }
 0x3ba   : > { %2622 = vst.msk [vmem:[#allocation5 + $0x18] sm:$0xff] %vm2428_vm15, %v2599_v57 }
 0x3bd   : > { %v2534_v21 = vpop.permute.xlu0 %2533  ;;  %v2676_v4 = vld [vmem:[#allocation5 + $0xf0] sm:$0xff] }
 0x3be   : > { %2557 = vst.msk [vmem:[#allocation5 + $0x10] sm:$0xff] %vm2428_vm15, %v2534_v21 }
 0x3c1   : > { %v2603_v22 = vpop.permute.xlu0 %2602  ;;  %v2649_v47 = vld [vmem:[#allocation5 + $0x18] sm:$0xff] }
 0x3c2   : > { %2624 = vst.msk [vmem:[#allocation5 + $0x68] sm:$0xff] %vm2428_vm15, %v2603_v22 }
 0x3c5   : > { %v2538_v23 = vpop.permute.xlu0 %2537  ;;  %v2648_v51 = vld [vmem:[#allocation5 + $0x10] sm:$0xff] }
 0x3c6   : > { %2559 = vst.msk [vmem:[#allocation5 + $0x60] sm:$0xff] %vm2428_vm15, %v2538_v23 }
 0x3c9   : > { %v2607_v7 = vpop.permute.xlu0 %2606  ;;  %v2659_v55 = vld [vmem:[#allocation5 + $0x68] sm:$0xff] }
 0x3ca   : > { %2626 = vst.msk [vmem:[#allocation5 + $0xb8] sm:$0xff] %vm2428_vm15, %v2607_v7 }
 0x3cd   : > { %v2542_v52 = vpop.permute.xlu0 %2541  ;;  %v2658_v59 = vld [vmem:[#allocation5 + $0x60] sm:$0xff] }
 0x3ce   : > { %2561 = vst.msk [vmem:[#allocation5 + $0xb0] sm:$0xff] %vm2428_vm15, %v2542_v52 }
 0x3d1   : > { %v2669_v62 = vld [vmem:[#allocation5 + $0xb8] sm:$0xff] }
 0x3d3   : > { %v3971_v14 = vpop.f32.mrb[4].mxu1 }
 0x3d4   : > { %v3972_v37 = vpop.f32.mrb[5].mxu1 }
 0x3d5   : > { %v5717_v20 = vadd.f32 %v3972_v37, %v3971_v14  ;;  %v3974_v28 = vpop.f32.mrb[6].mxu1  ;;  %v2668_v3 = vld [vmem:[#allocation5 + $0xb0] sm:$0xff]  ;;  %v4172_v14 = vld [vmem:[%s5876_s5 + $0x4] ss:$8 sps:$4 sm:$0xff]   ;;  %v4170_v37 = vld [vmem:[%s5876_s5] ss:$8 sps:$4 sm:$0xff]  }
 0x3d6   : > { %v3975_v29 = vpop.f32.mrb[7].mxu1  ;;  %3342 = vmatprep.subr.bf16.mxu1 %v4172_v14 }
 0x3d7   : > { %v5719_v30 = vadd.f32 %v3975_v29, %v3974_v28  ;;  %v4175_v28 = vld [vmem:[%s5876_s5 + $0x14] ss:$8 sps:$4 sm:$0xff]   ;;  %v4173_v29 = vld [vmem:[%s5876_s5 + $0x10] ss:$8 sps:$4 sm:$0xff]  }
 0x3ed   : > { %v2611_v31 = vpop.permute.xlu0 %2610 }
 0x3ee   : > { %v2484_v0 = vpop.permute.xlu1 %2483  ;;  %2628 = vst.msk [vmem:[#allocation5 + $0x108] sm:$0xff] %vm2428_vm15, %v2611_v31  ;;  %v4178_v31 = vld [vmem:[%s5876_s5 + $0x24] ss:$8 sps:$4 sm:$0xff]  }
 0x3ef   : > { %2500 = vst.msk [vmem:[#allocation5 + $0x120] sm:$0xff] %vm2428_vm15, %v2484_v0  ;;  %v4176_v0 = vld [vmem:[%s5876_s5 + $0x20] ss:$8 sps:$4 sm:$0xff]  }
 0x3f1   : > { %v2546_v32 = vpop.permute.xlu0 %2545 }
 0x3f2   : > { %v2419_v33 = vpop.permute.xlu1 %2418  ;;  %2563 = vst.msk [vmem:[#allocation5 + $0x100] sm:$0xff] %vm2428_vm15, %v2546_v32  ;;  %v4181_v32 = vld [vmem:[%s5876_s5 + $0x34] ss:$8 sps:$4 sm:$0xff]  }
 0x3f3   : > { %2436 = vst.msk [vmem:[#allocation5 + $0x118] sm:$0xff] %vm2428_vm15, %v2419_v33  ;;  %v4179_v33 = vld [vmem:[%s5876_s5 + $0x30] ss:$8 sps:$4 sm:$0xff]  }
 0x3f5   : > { %v2679_v8 = vld [vmem:[#allocation5 + $0x108] sm:$0xff] }
 0x3f6   : > { %v2601_v34 = vpop.permute.xlu1 %2600  ;;  %v2682_v40 = vld [vmem:[#allocation5 + $0x120] sm:$0xff] }
 0x3f7   : > { %2623 = vst.msk [vmem:[#allocation5 + $0x40] sm:$0xff] %vm2428_vm15, %v2601_v34  ;;  %v2702_v41 = vpack.c.bf16 %v2682_v40, %v2677_v35  ;;  %v4184_v34 = vld [vmem:[%s5876_s5 + $0x44] ss:$8 sps:$4 sm:$0xff]   ;;  %v4182_v35 = vld [vmem:[%s5876_s5 + $0x40] ss:$8 sps:$4 sm:$0xff]  }
 0x3f8   : > { %v4185_v40 = vld [vmem:[%s5876_s5 + $0x50] ss:$8 sps:$4 sm:$0xff]  }
 0x3f9   : > { %3069 = vmatprep.mubr.bf16.mxu1 %v2702_v41  ;;  %v2678_v11 = vld [vmem:[#allocation5 + $0x100] sm:$0xff]  ;;  %v4187_v41 = vld [vmem:[%s5876_s5 + $0x54] ss:$8 sps:$4 sm:$0xff]  }
 0x3fa   : > { %v2536_v42 = vpop.permute.xlu1 %2535  ;;  %v2681_v43 = vld [vmem:[#allocation5 + $0x118] sm:$0xff] }
 0x3fb   : > { %2558 = vst.msk [vmem:[#allocation5 + $0x38] sm:$0xff] %vm2428_vm15, %v2536_v42  ;;  %v2701_v46 = vpack.c.bf16 %v2681_v43, %v2676_v4  ;;  %v4190_v42 = vld [vmem:[%s5876_s5 + $0x64] ss:$8 sps:$4 sm:$0xff]   ;;  %v4238_v4 = vmov 0   ;;  %v4188_v43 = vld [vmem:[%s5876_s5 + $0x60] ss:$8 sps:$4 sm:$0xff]  }
 0x3fd   : > { %3070 = vmatmul.mubr.bf16.gmra.mrb[12].mxu1 %v2701_v46  ;;  %v4193_v46 = vld [vmem:[%s5876_s5 + $0x74] ss:$8 sps:$4 sm:$0xff]  }
 0x3fe   : > { %v2605_v24 = vpop.permute.xlu1 %2604  ;;  %v2654_v48 = vld [vmem:[#allocation5 + $0x40] sm:$0xff] }
 0x3ff   : > { %2625 = vst.msk [vmem:[#allocation5 + $0x90] sm:$0xff] %vm2428_vm15, %v2605_v24  ;;  %v2689_v26 = vpack.c.bf16 %v2654_v48, %v2649_v47  ;;  %v4191_v24 = vld [vmem:[%s5876_s5 + $0x70] ss:$8 sps:$4 sm:$0xff]   ;;  %v4194_v47 = vld [vmem:[%s5878_s7 + $0x40] sm:$0xff]  }
 0x400   : > { %v4195_v48 = vld [vmem:[%s5878_s7] sm:$0xff]   ;;  %4037 = vmatprep.subr.bf16.mxu0 %v4194_v47 }
 0x401   : > { %3110 = vmatprep.mubr.bf16.mxu1 %v2689_v26  ;;  %v4196_v26 = vld [vmem:[%s5878_s7 + $0x48] sm:$0xff]   ;;  %4038 = vmatpush3.bf16.msra.mxu0 %v4195_v48 }
 0x402   : > { %v2540_v50 = vpop.permute.xlu1 %2539  ;;  %v2653_v45 = vld [vmem:[#allocation5 + $0x38] sm:$0xff]  ;;  %4039 = vmatprep.subr.bf16.mxu0 %v4196_v26 }
 0x403   : > { %2560 = vst.msk [vmem:[#allocation5 + $0x88] sm:$0xff] %vm2428_vm15, %v2540_v50  ;;  %v2688_v53 = vpack.c.bf16 %v2653_v45, %v2648_v51  ;;  %v4197_v50 = vld [vmem:[%s5878_s7 + $0x8] sm:$0xff]   ;;  %v4198_v51 = vld [vmem:[%s5878_s7 + $0x50] sm:$0xff]  }
 0x404   : > { %v4199_v45 = vld [vmem:[%s5878_s7 + $0x10] sm:$0xff]  }
 0x405   : > { %3111 = vmatmul.mubr.bf16.vlgmr.msra.gmra.mrb[16].mxu1 %v2688_v53  ;;  %4040 = vmatpush3.bf16.msra.mxu0 %v4197_v50  ;;  %v4200_v53 = vld [vmem:[%s5878_s7 + $0x58] sm:$0xff]  }
 0x406   : > { %v2609_v54 = vpop.permute.xlu1 %2608  ;;  %v2664_v56 = vld [vmem:[#allocation5 + $0x90] sm:$0xff]  ;;  %3343 = vmatpush1.bf16.msra.mxu1 %v4170_v37  ;;  %4041 = vmatprep.subr.bf16.mxu0 %v4198_v51 }
 0x407   : > { %2627 = vst.msk [vmem:[#allocation5 + $0xe0] sm:$0xff] %vm2428_vm15, %v2609_v54  ;;  %v2694_v27 = vpack.c.bf16 %v2664_v56, %v2659_v55  ;;  %3344 = vmatprep.subr.bf16.mxu1 %v4175_v28  ;;  %v4201_v54 = vld [vmem:[%s5878_s7 + $0x18] sm:$0xff]   ;;  %v4202_v55 = vld [vmem:[%s5878_s7 + $0x60] sm:$0xff]  }
 0x408   : > { %v4203_v56 = vld [vmem:[%s5878_s7 + $0x20] sm:$0xff]  }
 0x409   : > { %3118 = vmatprep.mubr.bf16.mxu1 %v2694_v27  ;;  %4042 = vmatpush3.bf16.msra.mxu0 %v4199_v45  ;;  %v4204_v27 = vld [vmem:[%s5878_s7 + $0x68] sm:$0xff]  }
 0x40a   : > { %v2544_v58 = vpop.permute.xlu1 %2543  ;;  %v2663_v60 = vld [vmem:[#allocation5 + $0x88] sm:$0xff]  ;;  %3345 = vmatpush1.bf16.msra.mxu1 %v4173_v29  ;;  %4043 = vmatprep.subr.bf16.mxu0 %v4200_v53 }
 0x40b   : > { %2562 = vst.msk [vmem:[#allocation5 + $0xd8] sm:$0xff] %vm2428_vm15, %v2544_v58  ;;  %v2693_v61 = vpack.c.bf16 %v2663_v60, %v2658_v59  ;;  %3346 = vmatprep.subr.bf16.mxu1 %v4178_v31 }
 0x40d   : > { %3119 = vmatmul.mubr.bf16.gmra.mrb[20].mxu1 %v2693_v61  ;;  %4044 = vmatpush3.bf16.msra.mxu0 %v4201_v54 }
 0x40e   : > { %v2613_v44 = vpop.permute.xlu1 %2612  ;;  %v2674_v63 = vld [vmem:[#allocation5 + $0xe0] sm:$0xff]  ;;  %3347 = vmatpush1.bf16.msra.mxu1 %v4176_v0  ;;  %4045 = vmatprep.subr.bf16.mxu0 %v4202_v55 }
 0x40f   : > { %2629 = vst.msk [vmem:[#allocation5 + $0x130] sm:$0xff] %vm2428_vm15, %v2613_v44  ;;  %v2699_v1 = vpack.c.bf16 %v2674_v63, %v2669_v62  ;;  %3348 = vmatprep.subr.bf16.mxu1 %v4181_v32  ;;  %v3854_v63 = vld [vmem:[%s5875_s4] ss:$0 sm:$0xff] }
 0x410   : > { %v3059_v31 = vadd.f32 %v5719_v30, %v3854_v63 }
 0x411   : > { %3126 = vmatprep.mubr.bf16.mxu1 %v2699_v1  ;;  %4046 = vmatpush3.bf16.msra.mxu0 %v4203_v56 }
 0x412   : > { %v2548_v2 = vpop.permute.xlu1 %2547  ;;  %v2673_v6 = vld [vmem:[#allocation5 + $0xd8] sm:$0xff]  ;;  %3349 = vmatpush1.bf16.msra.mxu1 %v4179_v33  ;;  %4047 = vmatprep.subr.bf16.mxu0 %v4204_v27 }
 0x413   : > { %2564 = vst.msk [vmem:[#allocation5 + $0x128] sm:$0xff] %vm2428_vm15, %v2548_v2  ;;  %v2698_v5 = vpack.c.bf16 %v2673_v6, %v2668_v3  ;;  %3350 = vmatprep.subr.bf16.mxu1 %v4184_v34  ;;  %v3048_v3 = vadd.f32 %v5639_v25, %v3854_v63 }
 0x415   : > { %3127 = vmatmul.mubr.bf16.gmra.mrb[24].mxu1 %v2698_v5 }
 0x416   : > { %v2684_v9 = vld [vmem:[#allocation5 + $0x130] sm:$0xff]  ;;  %3351 = vmatpush1.bf16.msra.mxu1 %v4182_v35 }
 0x417   : > { %v2704_v10 = vpack.c.bf16 %v2684_v9, %v2679_v8  ;;  %3352 = vmatprep.subr.bf16.mxu1 %v4187_v41  ;;  %v3051_v9 = vadd.f32 %v5641_v49, %v3854_v63 }
 0x419   : > { %3134 = vmatprep.mubr.bf16.mxu1 %v2704_v10 }
 0x41a   : > { %v2683_v12 = vld [vmem:[#allocation5 + $0x128] sm:$0xff]  ;;  %3353 = vmatpush1.bf16.msra.mxu1 %v4185_v40 }
 0x41b   : > { %v2703_v13 = vpack.c.bf16 %v2683_v12, %v2678_v11  ;;  %3354 = vmatprep.subr.bf16.mxu1 %v4190_v42 }
 0x41d   : > { %3135 = vmatmul.mubr.bf16.gmra.mrb[28].mxu1 %v2703_v13 }
 0x41e   : > { %3374 = vmatprep.mubr.bf16.mxu1 %v4238_v4  ;;  %3355 = vmatpush1.bf16.msra.mxu1 %v4188_v43 }
 0x41f   : > { %3356 = vmatprep.subr.bf16.mxu1 %v4193_v46 }
 0x422   : > { %3357 = vmatpush1.bf16.msra.mxu1 %v4191_v24 }
 0x453   : > { %v3977_v38 = vpop.f32.mrb[8].mxu1 }
 0x454   : > { %v3978_v36 = vpop.f32.mrb[9].mxu1 }
 0x455   : > { %v5733_v15 = vadd.f32 %v3978_v36, %v3977_v38  ;;  %v3980_v17 = vpop.f32.mrb[10].mxu1 }
 0x456   : > { %v3981_v57 = vpop.f32.mrb[11].mxu1 }
 0x457   : > { %v5735_v21 = vadd.f32 %v3981_v57, %v3980_v17  ;;  %v3056_v57 = vadd.f32 %v5717_v20, %v3854_v63  ;;  %v3064_v20 = vadd.f32 %v5733_v15, %v3854_v63 }
 0x459   : > { %v3067_v30 = vadd.f32 %v5735_v21, %v3854_v63 }
 0x45a   : > { %v5737_v22 = vpop.f32.mrb[36].mxu0 }
 0x45b   : > { %v5739_v23 = vpop.f32.mrb[37].mxu0 }
 0x45c   : > { %v5741_v7 = vpop.f32.mrb[38].mxu0 }
 0x45d   : > { %v5743_v52 = vpop.f32.mrb[39].mxu0 }
 0x4d0   : > { %v3983_v58 = vpop.f32.mrb[12].mxu1 }
 0x4d1   : > { %v3984_v59 = vpop.f32.mrb[13].mxu1 }
 0x4d2   : > { %v3985_v60 = vadd.f32 %v3984_v59, %v3983_v58  ;;  %v3986_v61 = vpop.f32.mrb[14].mxu1 }
 0x4d3   : > { %v3987_v44 = vpop.f32.mrb[15].mxu1 }
 0x4d4   : > { %v3988_v62 = vadd.f32 %v3987_v44, %v3986_v61  ;;  %v3072_v51 = vadd.f32 %v3985_v60, %v3854_v63 }
 0x4d6   : > { %v3075_v56 = vadd.f32 %v3988_v62, %v3854_v63  ;;  %v4205_v63 = vld [vmem:[%s5878_s7 + $0x28] sm:$0xff]  }
 0x4d7   : > { %4048 = vmatpush3.bf16.msra.mxu0 %v4205_v63 }
 0x4d8   : > { %v4005_v1 = vpop.f32.mrb[16].mxu1 }
 0x4d9   : > { %v4006_v2 = vpop.f32.mrb[17].mxu1 }
 0x4da   : > { %v4007_v6 = vadd.f32 %v4006_v2, %v4005_v1  ;;  %v4008_v5 = vpop.f32.mrb[18].mxu1 }
 0x4db   : > { %v4009_v8 = vpop.f32.mrb[19].mxu1 }
 0x4dc   : > { %v3113_v10 = vadd.f32 %v4007_v6, %v3048_v3  ;;  %v4010_v11 = vadd.f32 %v4009_v8, %v4008_v5 }
 0x4de   : > { %v3178_v12 = vadd.f32 %v5702_v16, %v3113_v10  ;;  %v3116_v13 = vadd.f32 %v4010_v11, %v3051_v9  ;;  %v4208_v9 = vld [vmem:[%s5878_s7 + $0x78] sm:$0xff]   ;;  %v3252_v11 = vlaneseq }
 0x4df   : > { %v4209_v10 = vld [vmem:[%s5878_s7 + $0x38] sm:$0xff]  }
 0x4e0   : > { %v3181_v38 = vadd.f32 %v5706_v19, %v3116_v13  ;;  %v4011_v36 = vpop.f32.mrb[20].mxu1  ;;  %v3208_v14 = vmax.f32 %v3178_v12, 0.0  ;;  %v3253_v12 = vshrl.u32 %v3252_v11, 7 }
 0x4e1   : > { %v4012_v17 = vpop.f32.mrb[21].mxu1 }
 0x4e2   : > { %v3209_v37 = vmax.f32 %v3181_v38, 0.0  ;;  %v4013_v28 = vadd.f32 %v4012_v17, %v4011_v36  ;;  %v4014_v25 = vpop.f32.mrb[22].mxu1  ;;  %v3254_v13 = vsub.s32 0, %v3253_v12  ;;  %v3250_v38 = vld [vmem:[%s5877_s6] sm:$0x3]  ;;  %v3258_v36 = vsub.s32 1, %v3253_v12 }
 0x4e3   : > { %v4015_v29 = vpop.f32.mrb[23].mxu1 }
 0x4e4   : > { %v3216_v0 = vmax.f32 %v3208_v14, %v3209_v37  ;;  %v3121_v49 = vadd.f32 %v4013_v28, %v3056_v57  ;;  %v4016_v32 = vadd.f32 %v4015_v29, %v4014_v25  ;;  %v3255_v17 = vrot.slane %v3250_v38, %v3254_v13 }
 0x4e5   : > { %v3259_v57 = vrot.slane %v3250_v38, %v3258_v36 }
 0x4e6   : > { %3220 = vst [vmem:[#allocation6] sm:$0xff] %v3216_v0  ;;  %v3186_v16 = vadd.f32 %v5700_v39, %v3121_v49  ;;  %v3124_v33 = vadd.f32 %v4016_v32, %v3059_v31 }
 0x4e8   : > { %v3189_v19 = vadd.f32 %v5704_v18, %v3124_v33  ;;  %v4017_v34 = vpop.f32.mrb[24].mxu1  ;;  %v3210_v40 = vmax.f32 %v3186_v16, 0.0 }
 0x4e9   : > { %v4018_v35 = vpop.f32.mrb[25].mxu1 }
 0x4ea   : > { %v3211_v41 = vmax.f32 %v3189_v19, 0.0  ;;  %v4019_v42 = vadd.f32 %v4018_v35, %v4017_v34  ;;  %v4020_v4 = vpop.f32.mrb[26].mxu1 }
 0x4eb   : > { %v4021_v43 = vpop.f32.mrb[27].mxu1 }
 0x4ec   : > { %v3217_v46 = vmax.f32 %v3210_v40, %v3211_v41  ;;  %v3129_v24 = vadd.f32 %v4019_v42, %v3064_v20  ;;  %v4022_v47 = vadd.f32 %v4021_v43, %v4020_v4  ;;  %v3911_v40 = vld [vmem:[%s5879_s8] ss:$0 sm:$0xff] }
 0x4ee   : > { %3221 = vst [vmem:[#allocation6 + $0x8] sm:$0xff] %v3217_v46  ;;  %v3194_v39 = vadd.f32 %v5739_v23, %v3129_v24  ;;  %v3132_v48 = vadd.f32 %v4022_v47, %v3067_v30 }
 0x4f0   : > { %v3197_v18 = vadd.f32 %v5743_v52, %v3132_v48  ;;  %v4023_v26 = vpop.f32.mrb[28].mxu1  ;;  %v3212_v15 = vmax.f32 %v3194_v39, 0.0 }
 0x4f1   : > { %v4024_v50 = vpop.f32.mrb[29].mxu1 }
 0x4f2   : > { %v3213_v45 = vmax.f32 %v3197_v18, 0.0  ;;  %v4025_v53 = vadd.f32 %v4024_v50, %v4023_v26  ;;  %v4026_v54 = vpop.f32.mrb[30].mxu1 }
 0x4f3   : > { %v4027_v55 = vpop.f32.mrb[31].mxu1 }
 0x4f4   : > { %v3218_v27 = vmax.f32 %v3212_v15, %v3213_v45  ;;  %v3137_v21 = vadd.f32 %v4025_v53, %v3072_v51  ;;  %v4028_v58 = vadd.f32 %v4027_v55, %v4026_v54 }
 0x4f5   : > { %v3224_v60 = vld [vmem:[#allocation6] ss:$2 sm:$0xff]  ;;  %v3228_v2 = vld [vmem:[#allocation6 + $0x1] ss:$2 sm:$0xff] }
 0x4f6   : > { %3222 = vst [vmem:[#allocation6 + $0x10] sm:$0xff] %v3218_v27  ;;  %v3202_v59 = vadd.f32 %v5737_v22, %v3137_v21  ;;  %v3140_v61 = vadd.f32 %v4028_v58, %v3075_v56  ;;  %v3231_v5 = vmax.f32 %v3224_v60, %v3228_v2  ;;  %v4206_v22 = vld [vmem:[%s5878_s7 + $0x70] sm:$0xff]  }
 0x4f7   : > { %4049 = vmatprep.subr.bf16.mxu0 %v4206_v22 }
 0x4f8   : > { %v3205_v23 = vadd.f32 %v5741_v7, %v3140_v61  ;;  %v3214_v44 = vmax.f32 %v3202_v59, 0.0  ;;  %v4207_v7 = vld [vmem:[%s5878_s7 + $0x30] sm:$0xff]  }
 0x4f9   : > { %4050 = vmatpush3.bf16.msra.mxu0 %v4207_v7 }
 0x4fa   : > { %v3215_v52 = vmax.f32 %v3205_v23, 0.0  ;;  %4051 = vmatprep.subr.bf16.mxu0 %v4208_v9 }
 0x4fc   : > { %v3219_v1 = vmax.f32 %v3214_v44, %v3215_v52 }
 0x4fd   : > { %4052 = vmatpush3.bf16.msra.mxu0 %v4209_v10 }
 0x4fe   : > { %3223 = vst [vmem:[#allocation6 + $0x18] sm:$0xff] %v3219_v1 }
 0x505   : > { %v3226_v3 = vld [vmem:[#allocation6 + $0x10] ss:$2 sm:$0xff]  ;;  %v3230_v6 = vld [vmem:[#allocation6 + $0x11] ss:$2 sm:$0xff] }
 0x506   : > { %v3232_v8 = vmax.f32 %v3226_v3, %v3230_v6 }
 0x508   : > { %v3233_v62 = vpack.c.bf16 %v3232_v8, %v3231_v5 }
 0x50a   : > { %3375 = vmatmul.mubr.bf16.vlgmr.msra.gmra.mrb[32].mxu1 %v3233_v62 }
 0x5dd   : > { %v3376_v14 = vpop.f32.mrb[32].mxu1 }
 0x5de   : > { %v3377_v37 = vadd.f32 %v3376_v14, %v3255_v17  ;;  %v3378_v28 = vpop.f32.mrb[33].mxu1 }
 0x5df   : > { %v3379_v25 = vadd.f32 %v3378_v28, %v3259_v57  ;;  %v3380_v29 = vpop.f32.mrb[34].mxu1 }
 0x5e0   : > { %v3381_v31 = vadd.f32 %v3380_v29, %v3255_v17  ;;  %v3382_v0 = vpop.f32.mrb[35].mxu1  ;;  %v3385_v32 = vmax.f32 %v3377_v37, 0.0 }
 0x5e1   : > { %v3383_v49 = vadd.f32 %v3382_v0, %v3259_v57  ;;  %v3386_v33 = vmax.f32 %v3379_v25, 0.0 }
 0x5e2   : > { %v3387_v16 = vmax.f32 %v3381_v31, 0.0 }
 0x5e3   : > { %v3388_v19 = vmax.f32 %v3383_v49, 0.0 }
 0x5e4   : > { %v3389_v34 = vpack.c.bf16 %v3387_v16, %v3385_v32 }
 0x5e5   : > { %v3390_v35 = vpack.c.bf16 %v3388_v19, %v3386_v33 }
 0x5e7   : > { %3558 = vmatprep.mubr.bf16.mxu0 %v3390_v35 }
 0x5e8   : > { %3559 = vmatmul.mubr.bf16.vlgmr.msra.gmra.mrb[40].mxu0 %v3389_v34 }
 0x6bb   : > { %v4053_v20 = vpop.f32.mrb[40].mxu0 }
 0x6bc   : > { %v4054_v41 = vpop.f32.mrb[41].mxu0 }
 0x6bd   : > { %v4055_v42 = vadd.f32 %v4054_v41, %v4053_v20  ;;  %v4056_v4 = vpop.f32.mrb[42].mxu0 }
 0x6be   : > { %v4057_v43 = vpop.f32.mrb[43].mxu0 }
 0x6bf   : > { %v3561_v30 = vadd.f32 %v4055_v42, %v3911_v40  ;;  %v4058_v46 = vadd.f32 %v4057_v43, %v4056_v4 }
 0x6c1   : > { %v3567_v24 = vsub.f32 0.0, %v3561_v30  ;;  %v3564_v47 = vadd.f32 %v4058_v46, %v3911_v40 }
 0x6c3   : > { %v3569_v39 = vmul.f32 1.442695, %v3567_v24  ;;  %v3568_v48 = vsub.f32 0.0, %v3564_v47 }
 0x6c5   : > { %4210 = vpow2.f32 %v3569_v39  ;;  %v3571_v18 = vmul.f32 1.442695, %v3568_v48 }
 0x6c7   : > { %4212 = vpow2.f32 %v3571_v18 }
 0x6cf   : > { %v4211_v26 = vpop.eup %4210 }
 0x6d0   : > { %v3573_v50 = vadd.f32 1.0, %v4211_v26 }
 0x6d1   : > { %v4213_v51 = vpop.eup %4212 }
 0x6d2   : > { %4214 = vrcp.f32 %v3573_v50  ;;  %v3574_v15 = vadd.f32 1.0, %v4213_v51 }
 0x6d4   : > { %4216 = vrcp.f32 %v3574_v15 }
 0x6dc   : > { %v4215_v45 = vpop.eup %4214 }
 0x6dd   : > { %3578 = vst.msk [vmem:[%s332_s11] sm:$0xff] %vm3577_vm0, %v4215_v45 }
 0x6de   : > { %v4217_v53 = vpop.eup %4216 }
 0x6df   : > { %3579 = vst.msk [vmem:[%s332_s11 + $0x8] sm:$0xff] %vm3577_vm0, %v4217_v53 }
 0x6e0 PF: > { %s19_s30 = sadd.s32 1, %s4225_s30  }
 0x6e1   : > { %p16_p4 = scmp.ge.s32.totalorder %s19_s30, 4  }
 0x6e3   :  { %18 = sbr.rel (!%p16_p4) target bundleno = 1 (0x1), region = 109 }

</bundles_post_ra>
